<compile_context>
chip_gen: v6e
topology: v6e:2x2x1
jax: 0.10.0
libtpu: 0.0.40
codegen_flags: <defaults>
</compile_context>

<pallas_src>
import jax
import jax.numpy as jnp
from jax.experimental import pallas as pl
from jax.experimental.pallas import tpu as pltpu

VAR_EPS = 1e-4      # self.var_eps
BN_EPS = 1e-5       # torch BatchNorm1d default eps
LANE = 128


# --------------------------------------------------------------------------- #
# Kernel
# --------------------------------------------------------------------------- #
def vae_forward_kernel(
    # per-batch-tile inputs
    k_ref, eps_ref,
    # resident parameters (constant index_map)
    pre_mu_ref, pre_inv_sd_ref,
    w_enc_ref, b_enc_ref,
    w_lat_ref, b_lat_ref,
    w_dec_ref, b_dec_ref,
    w_head_ref, b_head_ref,
    # per-batch-tile outputs
    mean_ref, theta_ref, lat_ref,
):
    Zp = eps_ref.shape[-1]          # padded latent width (multiple of 128)
    G = mean_ref.shape[-1]          # gene count (multiple of 128)

    k = k_ref[...].astype(jnp.float32)

    # ---- RNA_PreprocessLayer: library size + standardized log1p counts ----
    s = jnp.sum(k, axis=-1, keepdims=True)                            # [tB, 1]
    yc = (jnp.log1p(k) - pre_mu_ref[...]) * pre_inv_sd_ref[...]       # [tB, G]

    # ---- encoder: Linear (eval-mode BN folded in) -> ReLU ----
    h = jnp.dot(yc.astype(jnp.bfloat16), w_enc_ref[...],
                preferred_element_type=jnp.float32) + b_enc_ref[...]
    h = jnp.maximum(h, 0.0)                                           # [tB, H1p]

    # ---- fused latent heads, lane-aligned: lanes [0,Zp)=mu, [Zp,2Zp)=logvar ----
    lat = jnp.dot(h.astype(jnp.bfloat16), w_lat_ref[...],
                  preferred_element_type=jnp.float32) + b_lat_ref[...]
    col = jax.lax.broadcasted_iota(jnp.int32, lat.shape, 1)
    lat_out = jnp.where(col < Zp, lat, jnp.exp(lat) + VAR_EPS)        # [tB, 2Zp]
    lat_ref[...] = lat_out                                            # lane-dense slab

    lmu = lat_out[:, :Zp]                                             # 128-lane aligned slice
    lvar = lat_out[:, Zp:]

    # ---- reparameterization: Normal(mu, sqrt(var)).rsample() with external eps
    latent = lmu + jnp.sqrt(lvar) * eps_ref[...]                      # [tB, Zp]

    # ---- decoder: Linear (eval-mode BN folded in) -> ReLU ----
    d = jnp.dot(latent.astype(jnp.bfloat16), w_dec_ref[...],
                preferred_element_type=jnp.float32) + b_dec_ref[...]
    d = jnp.maximum(d, 0.0)                                           # [tB, H2p]

    # ---- fused decoder heads: [ logits | theta-pre ] ----
    heads = jnp.dot(d.astype(jnp.bfloat16), w_head_ref[...],
                    preferred_element_type=jnp.float32) + b_head_ref[...]
    logits = heads[:, :G]
    th_pre = heads[:, G:]

    # RNA_MeanActivation: softmax over genes, mean = s * rho
    m = jnp.max(logits, axis=-1, keepdims=True)
    e = jnp.exp(logits - m)
    rho = e * pl.reciprocal(jnp.sum(e, axis=-1, keepdims=True), approx=True)
    mean_ref[...] = (s * rho).astype(mean_ref.dtype)

    # RNA_DispersionActivation: clipped exp
    theta_ref[...] = jnp.exp(jnp.clip(th_pre, -15.0, 15.0)).astype(theta_ref.dtype)


# --------------------------------------------------------------------------- #
# Wrapper / host-side plumbing
# --------------------------------------------------------------------------- #
def _round_up(x, m):
    return (x + m - 1) // m * m


def _pad_to(a, shape):
    return jnp.pad(a, [(0, t - s) for s, t in zip(a.shape, shape)])


def _pick_tiling(B, G, Zp, H1p, H2p, k_itemsize, requested_tile_b):
    """Generation-aware batch tile + VMEM limit."""
    try:
        vmem_cap = int(pltpu.get_tpu_info().vmem_capacity_bytes)
    except Exception:
        vmem_cap = 128 * 1024 * 1024

    weight_bytes = (2 * (G * H1p + H1p * 2 * Zp + Zp * H2p + H2p * 2 * G)   # bf16 weights
                    + 4 * (2 * G + H1p + 2 * Zp + H2p + 2 * G + 2 * Zp))    # f32 biases/stats

    def tile_bytes(tb):
        # double-buffered streamed tiles (k in, eps in, bf16 mean/theta out, lat out)
        streamed = tb * (G * k_itemsize + Zp * 4 + 2 * G * 2 + 2 * Zp * 4)
        # f32 intermediates (yc, h, lat, d, heads)
        interm = tb * 4 * (2 * G + H1p + 2 * Zp + H2p + 2 * G)
        return 2 * streamed + interm

    if requested_tile_b is None:
        # 128 MiB VMEM class (v5e/v6e) -> 512-row tiles; 64 MiB class (v7x) -> 256
        tile_b = 512 if vmem_cap > 96 * 1024 * 1024 else 256
        while tile_b > 128 and weight_bytes + tile_bytes(tile_b) > 0.45 * vmem_cap:
            tile_b //= 2
        tile_b = min(tile_b, max(128, _round_up(B, 128)))
    else:
        tile_b = int(requested_tile_b)
    if tile_b % 8 != 0:
        raise ValueError("tile_b must be a multiple of 8")

    vmem_limit = int(min(0.9 * vmem_cap,
                         max(32 * 1024 * 1024, 2 * (weight_bytes + tile_bytes(tile_b)))))
    return tile_b, vmem_limit


def rna_nb_vae_forward(k, eps, params, *, tile_b=None, out_dtype=jnp.bfloat16):
    """Whole forward as one batched pallas_call.
    Returns (mean, theta, latent_mu, latent_var); mean/theta in `out_dtype`."""
    B, G = k.shape
    Z = eps.shape[1]
    if G % LANE != 0:
        # TODO(synk): general gene counts need -inf padding on the softmax head bias.
        raise ValueError("gene dimension must be a multiple of 128")

    w_enc, b_enc = params["w_enc"], params["b_enc"]
    w_lat, b_lat = params["w_lat"], params["b_lat"]
    w_dec, b_dec = params["w_dec"], params["b_dec"]
    w_head, b_head = params["w_head"], params["b_head"]
    H1p = w_enc.shape[1]
    H2p = w_dec.shape[1]
    Zp = w_lat.shape[1] // 2

    tile_b, vmem_limit = _pick_tiling(B, G, Zp, H1p, H2p, k.dtype.itemsize, tile_b)

    # Pad batch up to a tile multiple (padded rows sliced off below), pad eps lanes.
    Bp = _round_up(B, tile_b)
    if Bp != B:
        k = jnp.pad(k, ((0, Bp - B), (0, 0)))
        eps = jnp.pad(eps, ((0, Bp - B), (0, 0)))
    if Z != Zp:
        eps = jnp.pad(eps, ((0, 0), (0, Zp - Z)))
    n_tiles = Bp // tile_b

    def tiled(shape):
        return pl.BlockSpec(shape, lambda i: (i, 0))

    def resident(shape):
        return pl.BlockSpec(shape, lambda i: (0, 0))

    in_specs = [
        tiled((tile_b, G)),           # k
        tiled((tile_b, Zp)),          # eps (lane padded)
        resident((1, G)),             # pre_mu
        resident((1, G)),             # pre_inv_sd
        resident((G, H1p)),           # w_enc (bf16, BN folded, lane padded)
        resident((1, H1p)),           # b_enc
        resident((H1p, 2 * Zp)),      # w_lat = [ mu | logvar ] lane aligned
        resident((1, 2 * Zp)),        # b_lat
        resident((Zp, H2p)),          # w_dec (bf16, BN folded, lane padded)
        resident((1, H2p)),           # b_dec
        resident((H2p, 2 * G)),       # w_head = [ logits | theta-pre ]
        resident((1, 2 * G)),         # b_head
    ]
    out_specs = (
        tiled((tile_b, G)),           # mean   (out_dtype)
        tiled((tile_b, G)),           # theta  (out_dtype)
        tiled((tile_b, 2 * Zp)),      # [ latent_mu | latent_var ] f32 slab
    )
    out_shape = (
        jax.ShapeDtypeStruct((Bp, G), out_dtype),
        jax.ShapeDtypeStruct((Bp, G), out_dtype),
        jax.ShapeDtypeStruct((Bp, 2 * Zp), jnp.float32),
    )

    flops = 2 * Bp * (G * H1p + H1p * 2 * Zp + Zp * H2p + H2p * 2 * G)
    transcendentals = Bp * (3 * G + 2 * Zp)
    bytes_accessed = (
        Bp * G * k.dtype.itemsize
        + Bp * Zp * 4
        + 2 * Bp * G * jnp.dtype(out_dtype).itemsize
        + Bp * 2 * Zp * 4
        + 2 * (G * H1p + H1p * 2 * Zp + Zp * H2p + H2p * 2 * G)
        + 4 * (2 * G + H1p + 2 * Zp + H2p + 2 * G)
    )

    mean, theta, lat_packed = pl.pallas_call(
        vae_forward_kernel,
        out_shape=out_shape,
        grid=(n_tiles,),
        in_specs=in_specs,
        out_specs=out_specs,
        compiler_params=pltpu.CompilerParams(
            dimension_semantics=("parallel",),
            vmem_limit_bytes=vmem_limit,
        ),
        cost_estimate=pl.CostEstimate(
            flops=flops,
            transcendentals=transcendentals,
            bytes_accessed=bytes_accessed,
        ),
    )(
        k, eps,
        params["pre_mu"], params["pre_inv_sd"],
        w_enc, b_enc, w_lat, b_lat, w_dec, b_dec, w_head, b_head,
    )
    return (mean[:B], theta[:B],
            lat_packed[:B, :Z], lat_packed[:B, Zp:Zp + Z])


# --------------------------------------------------------------------------- #
# Parameter construction / packing
# --------------------------------------------------------------------------- #
def init_raw_params(key, input_size, encoder_size=(64, 32), decoder_size=(64,)):
    """Deterministic synthetic parameters matching the module's shapes,
    including eval-mode BatchNorm running statistics."""
    G = input_size
    H1, Z = encoder_size
    H2 = decoder_size[0]
    keys = jax.random.split(key, 6)

    def lin(kk, fan_in, fan_out):
        lim = 1.0 / jnp.sqrt(fan_in)
        w = jax.random.uniform(kk, (fan_in, fan_out), jnp.float32, -lim, lim)
        b = jnp.zeros((1, fan_out), jnp.float32)
        return w, b

    w_enc, b_enc = lin(keys[0], G, H1)
    w_mu, b_mu = lin(keys[1], H1, Z)
    w_var, b_var = lin(keys[2], H1, Z)
    w_dec, b_dec = lin(keys[3], Z, H2)
    w_dmu, b_dmu = lin(keys[4], H2, G)
    w_dth, b_dth = lin(keys[5], H2, G)

    return dict(
        w_enc=w_enc, b_enc=b_enc,
        g_enc=jnp.ones((1, H1), jnp.float32), be_enc=jnp.zeros((1, H1), jnp.float32),
        rm_enc=jnp.zeros((1, H1), jnp.float32), rv_enc=jnp.ones((1, H1), jnp.float32),
        w_mu=w_mu, b_mu=b_mu, w_var=w_var, b_var=b_var,
        w_dec=w_dec, b_dec=b_dec,
        g_dec=jnp.ones((1, H2), jnp.float32), be_dec=jnp.zeros((1, H2), jnp.float32),
        rm_dec=jnp.zeros((1, H2), jnp.float32), rv_dec=jnp.ones((1, H2), jnp.float32),
        w_dmu=w_dmu, b_dmu=b_dmu, w_dth=w_dth, b_dth=b_dth,
    )


def prepare_params(raw, pre_mu, pre_sd):
    """Host-side packing:
       * fold eval-mode BatchNorm into the preceding Linear (exact),
       * fuse paired heads into lane-aligned wide matmuls,
       * zero-pad H1/H2/Z to 128-lane multiples (numerically exact),
       * precompute 1/pre_sd, cast matmul weights to bf16."""
    G, H1 = raw["w_enc"].shape
    Z = raw["w_mu"].shape[1]
    H2 = raw["w_dec"].shape[1]
    H1p, H2p, Zp = _round_up(H1, LANE), _round_up(H2, LANE), _round_up(Z, LANE)

    def fold_bn(w, b, gamma, beta, rmean, rvar):
        scale = gamma / jnp.sqrt(rvar + BN_EPS)
        return w * scale, b * scale + beta - rmean * scale

    w_enc, b_enc = fold_bn(raw["w_enc"], raw["b_enc"], raw["g_enc"],
                           raw["be_enc"], raw["rm_enc"], raw["rv_enc"])
    w_dec, b_dec = fold_bn(raw["w_dec"], raw["b_dec"], raw["g_dec"],
                           raw["be_dec"], raw["rm_dec"], raw["rv_dec"])

    # zero-pad hidden widths (output dims) and latent K dim of the decoder
    w_enc = _pad_to(w_enc, (G, H1p))
    b_enc = _pad_to(b_enc, (1, H1p))
    w_dec = _pad_to(w_dec, (Zp, H2p))
    b_dec = _pad_to(b_dec, (1, H2p))

    # fused, lane-aligned latent heads: lanes [0,Zp)=mu, [Zp,2Zp)=logvar
    w_lat = jnp.zeros((H1p, 2 * Zp), jnp.float32)
    w_lat = w_lat.at[:H1, :Z].set(raw["w_mu"]).at[:H1, Zp:Zp + Z].set(raw["w_var"])
    b_lat = jnp.zeros((1, 2 * Zp), jnp.float32)
    b_lat = b_lat.at[:, :Z].set(raw["b_mu"]).at[:, Zp:Zp + Z].set(raw["b_var"])

    # fused decoder heads [ logits | theta-pre ]  (G already a lane multiple)
    w_head = jnp.zeros((H2p, 2 * G), jnp.float32)
    w_head = w_head.at[:H2, :G].set(raw["w_dmu"]).at[:H2, G:].set(raw["w_dth"])
    b_head = jnp.concatenate([raw["b_dmu"], raw["b_dth"]], axis=1)

    return dict(
        pre_mu=pre_mu.reshape(1, -1).astype(jnp.float32),
        pre_inv_sd=(1.0 / pre_sd).reshape(1, -1).astype(jnp.float32),
        w_enc=w_enc.astype(jnp.bfloat16), b_enc=b_enc.astype(jnp.float32),
        w_lat=w_lat.astype(jnp.bfloat16), b_lat=b_lat.astype(jnp.float32),
        w_dec=w_dec.astype(jnp.bfloat16), b_dec=b_dec.astype(jnp.float32),
        w_head=w_head.astype(jnp.bfloat16), b_head=b_head.astype(jnp.float32),
    )


def maybe_narrow_counts(k):
    """Ship counts in bf16 when exactly representable (integer counts <= 256)."""
    is_int = bool(jnp.all(k == jnp.round(k)))
    kmax = float(jnp.max(k))
    if is_int and kmax <= 256.0:
        return k.astype(jnp.bfloat16)
    # TODO(synk): float16/int16 path for counts in (256, 2048) not implemented.
    return k


# --------------------------------------------------------------------------- #
# Pure-JAX f32 reference (for tolerance check)
# --------------------------------------------------------------------------- #
def reference_forward(k, eps, raw, pre_mu, pre_sd):
    s = jnp.sum(k, axis=-1, keepdims=True)
    yc = (jnp.log1p(k) - pre_mu[None, :]) / pre_sd[None, :]

    def bn(x, g, b, rm, rv):
        return (x - rm) / jnp.sqrt(rv + BN_EPS) * g + b

    h = yc @ raw["w_enc"] + raw["b_enc"]
    h = jnp.maximum(bn(h, raw["g_enc"], raw["be_enc"], raw["rm_enc"], raw["rv_enc"]), 0.0)
    lmu = h @ raw["w_mu"] + raw["b_mu"]
    lvar = jnp.exp(h @ raw["w_var"] + raw["b_var"]) + VAR_EPS
    latent = lmu + jnp.sqrt(lvar) * eps
    d = latent @ raw["w_dec"] + raw["b_dec"]
    d = jnp.maximum(bn(d, raw["g_dec"], raw["be_dec"], raw["rm_dec"], raw["rv_dec"]), 0.0)
    logits = d @ raw["w_dmu"] + raw["b_dmu"]
    rho = jax.nn.softmax(logits, axis=-1)
    mean = s * rho
    theta = jnp.exp(jnp.clip(d @ raw["w_dth"] + raw["b_dth"], -15.0, 15.0))
    return mean, theta, lmu, lvar


# --------------------------------------------------------------------------- #
if __name__ == "__main__":
    # input_size = output_size = 256 genes; encoder_size=[64, 32]; decoder_size=[64]
    # Batch deliberately NOT a tile multiple to exercise the padding path.
    B, G = 384, 256
    H1, Z, H2 = 64, 32, 64

    root = jax.random.PRNGKey(0)
    k_counts, k_eps, k_params = jax.random.split(root, 3)

    # synthetic RNA count matrix (non-negative integers as float32)
    k = jax.random.poisson(k_counts, lam=5.0, shape=(B, G)).astype(jnp.float32)
    # reparameterization noise (rsample's standard-normal draw)
    eps = jax.random.normal(k_eps, (B, Z), jnp.float32)

    raw = init_raw_params(k_params, G, (H1, Z), (H2,))
    # preprocess statistics from the "training counts" (here: k itself)
    logk = jnp.log1p(k)
    pre_mu = jnp.mean(logk, axis=0)
    pre_sd = jnp.std(logk, axis=0) + 1e-6
    params = prepare_params(raw, pre_mu, pre_sd)

    k_in = maybe_narrow_counts(k)
    mean, theta, latent_mu, latent_var = rna_nb_vae_forward(
        k_in, eps, params, tile_b=256)
    jax.block_until_ready((mean, theta, latent_mu, latent_var))

    # correctness vs pure-JAX f32 reference (bf16 weights/outputs -> loose tol)
    ref_mean, ref_theta, ref_lmu, ref_lvar = reference_forward(k, eps, raw, pre_mu, pre_sd)

    def rel_err(a, b):
        a = a.astype(jnp.float32)
        b = b.astype(jnp.float32)
        return float(jnp.linalg.norm(a - b) / (jnp.linalg.norm(b) + 1e-12))

    assert mean.shape == (B, G) and theta.shape == (B, G)
    assert latent_mu.shape == (B, Z) and latent_var.shape == (B, Z)
    assert mean.dtype == jnp.bfloat16 and theta.dtype == jnp.bfloat16
    assert bool(jnp.all(jnp.isfinite(mean.astype(jnp.float32))))
    assert bool(jnp.all(jnp.isfinite(latent_mu)))
    assert bool(jnp.all(theta.astype(jnp.float32) > 0.0))
    assert bool(jnp.all(latent_var > 0.0))
    assert rel_err(mean, ref_mean) < 5e-2
    assert rel_err(theta, ref_theta) < 5e-2
    assert rel_err(latent_mu, ref_lmu) < 5e-2
    assert rel_err(latent_var, ref_lvar) < 5e-2

    print("KERNEL_OK")
</pallas_src>

<mosaic_0001>
module attributes {stable_mosaic.version = 11 : i64} {
  func.func @vae_forward_kernel(%arg0: i32, %arg1: memref<256x256xbf16, #tpu.memory_space<vmem>>, %arg2: memref<256x128xf32, #tpu.memory_space<vmem>>, %arg3: memref<1x256xf32, #tpu.memory_space<vmem>>, %arg4: memref<1x256xf32, #tpu.memory_space<vmem>>, %arg5: memref<256x128xbf16, #tpu.memory_space<vmem>>, %arg6: memref<1x128xf32, #tpu.memory_space<vmem>>, %arg7: memref<128x256xbf16, #tpu.memory_space<vmem>>, %arg8: memref<1x256xf32, #tpu.memory_space<vmem>>, %arg9: memref<128x128xbf16, #tpu.memory_space<vmem>>, %arg10: memref<1x128xf32, #tpu.memory_space<vmem>>, %arg11: memref<128x512xbf16, #tpu.memory_space<vmem>>, %arg12: memref<1x512xf32, #tpu.memory_space<vmem>>, %arg13: memref<256x256xbf16, #tpu.memory_space<vmem>>, %arg14: memref<256x256xbf16, #tpu.memory_space<vmem>>, %arg15: memref<256x256xf32, #tpu.memory_space<vmem>>) attributes {dimension_semantics = [#tpu.dimension_semantics<parallel>], iteration_bounds = array<i64: 2>, scalar_prefetch = 0 : i64, scratch_operands = 0 : i64, tpu.core_type = #tpu.core_type<tc>, window_params = [{transform_indices = @transform_0, window_bounds = array<i64: 256, 256>}, {transform_indices = @transform_1, window_bounds = array<i64: 256, 128>}, {pipeline_mode = #tpu.pipeline_mode<synchronous>, transform_indices = @transform_2, window_bounds = array<i64: 1, 256>}, {pipeline_mode = #tpu.pipeline_mode<synchronous>, transform_indices = @transform_3, window_bounds = array<i64: 1, 256>}, {pipeline_mode = #tpu.pipeline_mode<synchronous>, transform_indices = @transform_4, window_bounds = array<i64: 256, 128>}, {pipeline_mode = #tpu.pipeline_mode<synchronous>, transform_indices = @transform_5, window_bounds = array<i64: 1, 128>}, {pipeline_mode = #tpu.pipeline_mode<synchronous>, transform_indices = @transform_6, window_bounds = array<i64: 128, 256>}, {pipeline_mode = #tpu.pipeline_mode<synchronous>, transform_indices = @transform_7, window_bounds = array<i64: 1, 256>}, {pipeline_mode = #tpu.pipeline_mode<synchronous>, transform_indices = @transform_8, window_bounds = array<i64: 128, 128>}, {pipeline_mode = #tpu.pipeline_mode<synchronous>, transform_indices = @transform_9, window_bounds = array<i64: 1, 128>}, {pipeline_mode = #tpu.pipeline_mode<synchronous>, transform_indices = @transform_10, window_bounds = array<i64: 128, 512>}, {pipeline_mode = #tpu.pipeline_mode<synchronous>, transform_indices = @transform_11, window_bounds = array<i64: 1, 512>}, {transform_indices = @transform_12, window_bounds = array<i64: 256, 256>}, {transform_indices = @transform_13, window_bounds = array<i64: 256, 256>}, {transform_indices = @transform_14, window_bounds = array<i64: 256, 256>}]} {
    %c0 = arith.constant 0 : index
    %c0_0 = arith.constant 0 : index
    %0 = vector.load %arg1[%c0, %c0_0] : memref<256x256xbf16, #tpu.memory_space<vmem>>, vector<256x256xbf16>
    %1 = arith.extf %0 : vector<256x256xbf16> to vector<256x256xf32>
    %cst = arith.constant dense<0.000000e+00> : vector<256xf32>
    %2 = vector.multi_reduction <add>, %1, %cst [1] : vector<256x256xf32> to vector<256xf32>
    %3 = vector.shape_cast %2 : vector<256xf32> to vector<256x1xf32>
    %4 = math.log1p %1 : vector<256x256xf32>
    %c0_1 = arith.constant 0 : index
    %c0_2 = arith.constant 0 : index
    %5 = vector.load %arg3[%c0_1, %c0_2] : memref<1x256xf32, #tpu.memory_space<vmem>>, vector<1x256xf32>
    %6 = vector.broadcast %5 : vector<1x256xf32> to vector<256x256xf32>
    %7 = arith.subf %4, %6 : vector<256x256xf32>
    %c0_3 = arith.constant 0 : index
    %c0_4 = arith.constant 0 : index
    %8 = vector.load %arg4[%c0_3, %c0_4] : memref<1x256xf32, #tpu.memory_space<vmem>>, vector<1x256xf32>
    %9 = vector.broadcast %8 : vector<1x256xf32> to vector<256x256xf32>
    %10 = arith.mulf %7, %9 : vector<256x256xf32>
    %11 = arith.truncf %10 : vector<256x256xf32> to vector<256x256xbf16>
    %c0_5 = arith.constant 0 : index
    %c0_6 = arith.constant 0 : index
    %12 = vector.load %arg5[%c0_5, %c0_6] : memref<256x128xbf16, #tpu.memory_space<vmem>>, vector<256x128xbf16>
    %cst_7 = arith.constant dense<0.000000e+00> : vector<256x128xf32>
    %13 = tpu.matmul %11, %12, %cst_7 {dimension_numbers = #tpu.dot_dimension_numbers<[1], [0], [0], [1], [0, 0, 1, 1], [], []>} : vector<256x256xbf16>, vector<256x128xbf16>, vector<256x128xf32> -> vector<256x128xf32>
    %c0_8 = arith.constant 0 : index
    %c0_9 = arith.constant 0 : index
    %14 = vector.load %arg6[%c0_8, %c0_9] : memref<1x128xf32, #tpu.memory_space<vmem>>, vector<1x128xf32>
    %15 = vector.broadcast %14 : vector<1x128xf32> to vector<256x128xf32>
    %16 = arith.addf %13, %15 : vector<256x128xf32>
    %cst_10 = arith.constant 0.000000e+00 : f32
    %17 = vector.broadcast %cst_10 : f32 to vector<256x128xf32>
    %18 = arith.maximumf %16, %17 : vector<256x128xf32>
    %19 = arith.truncf %18 : vector<256x128xf32> to vector<256x128xbf16>
    %c0_11 = arith.constant 0 : index
    %c0_12 = arith.constant 0 : index
    %20 = vector.load %arg7[%c0_11, %c0_12] : memref<128x256xbf16, #tpu.memory_space<vmem>>, vector<128x256xbf16>
    %cst_13 = arith.constant dense<0.000000e+00> : vector<256x256xf32>
    %21 = tpu.matmul %19, %20, %cst_13 {dimension_numbers = #tpu.dot_dimension_numbers<[1], [0], [0], [1], [0, 0, 1, 1], [], []>} : vector<256x128xbf16>, vector<128x256xbf16>, vector<256x256xf32> -> vector<256x256xf32>
    %c0_14 = arith.constant 0 : index
    %c0_15 = arith.constant 0 : index
    %22 = vector.load %arg8[%c0_14, %c0_15] : memref<1x256xf32, #tpu.memory_space<vmem>>, vector<1x256xf32>
    %23 = vector.broadcast %22 : vector<1x256xf32> to vector<256x256xf32>
    %24 = arith.addf %21, %23 : vector<256x256xf32>
    %25 = tpu.iota {dimensions = array<i32: 1>} : vector<256x256xi32>
    %c128_i32 = arith.constant 128 : i32
    %26 = vector.broadcast %c128_i32 : i32 to vector<256x256xi32>
    %27 = arith.cmpi slt, %25, %26 : vector<256x256xi32>
    %28 = math.exp %24 : vector<256x256xf32>
    %cst_16 = arith.constant 9.99999974E-5 : f32
    %29 = vector.broadcast %cst_16 : f32 to vector<256x256xf32>
    %30 = arith.addf %28, %29 : vector<256x256xf32>
    %31 = arith.select %27, %24, %30 : vector<256x256xi1>, vector<256x256xf32>
    %c0_17 = arith.constant 0 : index
    %c0_18 = arith.constant 0 : index
    %32 = vector.load %arg15[%c0_17, %c0_18] : memref<256x256xf32, #tpu.memory_space<vmem>>, vector<256x256xf32>
    tpu.vector_store %arg15[%c0_17, %c0_18], %31 {strides = array<i32>} : memref<256x256xf32, #tpu.memory_space<vmem>>, vector<256x256xf32>,
    %33 = vector.extract_strided_slice %31 {offsets = [0, 0], sizes = [256, 128], strides = [1, 1]} : vector<256x256xf32> to vector<256x128xf32>
    %34 = vector.extract_strided_slice %31 {offsets = [0, 128], sizes = [256, 128], strides = [1, 1]} : vector<256x256xf32> to vector<256x128xf32>
    %35 = math.sqrt %34 : vector<256x128xf32>
    %c0_19 = arith.constant 0 : index
    %c0_20 = arith.constant 0 : index
    %36 = vector.load %arg2[%c0_19, %c0_20] : memref<256x128xf32, #tpu.memory_space<vmem>>, vector<256x128xf32>
    %37 = arith.mulf %35, %36 : vector<256x128xf32>
    %38 = arith.addf %33, %37 : vector<256x128xf32>
    %39 = arith.truncf %38 : vector<256x128xf32> to vector<256x128xbf16>
    %c0_21 = arith.constant 0 : index
    %c0_22 = arith.constant 0 : index
    %40 = vector.load %arg9[%c0_21, %c0_22] : memref<128x128xbf16, #tpu.memory_space<vmem>>, vector<128x128xbf16>
    %cst_23 = arith.constant dense<0.000000e+00> : vector<256x128xf32>
    %41 = tpu.matmul %39, %40, %cst_23 {dimension_numbers = #tpu.dot_dimension_numbers<[1], [0], [0], [1], [0, 0, 1, 1], [], []>} : vector<256x128xbf16>, vector<128x128xbf16>, vector<256x128xf32> -> vector<256x128xf32>
    %c0_24 = arith.constant 0 : index
    %c0_25 = arith.constant 0 : index
    %42 = vector.load %arg10[%c0_24, %c0_25] : memref<1x128xf32, #tpu.memory_space<vmem>>, vector<1x128xf32>
    %43 = vector.broadcast %42 : vector<1x128xf32> to vector<256x128xf32>
    %44 = arith.addf %41, %43 : vector<256x128xf32>
    %cst_26 = arith.constant 0.000000e+00 : f32
    %45 = vector.broadcast %cst_26 : f32 to vector<256x128xf32>
    %46 = arith.maximumf %44, %45 : vector<256x128xf32>
    %47 = arith.truncf %46 : vector<256x128xf32> to vector<256x128xbf16>
    %c0_27 = arith.constant 0 : index
    %c0_28 = arith.constant 0 : index
    %48 = vector.load %arg11[%c0_27, %c0_28] : memref<128x512xbf16, #tpu.memory_space<vmem>>, vector<128x512xbf16>
    %cst_29 = arith.constant dense<0.000000e+00> : vector<256x512xf32>
    %49 = tpu.matmul %47, %48, %cst_29 {dimension_numbers = #tpu.dot_dimension_numbers<[1], [0], [0], [1], [0, 0, 1, 1], [], []>} : vector<256x128xbf16>, vector<128x512xbf16>, vector<256x512xf32> -> vector<256x512xf32>
    %c0_30 = arith.constant 0 : index
    %c0_31 = arith.constant 0 : index
    %50 = vector.load %arg12[%c0_30, %c0_31] : memref<1x512xf32, #tpu.memory_space<vmem>>, vector<1x512xf32>
    %51 = vector.broadcast %50 : vector<1x512xf32> to vector<256x512xf32>
    %52 = arith.addf %49, %51 : vector<256x512xf32>
    %53 = vector.extract_strided_slice %52 {offsets = [0, 0], sizes = [256, 256], strides = [1, 1]} : vector<256x512xf32> to vector<256x256xf32>
    %54 = vector.extract_strided_slice %52 {offsets = [0, 256], sizes = [256, 256], strides = [1, 1]} : vector<256x512xf32> to vector<256x256xf32>
    %cst_32 = arith.constant dense<0xFF800000> : vector<256xf32>
    %55 = vector.multi_reduction <maximumf>, %53, %cst_32 [1] : vector<256x256xf32> to vector<256xf32>
    %56 = vector.shape_cast %55 : vector<256xf32> to vector<256x1xf32>
    %57 = vector.broadcast %56 : vector<256x1xf32> to vector<256x256xf32>
    %58 = arith.subf %53, %57 : vector<256x256xf32>
    %59 = math.exp %58 : vector<256x256xf32>
    %cst_33 = arith.constant dense<0.000000e+00> : vector<256xf32>
    %60 = vector.multi_reduction <add>, %59, %cst_33 [1] : vector<256x256xf32> to vector<256xf32>
    %61 = vector.shape_cast %60 : vector<256xf32> to vector<256x1xf32>
    %62 = tpu.reciprocal %61 {approx = true} : vector<256x1xf32> -> vector<256x1xf32>
    %63 = vector.broadcast %62 : vector<256x1xf32> to vector<256x256xf32>
    %64 = arith.mulf %59, %63 : vector<256x256xf32>
    %65 = vector.broadcast %3 : vector<256x1xf32> to vector<256x256xf32>
    %66 = arith.mulf %65, %64 : vector<256x256xf32>
    %67 = arith.truncf %66 : vector<256x256xf32> to vector<256x256xbf16>
    %c0_34 = arith.constant 0 : index
    %c0_35 = arith.constant 0 : index
    %68 = vector.load %arg13[%c0_34, %c0_35] : memref<256x256xbf16, #tpu.memory_space<vmem>>, vector<256x256xbf16>
    tpu.vector_store %arg13[%c0_34, %c0_35], %67 {strides = array<i32>} : memref<256x256xbf16, #tpu.memory_space<vmem>>, vector<256x256xbf16>,
    %cst_36 = arith.constant -1.500000e+01 : f32
    %cst_37 = arith.constant 1.500000e+01 : f32
    %69 = vector.broadcast %cst_36 : f32 to vector<256x256xf32>
    %70 = arith.maximumf %69, %54 : vector<256x256xf32>
    %71 = vector.broadcast %cst_37 : f32 to vector<256x256xf32>
    %72 = arith.minimumf %71, %70 : vector<256x256xf32>
    %73 = math.exp %72 : vector<256x256xf32>
    %74 = arith.truncf %73 : vector<256x256xf32> to vector<256x256xbf16>
    %c0_38 = arith.constant 0 : index
    %c0_39 = arith.constant 0 : index
    %75 = vector.load %arg14[%c0_38, %c0_39] : memref<256x256xbf16, #tpu.memory_space<vmem>>, vector<256x256xbf16>
    tpu.vector_store %arg14[%c0_38, %c0_39], %74 {strides = array<i32>} : memref<256x256xbf16, #tpu.memory_space<vmem>>, vector<256x256xbf16>,
    return
  }
  func.func @transform_0(%arg0: i32) -> (i32, i32) {
    %c0_i32 = arith.constant 0 : i32
    %c0_i32_0 = arith.constant 0 : i32
    return %arg0, %c0_i32 : i32, i32
  }
  func.func @transform_1(%arg0: i32) -> (i32, i32) {
    %c0_i32 = arith.constant 0 : i32
    %c0_i32_0 = arith.constant 0 : i32
    return %arg0, %c0_i32 : i32, i32
  }
  func.func @transform_2(%arg0: i32) -> (i32, i32) {
    %c0_i32 = arith.constant 0 : i32
    %c0_i32_0 = arith.constant 0 : i32
    %c0_i32_1 = arith.constant 0 : i32
    return %c0_i32, %c0_i32_0 : i32, i32
  }
  func.func @transform_3(%arg0: i32) -> (i32, i32) {
    %c0_i32 = arith.constant 0 : i32
    %c0_i32_0 = arith.constant 0 : i32
    %c0_i32_1 = arith.constant 0 : i32
    return %c0_i32, %c0_i32_0 : i32, i32
  }
  func.func @transform_4(%arg0: i32) -> (i32, i32) {
    %c0_i32 = arith.constant 0 : i32
    %c0_i32_0 = arith.constant 0 : i32
    %c0_i32_1 = arith.constant 0 : i32
    return %c0_i32, %c0_i32_0 : i32, i32
  }
  func.func @transform_5(%arg0: i32) -> (i32, i32) {
    %c0_i32 = arith.constant 0 : i32
    %c0_i32_0 = arith.constant 0 : i32
    %c0_i32_1 = arith.constant 0 : i32
    return %c0_i32, %c0_i32_0 : i32, i32
  }
  func.func @transform_6(%arg0: i32) -> (i32, i32) {
    %c0_i32 = arith.constant 0 : i32
    %c0_i32_0 = arith.constant 0 : i32
    %c0_i32_1 = arith.constant 0 : i32
    return %c0_i32, %c0_i32_0 : i32, i32
  }
  func.func @transform_7(%arg0: i32) -> (i32, i32) {
    %c0_i32 = arith.constant 0 : i32
    %c0_i32_0 = arith.constant 0 : i32
    %c0_i32_1 = arith.constant 0 : i32
    return %c0_i32, %c0_i32_0 : i32, i32
  }
  func.func @transform_8(%arg0: i32) -> (i32, i32) {
    %c0_i32 = arith.constant 0 : i32
    %c0_i32_0 = arith.constant 0 : i32
    %c0_i32_1 = arith.constant 0 : i32
    return %c0_i32, %c0_i32_0 : i32, i32
  }
  func.func @transform_9(%arg0: i32) -> (i32, i32) {
    %c0_i32 = arith.constant 0 : i32
    %c0_i32_0 = arith.constant 0 : i32
    %c0_i32_1 = arith.constant 0 : i32
    return %c0_i32, %c0_i32_0 : i32, i32
  }
  func.func @transform_10(%arg0: i32) -> (i32, i32) {
    %c0_i32 = arith.constant 0 : i32
    %c0_i32_0 = arith.constant 0 : i32
    %c0_i32_1 = arith.constant 0 : i32
    return %c0_i32, %c0_i32_0 : i32, i32
  }
  func.func @transform_11(%arg0: i32) -> (i32, i32) {
    %c0_i32 = arith.constant 0 : i32
    %c0_i32_0 = arith.constant 0 : i32
    %c0_i32_1 = arith.constant 0 : i32
    return %c0_i32, %c0_i32_0 : i32, i32
  }
  func.func @transform_12(%arg0: i32) -> (i32, i32) {
    %c0_i32 = arith.constant 0 : i32
    %c0_i32_0 = arith.constant 0 : i32
    return %arg0, %c0_i32 : i32, i32
  }
  func.func @transform_13(%arg0: i32) -> (i32, i32) {
    %c0_i32 = arith.constant 0 : i32
    %c0_i32_0 = arith.constant 0 : i32
    return %arg0, %c0_i32 : i32, i32
  }
  func.func @transform_14(%arg0: i32) -> (i32, i32) {
    %c0_i32 = arith.constant 0 : i32
    %c0_i32_0 = arith.constant 0 : i32
    return %arg0, %c0_i32 : i32, i32
  }
}

</mosaic_0001>

<bundles_post_ra>
// kernel: tpu_custom_call.1
= control target key start
LH: loop header
LB: loop body
LE: loop exit
PB: predicated region body
PF: predicated region fallthrough
CT: control target
= control target key end

     0   :  { %s9844_s0 = inlined_call_operand.hbm [shape: bf16[512,256], index: 0, kind: input, shape index: {}]   ;;  %s9845_s1 = inlined_call_operand.hbm [shape: f32[512,128], index: 1, kind: input, shape index: {}]   ;;  %s9846_s2 = inlined_call_operand.vmem [shape: f32[1,256], index: 2, kind: input, shape index: {}]   ;;  %s9847_s3 = inlined_call_operand.hbm [shape: f32[1,256], index: 3, kind: input, shape index: {}]   ;;  %s9848_s4 = inlined_call_operand.hbm [shape: bf16[256,128], index: 4, kind: input, shape index: {}]   ;;  %s9849_s5 = inlined_call_operand.vmem [shape: f32[1,128], index: 5, kind: input, shape index: {}]   ;;  %s9850_s6 = inlined_call_operand.hbm [shape: bf16[128,256], index: 6, kind: input, shape index: {}]   ;;  %s9851_s7 = inlined_call_operand.vmem [shape: f32[1,256], index: 7, kind: input, shape index: {}]   ;;  %s9852_s8 = inlined_call_operand.hbm [shape: bf16[128,128], index: 8, kind: input, shape index: {}]   ;;  %s9853_s9 = inlined_call_operand.vmem [shape: f32[1,128], index: 9, kind: input, shape index: {}]   ;;  %s9854_s10 = inlined_call_operand.hbm [shape: bf16[128,512], index: 10, kind: input, shape index: {}]   ;;  %s9855_s11 = inlined_call_operand.vmem [shape: f32[1,512], index: 11, kind: input, shape index: {}]   ;;  %s9856_s12 = inlined_call_operand.hbm [shape: bf16[512,256], index: 12, kind: output, shape index: {0}]   ;;  %s9857_s13 = inlined_call_operand.hbm [shape: bf16[512,256], index: 13, kind: output, shape index: {1}]   ;;  %s9858_s14 = inlined_call_operand.hbm [shape: f32[512,256], index: 14, kind: output, shape index: {2}]  }
   0x1   :  { %9979 = sst [smem:[#allocation103_spill]] %s9844_s0 }
   0x2   :  { %9980 = sst [smem:[#allocation104_spill]] %s9847_s3 }
   0x3   :  { %9981 = sst [smem:[#allocation105_spill]] %s9848_s4 }
   0x4   :  { %9982 = sst [smem:[#allocation106_spill]] %s9850_s6 }
   0x5   :  { %9983 = sst [smem:[#allocation107_spill]] %s9852_s8 }
   0x6   :  { %9984 = sst [smem:[#allocation108_spill]] %s9854_s10 }
   0x7   :  { %9985 = sst [smem:[#allocation109_spill]] %s9856_s12 }
   0x8   :  { %9986 = sst [smem:[#allocation110_spill]] %s9858_s14 }
   0x9   :  { %20 = vsyncpa [#allocation3], 0 }
   0xa   :  { %22 = vsyncpa [#allocation3 + $0x1], 0 }
   0xb   :  { %23 = vsyncpa [#allocation6], 0 }
   0xc   :  { %25 = vsyncpa [#allocation6 + $0x1], 0 }
   0xd   :  { %26 = vsyncpa [#allocation9], 0 }
   0xe   :  { %27 = vsyncpa [#allocation12], 0 }
   0xf   :  { %28 = vsyncpa [#allocation4], 0 }
  0x10   :  { %30 = vsyncpa [#allocation4 + $0x1], 0 }
  0x11   :  { %31 = vsyncpa [#allocation16], 0 }
  0x12   :  { %33 = vsyncpa [#allocation16 + $0x1], 0  ;;  %s7000_s29 = smov 0   ;;  %s7002_s30 = smov 0  }
  0x13   :  { %s7004_s15 = smov 0   ;;  %s7006_s16 = smov 0  }
  0x14 LB: > { %9987 = sst [smem:[#allocation25_spill]] %s6890_s29  ;;  %s6904_s17 = smov [#allocation7]   ;;  %s6902_s16 = sphi %s7006_s16, %s10351_s16   ;;  %s6898_s15 = sphi %s7004_s15, %s10353_s15   ;;  %s6894_s30 = sphi %s7002_s30, %s10355_s30   ;;  %s6890_s29 = sphi %s7000_s29, %s10354_s29  }
  0x15   : > { %9988 = sst [smem:[#allocation26_spill]] %s6898_s15  ;;  %s400_s18 = sshll.u32 %s6904_s17, 4  ;;  %s401_s18 = int_to_ptr.vmem [resolvable:$true] %s400_s18 }
  0x16   : > { %s7021_s19 = sadd.s32 4294967295, %s6902_s16   ;;  %p5271_p0 = scmp.ge.s32.totalorder %s6902_s16, 1 }
  0x17   : > { %p9870_p1 = scmp.eq.s32.totalorder %s7021_s19, 0  ;;  %p384_p2 = scmp.lt.s32.totalorder %s6902_s16, 3 }
  0x18   : > { %s6905_s21 = smov [#allocation8]   ;;  %s6906_s24 = smov [#allocation11]  }
  0x19   : > { %p7026_p3 = pnand %p5271_p0, %p384_p2  ;;  %s410_s22 = sshll.u32 %s6905_s21, 4  ;;  %s7033_s22 = int_to_ptr.vmem [resolvable:$true] %s410_s22 }
  0x1a   : > { %s442_s25 = sshll.u32 %s6906_s24, 4  ;;  %s6591_s27 = scalar_lea.vmem %s401_s18, 32  ;;  %s7041_s25 = int_to_ptr.vmem [resolvable:$true] %s442_s25 }
  0x1b   : > { %p5815_p5 = pneg %p7026_p3  ;;  %p6592_p8 = scmp.ne.s32.totalorder %s401_s18, %s6591_s27 }
  0x1c   : > { %p6599_p11 = scmp.lt.s32.totalorder %s401_s18, %s401_s18  ;;  %p6600_p12 = scmp.lt.s32.totalorder %s6591_s27, %s6591_s27 }
  0x1d   : > { %p7037_p6 = pnand %p5815_p5, %p9870_p1 }
  0x1e   : > { %p6601_p13 = por %p6600_p12, %p6599_p11 }
  0x1f   : > { %p7045_p7 = pneg %p7037_p6 }
  0x21   : > { %p6594_p9 = pnand %p6592_p8, %p7045_p7 }
  0x23   : > { %p6595_p10 = pneg %p6594_p9 }
  0x25   : > { %p6602_p0 = pnand %p6601_p13, %p6595_p10 }
  0x27   : > { %6605 = shalt.err (!%p6602_p0)
}
  0x28   : > { %s9992_s3 = sld [smem:[#allocation104_spill]]  ;;  %s6617_s21 = scalar_lea.vmem %s7033_s22, 2048 }
  0x29   : > { %p6618_p2 = scmp.ne.s32.totalorder %s7033_s22, %s6617_s21  ;;  %p6625_p9 = scmp.lt.s32.totalorder %s7033_s22, %s7033_s22 }
  0x2a   : > { %p6626_p11 = scmp.lt.s32.totalorder %s6617_s21, %s6617_s21 }
  0x2b   : > { %p6620_p5 = pnand %p6618_p2, %p7045_p7 }
  0x2c   : > { %p6627_p10 = por %p6626_p11, %p6625_p9 }
  0x2d   : > { %p6621_p8 = pneg %p6620_p5 }
  0x2e   : > { %5818 = dma.hbm_to_vmem [thread:$0]  (!%p7037_p6), %s9992_s3, 32, %s401_s18, [#allocation6]  }
  0x2f   : > { %p6628_p12 = pnand %p6627_p10, %p6621_p8 }
  0x31   : > { %6631 = shalt.err (!%p6628_p12)
}
  0x32   : > { %s6907_s24 = smov 64   ;;  %s6908_s27 = smov 4  }
  0x33   : > { %s9993_s4 = sld [smem:[#allocation105_spill]]  ;;  %s6643_s17 = scalar_lea.vmem %s7041_s25, 1024 }
  0x34   : > { %p6644_p13 = scmp.ne.s32.totalorder %s7041_s25, %s6643_s17  ;;  %p6651_p5 = scmp.lt.s32.totalorder %s7041_s25, %s7041_s25 }
  0x35   : > { %p6652_p8 = scmp.lt.s32.totalorder %s6643_s17, %s6643_s17 }
  0x36   : > { %p6646_p0 = pnand %p6644_p13, %p7045_p7 }
  0x37   : > { %p6653_p9 = por %p6652_p8, %p6651_p5 }
  0x38   : > { %p6647_p2 = pneg %p6646_p0 }
  0x39   : > { %5821 = dma.hbm_to_vmem [thread:$0]  (!%p7037_p6), %s9993_s4, 2048, %s7033_s22, [#allocation9], %s6907_s24, %s6907_s24, %s6908_s27  }
  0x3a   : > { %p6654_p11 = pnand %p6653_p9, %p6647_p2 }
  0x3c   : > { %6657 = shalt.err (!%p6654_p11)
}
  0x3d   : > { %s9994_s8 = sld [smem:[#allocation107_spill]]  ;;  %s6909_s22 = smov [#allocation10]  }
  0x3e   : > { %s426_s18 = sshll.u32 %s6909_s22, 4  ;;  %s427_s18 = int_to_ptr.vmem [resolvable:$true] %s426_s18 }
  0x3f   : > { %s6669_s28 = scalar_lea.vmem %s427_s18, 2048  ;;  %p6677_p0 = scmp.lt.s32.totalorder %s427_s18, %s427_s18 }
  0x40   : > { %p6670_p10 = scmp.ne.s32.totalorder %s427_s18, %s6669_s28  ;;  %p6678_p5 = scmp.lt.s32.totalorder %s6669_s28, %s6669_s28 }
  0x42   : > { %p6672_p12 = pnand %p6670_p10, %p7045_p7  ;;  %p6679_p2 = por %p6678_p5, %p6677_p0 }
  0x43   : > { %5827 = dma.hbm_to_vmem [thread:$0]  (!%p7037_p6), %s9994_s8, 1024, %s7041_s25, [#allocation12], %s6907_s24, %s6907_s24, %s6908_s27  }
  0x44   : > { %p6673_p13 = pneg %p6672_p12 }
  0x46   : > { %p6680_p8 = pnand %p6679_p2, %p6673_p13 }
  0x48   : > { %6683 = shalt.err (!%p6680_p8)
}
  0x49   : > { %s9859_s17 = smov 128   ;;  %s9861_s4 = smov 8  }
  0x4a   : > { %s9995_s6 = sld [smem:[#allocation106_spill]]  ;;  %s6912_s24 = smov [#allocation13]  }
  0x4b   : > { %s458_s27 = sshll.u32 %s6912_s24, 4  ;;  %s459_s27 = int_to_ptr.vmem [resolvable:$true] %s458_s27 }
  0x4c   : > { %s6695_s21 = scalar_lea.vmem %s459_s27, 4096  ;;  %p6703_p12 = scmp.lt.s32.totalorder %s459_s27, %s459_s27 }
  0x4d   : > { %p6696_p9 = scmp.ne.s32.totalorder %s459_s27, %s6695_s21  ;;  %p6704_p13 = scmp.lt.s32.totalorder %s6695_s21, %s6695_s21 }
  0x4f   : > { %p6698_p11 = pnand %p6696_p9, %p7045_p7  ;;  %p6705_p0 = por %p6704_p13, %p6703_p12 }
  0x50   : > { %5824 = dma.hbm_to_vmem [thread:$0]  (!%p7037_p6), %s9995_s6, 2048, %s427_s18, [#allocation9], %s9859_s17, %s9859_s17, %s9861_s4  }
  0x51   : > { %p6699_p10 = pneg %p6698_p11 }
  0x53   : > { %p6706_p5 = pnand %p6705_p0, %p6699_p10 }
  0x55   : > { %6709 = shalt.err (!%p6706_p5)
}
  0x56   : > { %s6913_s22 = smov 256   ;;  %s6914_s26 = smov 16  }
  0x57   : > { %s9996_s10 = sld [smem:[#allocation108_spill]]  ;;  %s9863_s3 = sadd.s32 4294967294, %s6902_s16  }
  0x58   : > { %s7099_s25 = sadd.s32 1, %s6902_s16   ;;  %s46_s24 = sadd.s32 1, %s6898_s15 }
  0x59   : > { %9997 = sst [smem:[#allocation27_spill]] %s7099_s25  ;;  %s43_s21 = ssub.s32 %s6902_s16, %s7099_s25 }
  0x5a   : > { %p53_p7 = scmp.ne.s32.totalorder %s6898_s15, %s6894_s30  ;;  %p44_p2 = scmp.eq.s32.totalorder %s43_s21, 0 }
  0x5b   : > { %p54_p8 = scmp.eq.s32.totalorder %s6902_s16, 0  ;;  %p59_p9 = scmp.ne.s32.totalorder %s6894_s30, %s6890_s29 }
  0x5c   : > { %p319_p11 = scmp.eq.s32.totalorder %s7021_s19, 1  ;;  %p325_p13 = scmp.eq.s32.totalorder %s9863_s3, 1 }
  0x5d   : > { %5830 = dma.hbm_to_vmem [thread:$0]  (!%p7037_p6), %s9996_s10, 4096, %s459_s27, [#allocation12], %s6913_s22, %s6913_s22, %s6914_s26  }
  0x5e   : > { %s7111_s17 = scalar_select %p44_p2, %s6898_s15, %s46_s24  }
  0x5f   : > { %p55_p10 = por %p54_p8, %p53_p7  ;;  %p7115_p12 = por %p9870_p1, %p59_p9 }
  0x60   : > { %9998 = sst [smem:[#allocation28_spill]] %s7111_s17  ;;  %p7119_p6 = por %p319_p11, %p53_p7 }
  0x61   : > { %s9999_s23 = scalar_select %p7115_p12, 1, 0 }
  0x62   : > { %s10000_s27 = scalar_select %p7119_p6, 1, 0 }
  0x63   : > { %p5853_p0 = scmp.lt.s32.totalorder %s6902_s16, 2  ;;  %s475_s22 = sand.u32 1, %s6898_s15  }
  0x64   : > { %p7127_p5 = por %p325_p13, %p59_p9  ;;  %s7131_s18 = sshll.u32 %s475_s22, 8 }
  0x65   : > { %s5513_s28 = sshll.u32 %s6902_s16, 12  ;;  %s10003_s0 = sld [smem:[#allocation103_spill]] }
  0x66   : > { %s10001_s26 = scalar_select %p7127_p5, 1, 0 }
  0x67   : > { %s479_s6 = scalar_lea.vmem [#allocation2], %s7131_s18  ;;  %p7140_p7 = pnand %p5853_p0, %p55_p10 }
  0x68   : > { %10002 = sst [smem:[#allocation29_spill]] %s10001_s26  ;;  %s487_s3 = sshll.u32 %s479_s6, 4  ;;  %s7144_s3 = int_to_ptr.vmem [resolvable:$true] %s487_s3 }
  0x69   : > { %s7149_s15 = scalar_lea.hbm %s9845_s1, %s5513_s28  ;;  %s7151_s24 = scalar_lea.sflag [#allocation3], %s475_s22 }
  0x6a   : > { %p6712_p8 = pneg %p7140_p7 }
  0x6b   : > { %s7137_s4 = scalar_lea.hbm %s10003_s0, %s5513_s28  ;;  %s6715_s26 = scalar_lea.hbm %s10003_s0, 8192 }
  0x6c   : > { %s6710_s21 = scalar_lea.hbm %s7137_s4, 4096  ;;  %p6716_p10 = scmp.lt.s32.totalorder %s7137_s4, %s10003_s0 }
  0x6d   : > { %p6711_p2 = scmp.ne.s32.totalorder %s7137_s4, %s6710_s21  ;;  %p6717_p13 = scmp.lt.s32.totalorder %s6715_s26, %s6710_s21 }
  0x6f   : > { %p6713_p9 = pnand %p6712_p8, %p6711_p2  ;;  %p6718_p0 = por %p6717_p13, %p6716_p10 }
  0x71   : > { %p6714_p11 = pneg %p6713_p9 }
  0x73   : > { %p6719_p4 = pnand %p6718_p0, %p6714_p11 }
  0x75   : > { %6722 = shalt.err (!%p6719_p4)
}
  0x76   : > { %s6723_s10 = scalar_lea.vmem %s7144_s3, 4096  ;;  %s6915_s17 = smov [#allocation2]  }
  0x77   : > { %p6724_p1 = scmp.ne.s32.totalorder %s7144_s3, %s6723_s10  ;;  %s6728_s25 = sshll.u32 %s6915_s17, 4  ;;  %s6729_s25 = int_to_ptr.vmem [resolvable:$false] %s6728_s25 }
  0x78   : > { %s6730_s22 = scalar_lea.vmem %s6729_s25, 8192  ;;  %p6731_p5 = scmp.lt.s32.totalorder %s7144_s3, %s6729_s25 }
  0x79   : > { %p6726_p2 = pnand %p6724_p1, %p6712_p8  ;;  %p6732_p6 = scmp.lt.s32.totalorder %s6730_s22, %s6723_s10 }
  0x7b   : > { %p6727_p9 = pneg %p6726_p2  ;;  %p6733_p12 = por %p6732_p6, %p6731_p5 }
  0x7d   : > { %p6734_p10 = pnand %p6733_p12, %p6727_p9 }
  0x7f   : > { %6737 = shalt.err (!%p6734_p10)
}
  0x80   : > { %s10005_s12 = smov 8   ;;  %s10006_s29 = smov 128  }
  0x81   : > { %5834 = dma.hbm_to_vmem [thread:$0]  (!%p7140_p7), %s7137_s4, 4096, %s7144_s3, %s7151_s24, %s10006_s29, %s10006_s29, %s10005_s12  }
  0x82   : > { %s501_s26 = scalar_lea.vmem [#allocation5], %s7131_s18  ;;  %s497_s21 = sand.u32 1, %s6902_s16  }
  0x83   : > { %s508_s28 = sshll.u32 %s501_s26, 4  ;;  %s498_s6 = scalar_lea.sflag [#allocation6], %s497_s21  ;;  %s7183_s28 = int_to_ptr.vmem [resolvable:$true] %s508_s28 }
  0x84   : > { %s6738_s10 = scalar_lea.hbm %s7149_s15, 4096  ;;  %s6743_s22 = scalar_lea.hbm %s9845_s1, 8192 }
  0x85   : > { %p6739_p1 = scmp.ne.s32.totalorder %s7149_s15, %s6738_s10  ;;  %p6744_p6 = scmp.lt.s32.totalorder %s7149_s15, %s9845_s1 }
  0x86   : > { %p6745_p5 = scmp.lt.s32.totalorder %s6743_s22, %s6738_s10 }
  0x87   : > { %p6741_p4 = pnand %p6739_p1, %p6712_p8 }
  0x88   : > { %p6746_p11 = por %p6745_p5, %p6744_p6 }
  0x89   : > { %p6742_p12 = pneg %p6741_p4 }
  0x8b   : > { %p6747_p13 = pnand %p6746_p11, %p6742_p12 }
  0x8d   : > { %6750 = shalt.err (!%p6747_p13)
}
  0x8e   : > { %s6751_s4 = scalar_lea.vmem %s7183_s28, 4096  ;;  %s6916_s3 = smov [#allocation5]  }
  0x8f   : > { %p6752_p0 = scmp.ne.s32.totalorder %s7183_s28, %s6751_s4  ;;  %s6756_s18 = sshll.u32 %s6916_s3, 4  ;;  %s6757_s18 = int_to_ptr.vmem [resolvable:$false] %s6756_s18 }
  0x90   : > { %s6758_s24 = scalar_lea.vmem %s6757_s18, 8192  ;;  %p6759_p10 = scmp.lt.s32.totalorder %s7183_s28, %s6757_s18 }
  0x91   : > { %p6754_p2 = pnand %p6752_p0, %p6712_p8  ;;  %p6760_p1 = scmp.lt.s32.totalorder %s6758_s24, %s6751_s4 }
  0x93   : > { %p6755_p9 = pneg %p6754_p2  ;;  %p6761_p4 = por %p6760_p1, %p6759_p10 }
  0x95   : > { %p6762_p6 = pnand %p6761_p4, %p6755_p9 }
  0x97   : > { %6765 = shalt.err (!%p6762_p6)
}
  0x98   : > { %5837 = dma.hbm_to_vmem [thread:$0]  (!%p7140_p7), %s7149_s15, 4096, %s7183_s28, %s498_s6, %s10006_s29, %s10006_s29, %s10005_s12  }
  0x99   : > { %520 = sbr.rel (%p7026_p3) target bundleno = 1588 (0x634), region = 68 }
  0x9e   : > { %s7213_s0 = sand.u32 1, %s6894_s30   ;;  %p10007_p8 = scmp.ne.s32.totalorder %s9999_s23, 0 }
  0x9f   : > { %s7216_s14 = sshll.u32 %s7213_s0, 8  ;;  %s523_s26 = scalar_lea.sflag [#allocation3], %s7213_s0 }
  0xa0   : > { %s7220_s8 = scalar_lea.vmem [#allocation2], %s7216_s14 }
  0xa1   : > { %6861 = dma.done.wait (%p10007_p8), %s523_s26, 4096  }
  0xa2   : > { %6863 = vsyncadd (%p10007_p8), %s523_s26, 4294963200  ;;  %s531_s15 = sand.u32 1, %s7021_s19   ;;  %s7230_s12 = scalar_lea.vmem [#allocation5], %s7216_s14 }
  0xa3   : > { %s532_s20 = scalar_lea.sflag [#allocation6], %s531_s15 }
  0xa4   : > { %6865 = dma.done.wait (%p10007_p8), %s532_s20, 4096  }
  0xa5   : > { %6867 = vsyncadd (%p10007_p8), %s532_s20, 4294963200  ;;  %p10008_p3 = scmp.eq.s32.totalorder %s7021_s19, 0 }
  0xa7   : > { %6869 = dma.done.wait (%p10008_p3), [#allocation6], 32   ;;  %p10009_p7 = pmov %p10008_p3 }
  0xa8   : > { %p10010_p12 = pmov %p10008_p3 }
  0xa9   : > { %6871 = vsyncadd (%p10009_p7), [#allocation6], 4294967264 }
  0xaa   : > { %6873 = dma.done.wait (%p10010_p12), [#allocation9], 4096   ;;  %p10011_p5 = pmov %p10008_p3 }
  0xab   : > { %p10012_p11 = pmov %p10008_p3 }
  0xac   : > { %6875 = vsyncadd (%p10011_p5), [#allocation9], 4294963200 }
  0xad   : > { %6877 = dma.done.wait (%p10012_p11), [#allocation12], 5120   ;;  %p10013_p13 = pmov %p10008_p3 }
  0xae   : > { %v5908_v0 = vld [vmem:[#allocation8 + $0x78] sm:$0xff]   ;;  %v5910_v2 = vld [vmem:[#allocation8 + $0x70] sm:$0xff]   ;;  %v5912_v4 = vld [vmem:[#allocation8 + $0x68] sm:$0xff]   ;;  %v1391_v7 = vlaneseq  ;;  %s5295_s17 = sshll.u32 %s7213_s0, 9  ;;  %s8912_s24 = scalar_lea.vmem [#allocation15], %s7216_s14 }
  0xaf   : > { %6879 = vsyncadd (%p10013_p13), [#allocation12], 4294962176  ;;  %v5909_v1 = vld [vmem:[#allocation8 + $0x38] sm:$0xff]   ;;  %5585 = vmatprep.subr.bf16.mxu0 %v5908_v0  ;;  %5769 = vmatprep.subr.bf16.mxu1 %v5908_v0  ;;  %v5911_v3 = vld [vmem:[#allocation8 + $0x30] sm:$0xff]   ;;  %s8256_s25 = scalar_lea.vmem [#allocation17], %s5295_s17  ;;  %s9585_s26 = scalar_lea.vmem [#allocation14], %s7216_s14 }
  0xb0   : > { %5586 = vmatpush3.bf16.msra.mxu0 %v5909_v1  ;;  %5777 = vmatpush3.bf16.msra.mxu1 %v5909_v1  ;;  %v5913_v5 = vld [vmem:[#allocation8 + $0x28] sm:$0xff]   ;;  %v5914_v6 = vld [vmem:[#allocation8 + $0x60] sm:$0xff]   ;;  %v5916_v9 = vld [vmem:[#allocation8 + $0x58] sm:$0xff]   ;;  %v7248_v10 = vshrl.u32 %v1391_v7, 7  ;;  %s5580_s14 = sshll.u32 %s7021_s19, 12  ;;  %s5049_s23 = sshll.u32 %s8912_s24, 4  ;;  %s9611_s23 = int_to_ptr.vmem [resolvable:$true] %s5049_s23 }
  0xb1   : > { %5587 = vmatprep.subr.bf16.mxu0 %v5910_v2  ;;  %5770 = vmatprep.subr.bf16.mxu1 %v5910_v2  ;;  %v5915_v8 = vld [vmem:[#allocation8 + $0x20] sm:$0xff]   ;;  %v5917_v11 = vld [vmem:[#allocation8 + $0x18] sm:$0xff]   ;;  %v5918_v12 = vld [vmem:[#allocation8 + $0x50] sm:$0xff]   ;;  %s9617_s29 = scalar_lea.sflag [#allocation16], %s531_s15  ;;  %s6766_s28 = scalar_lea.vmem %s9611_s23, 4096 }
  0xb2   : > { %v621_v13 = vld [vmem:[%s7220_s8] sm:$0xff]  ;;  %v622_v14 = vld [vmem:[%s7220_s8 + $0x8] sm:$0xff]  ;;  %v7259_v18 = vsub.s32 0, %v7248_v10  ;;  %v7265_v20 = vsub.s32 1, %v7248_v10  ;;  %v5919_v21 = vld [vmem:[#allocation8 + $0x10] sm:$0xff]   ;;  %p6767_p0 = scmp.ne.s32.totalorder %s9611_s23, %s6766_s28  ;;  %p10308_p2 = scmp.ne.s32.totalorder %s10000_s27, 0 }
  0xb3   : > { %v7252_v15 = vunpack.c.l.bf16 %v621_v13  ;;  %v7254_v16 = vunpack.c.h.bf16 %v621_v13  ;;  %v7256_v17 = vunpack.c.h.bf16 %v622_v14  ;;  %v1389_v19 = vld [vmem:[%s9846_s2] sm:$0x3]  ;;  %v7267_v22 = vunpack.c.l.bf16 %v622_v14  ;;  %v5920_v25 = vld [vmem:[#allocation8 + $0x48] sm:$0xff]   ;;  %v624_v34 = vld [vmem:[%s7220_s8 + $0x18] sm:$0xff]  ;;  %s6918_s21 = smov [#allocation15]  }
  0xb4   : > { %5588 = vmatpush3.bf16.msra.mxu0 %v5911_v3  ;;  %5778 = vmatpush3.bf16.msra.mxu1 %v5911_v3  ;;  %v1465_v27 = vld [vmem:[#allocation7] sm:$0x3]  ;;  %v7274_v29 = vrot.slane %v1389_v19, %v7259_v18  ;;  %v7279_v32 = vrot.slane %v1389_v19, %v7265_v20  ;;  %v623_v33 = vld [vmem:[%s7220_s8 + $0x10] sm:$0xff]  ;;  %v5922_v39 = vld [vmem:[#allocation8 + $0x40] sm:$0xff]   ;;  %v7293_v45 = vunpack.c.h.bf16 %v624_v34  ;;  %v7314_v56 = vunpack.c.l.bf16 %v624_v34  ;;  %p6768_p9 = pnand %p6767_p0, %p10308_p2  ;;  %s6770_s6 = sshll.u32 %s6918_s21, 4  ;;  %s6771_s6 = int_to_ptr.vmem [resolvable:$false] %s6770_s6 }
  0xb5   : > { %5589 = vmatprep.subr.bf16.mxu0 %v5912_v4  ;;  %5771 = vmatprep.subr.bf16.mxu1 %v5912_v4  ;;  %v822_v23 = vadd.f32 1.0, %v7254_v16  ;;  %v840_v24 = vadd.f32 1.0, %v7256_v17  ;;  %v825_v26 = vmul.f32 -0.5, %v7254_v16  ;;  %v813_v28 = vadd.f32 1.0, %v7252_v15  ;;  %v5921_v35 = vld [vmem:[#allocation8 + $0x8] sm:$0xff]   ;;  %v7306_v51 = vld [vmem:[%s7220_s8 + $0x20] sm:$0xff]  ;;  %p6773_p1 = scmp.lt.s32.totalorder %s9611_s23, %s6771_s6 }
  0xb6   : > { %v828_v30 = vand.u32 2147483647, %v7254_v16  ;;  %v843_v31 = vmul.f32 -0.5, %v7256_v17  ;;  %v846_v36 = vand.u32 2147483647, %v7256_v17  ;;  %v7285_v37 = vrot.slane %v1465_v27, %v7259_v18  ;;  %v5923_v52 = vld [vmem:[#allocation8] sm:$0xff]   ;;  %p6769_p10 = pneg %p6768_p9 }
  0xb7   : > { %6004 = vlog2.f32 %v822_v23  ;;  %v831_v38 = vadd.f32 1.0, %v7267_v22  ;;  %v826_v40 = vadd.f32 1.0, %v825_v26  ;;  %v816_v41 = vmul.f32 -0.5, %v7252_v15  ;;  %v626_v63 = vld [vmem:[%s7220_s8 + $0x28] sm:$0xff]  ;;  %s6772_s10 = scalar_lea.vmem %s6771_s6, 8192 }
  0xb8   : > { %5590 = vmatpush3.bf16.msra.mxu0 %v5913_v5  ;;  %5779 = vmatpush3.bf16.msra.mxu1 %v5913_v5  ;;  %6006 = vlog2.f32 %v840_v24  ;;  %v819_v42 = vand.u32 2147483647, %v7252_v15  ;;  %v834_v43 = vmul.f32 -0.5, %v7267_v22  ;;  %v7291_v44 = vunpack.c.h.bf16 %v623_v33  ;;  %p6774_p4 = scmp.lt.s32.totalorder %s6772_s10, %s6766_s28 }
  0xb9   : > { %5591 = vmatprep.subr.bf16.mxu0 %v5914_v6  ;;  %5772 = vmatprep.subr.bf16.mxu1 %v5914_v6  ;;  %6008 = vlog2.f32 %v813_v28  ;;  %v7295_v46 = vunpack.c.l.bf16 %v623_v33  ;;  %vm7297_vm0 = vcmp.lt.f32.partialorder %v828_v30, 0.0004427343  ;;  %v844_v48 = vadd.f32 1.0, %v843_v31 }
  0xba   : > { %6010 = vlog2.f32 %v831_v38  ;;  %v7302_v49 = vrot.slane %v1465_v27, %v7265_v20  ;;  %v837_v50 = vand.u32 2147483647, %v7267_v22  ;;  %vm7308_vm1 = vcmp.lt.f32.partialorder %v846_v36, 0.0004427343  ;;  %p6775_p6 = por %p6774_p4, %p6773_p1 }
  0xbb   : > { %v858_v54 = vadd.f32 1.0, %v7291_v44  ;;  %v876_v55 = vadd.f32 1.0, %v7293_v45  ;;  %v827_v57 = vmul.f32 %v826_v40, %v7254_v16  ;;  %v817_v58 = vadd.f32 1.0, %v816_v41 }
  0xbc   : > { %5592 = vmatpush3.bf16.msra.mxu0 %v5915_v8  ;;  %5780 = vmatpush3.bf16.msra.mxu1 %v5915_v8  ;;  %v861_v59 = vmul.f32 -0.5, %v7291_v44  ;;  %v849_v60 = vadd.f32 1.0, %v7295_v46  ;;  %vm7319_vm2 = vcmp.lt.f32.partialorder %v819_v42, 0.0004427343  ;;  %v835_v62 = vadd.f32 1.0, %v834_v43  ;;  %p6776_p8 = pnand %p6775_p6, %p6769_p10 }
  0xbd   : > { %5593 = vmatprep.subr.bf16.mxu0 %v5916_v9  ;;  %5773 = vmatprep.subr.bf16.mxu1 %v5916_v9  ;;  %6012 = vlog2.f32 %v858_v54  ;;  %v7325_v0 = vunpack.c.h.bf16 %v7306_v51  ;;  %vm7327_vm3 = vcmp.lt.f32.partialorder %v837_v50, 0.0004427343  ;;  %v864_v2 = vand.u32 2147483647, %v7291_v44 }
  0xbe   : > { %6014 = vlog2.f32 %v876_v55  ;;  %v879_v3 = vmul.f32 -0.5, %v7293_v45  ;;  %v845_v4 = vmul.f32 %v844_v48, %v7256_v17  ;;  %v882_v5 = vand.u32 2147483647, %v7293_v45 }
  0xbf   : > { %6016 = vlog2.f32 %v849_v60  ;;  %v867_v6 = vadd.f32 1.0, %v7314_v56  ;;  %v818_v7 = vmul.f32 %v817_v58, %v7252_v15  ;;  %v862_v8 = vadd.f32 1.0, %v861_v59 }
  0xc0   : > { %5594 = vmatpush3.bf16.msra.mxu0 %v5917_v11  ;;  %5781 = vmatpush3.bf16.msra.mxu1 %v5917_v11  ;;  %v852_v9 = vmul.f32 -0.5, %v7295_v46  ;;  %v855_v11 = vand.u32 2147483647, %v7295_v46  ;;  %v7340_v13 = vunpack.c.h.bf16 %v626_v63  ;;  %v894_v14 = vadd.f32 1.0, %v7325_v0 }
  0xc1   : > { %5595 = vmatprep.subr.bf16.mxu0 %v5918_v12  ;;  %5774 = vmatprep.subr.bf16.mxu1 %v5918_v12  ;;  %6018 = vlog2.f32 %v867_v6  ;;  %v870_v12 = vmul.f32 -0.5, %v7314_v56  ;;  %vm7344_vm4 = vcmp.lt.f32.partialorder %v864_v2, 0.0004427343  ;;  %v873_v24 = vand.u32 2147483647, %v7314_v56 }
  0xc2   : > { %v880_v28 = vadd.f32 1.0, %v879_v3  ;;  %vm7350_vm5 = vcmp.lt.f32.partialorder %v882_v5, 0.0004427343  ;;  %6020 = vlog2.f32 %v894_v14  ;;  %v912_v31 = vadd.f32 1.0, %v7340_v13 }
  0xc3   : > { %v853_v36 = vadd.f32 1.0, %v852_v9  ;;  %vm7356_vm6 = vcmp.lt.f32.partialorder %v855_v11, 0.0004427343  ;;  %v871_v42 = vadd.f32 1.0, %v870_v12  ;;  %vm7366_vm7 = vcmp.lt.f32.partialorder %v873_v24, 0.0004427343 }
  0xc4   : > { %5596 = vmatpush3.bf16.msra.mxu0 %v5919_v21  ;;  %5782 = vmatpush3.bf16.msra.mxu1 %v5919_v21  ;;  %v6005_v19 = vpop.eup %6004  ;;  %v836_v21 = vmul.f32 %v835_v62, %v7267_v22  ;;  %6022 = vlog2.f32 %v912_v31  ;;  %v915_v55 = vmul.f32 -0.5, %v7340_v13  ;;  %v881_v59 = vmul.f32 %v880_v28, %v7293_v45 }
  0xc5   : > { %5597 = vmatprep.subr.bf16.mxu0 %v5920_v25  ;;  %5775 = vmatprep.subr.bf16.mxu1 %v5920_v25  ;;  %v897_v25 = vmul.f32 -0.5, %v7325_v0  ;;  %v6007_v26 = vpop.eup %6006  ;;  %v824_v27 = vmul.f32 0.6931472, %v6005_v19  ;;  %v918_v2 = vand.u32 2147483647, %v7340_v13  ;;  %v7383_v3 = vunpack.c.l.bf16 %v7306_v51 }
  0xc6   : > { %v6009_v33 = vpop.eup %6008  ;;  %v842_v34 = vmul.f32 0.6931472, %v6007_v26  ;;  %v854_v5 = vmul.f32 %v853_v36, %v7295_v46  ;;  %v7389_v6 = vunpack.c.l.bf16 %v626_v63  ;;  %v872_v11 = vmul.f32 %v871_v42, %v7314_v56 }
  0xc7   : > { %v830_v40 = vsel %vm7297_vm0, %v827_v57, %v824_v27  ;;  %v815_v41 = vmul.f32 0.6931472, %v6009_v33  ;;  %v6011_v43 = vpop.eup %6010  ;;  %v898_v54 = vadd.f32 1.0, %v897_v25  ;;  %v885_v12 = vadd.f32 1.0, %v7383_v3 }
  0xc8   : > { %5598 = vmatpush3.bf16.msra.mxu0 %v5921_v35  ;;  %5783 = vmatpush3.bf16.msra.mxu1 %v5921_v35  ;;  %v863_v35 = vmul.f32 %v862_v8, %v7291_v44  ;;  %v848_v48 = vsel %vm7308_vm1, %v845_v4, %v842_v34  ;;  %v1402_v50 = vsub.f32 %v830_v40, %v7279_v32  ;;  %v833_v57 = vmul.f32 0.6931472, %v6011_v43 }
  0xc9   : > { %5599 = vmatprep.subr.bf16.mxu0 %v5922_v39  ;;  %5776 = vmatprep.subr.bf16.mxu1 %v5922_v39  ;;  %v900_v39 = vand.u32 2147483647, %v7325_v0  ;;  %v1404_v58 = vsub.f32 %v848_v48, %v7279_v32  ;;  %v821_v47 = vsel %vm7319_vm2, %v818_v7, %v815_v41  ;;  %v916_v24 = vadd.f32 1.0, %v915_v55  ;;  %v628_v41 = vld [vmem:[%s7220_s8 + $0x38] sm:$0xff] }
  0xca   : > { %v1478_v53 = vmul.f32 %v7302_v49, %v1402_v50  ;;  %v1401_v60 = vsub.f32 %v821_v47, %v7274_v29  ;;  %v839_v4 = vsel %vm7327_vm3, %v836_v21, %v833_v57  ;;  %v6013_v7 = vpop.eup %6012  ;;  %v903_v1 = vadd.f32 1.0, %v7389_v6  ;;  %v627_v21 = vld [vmem:[%s7220_s8 + $0x30] sm:$0xff] }
  0xcb   : > { %vm7377_vm8 = vcmp.lt.f32.partialorder %v900_v39, 0.0004427343  ;;  %v1480_v61 = vmul.f32 %v7302_v49, %v1404_v58  ;;  %v1403_v8 = vsub.f32 %v839_v4, %v7274_v29  ;;  %v6015_v51 = vpop.eup %6014  ;;  %v860_v19 = vmul.f32 0.6931472, %v6013_v7 }
  0xcc   : > { %5600 = vmatpush3.bf16.msra.mxu0 %v5923_v52  ;;  %5784 = vmatpush3.bf16.msra.mxu1 %v5923_v52  ;;  %v1477_v9 = vmul.f32 %v7285_v37, %v1401_v60  ;;  %v6017_v25 = vpop.eup %6016  ;;  %v878_v26 = vmul.f32 0.6931472, %v6015_v51  ;;  %v899_v27 = vmul.f32 %v898_v54, %v7325_v0  ;;  %6024 = vlog2.f32 %v885_v12 }
  0xcd   : > { %v1542_v14 = vpack.c.bf16 %v1480_v61, %v1478_v53  ;;  %v1479_v63 = vmul.f32 %v7285_v37, %v1403_v8  ;;  %v866_v28 = vsel %vm7344_vm4, %v863_v35, %v860_v19  ;;  %v851_v31 = vmul.f32 0.6931472, %v6017_v25 }
  0xce   : > { %vm7401_vm9 = vcmp.lt.f32.partialorder %v918_v2, 0.0004427343  ;;  %6026 = vlog2.f32 %v903_v1  ;;  %v6019_v34 = vpop.eup %6018  ;;  %v884_v39 = vsel %vm7350_vm5, %v881_v59, %v878_v26  ;;  %v1406_v40 = vsub.f32 %v866_v28, %v7279_v32  ;;  %v629_v28 = vld [vmem:[%s7220_s8 + $0x40] sm:$0xff] }
  0xcf   : > { %1740 = vmatprep.mubr.bf16.mxu0 %v1542_v14  ;;  %v1541_v36 = vpack.c.bf16 %v1479_v63, %v1477_v9  ;;  %v7409_v42 = vunpack.c.h.bf16 %v627_v21  ;;  %v1408_v43 = vsub.f32 %v884_v39, %v7279_v32  ;;  %v857_v23 = vsel %vm7356_vm6, %v854_v5, %v851_v31  ;;  %v6021_v50 = vpop.eup %6020  ;;  %v630_v31 = vld [vmem:[%s7220_s8 + $0x48] sm:$0xff] }
  0xd0   : > { %v869_v35 = vmul.f32 0.6931472, %v6019_v34  ;;  %v888_v48 = vmul.f32 -0.5, %v7383_v3  ;;  %v1482_v54 = vmul.f32 %v7302_v49, %v1406_v40  ;;  %v1405_v30 = vsub.f32 %v857_v23, %v7274_v29 }
  0xd1   : > { %1741 = vmatmul.mubr.bf16.vlgmr.msra.gmra.mxu0 %v1541_v36  ;;  %v917_v55 = vmul.f32 %v916_v24, %v7340_v13  ;;  %v906_v58 = vmul.f32 -0.5, %v7389_v6  ;;  %v1484_v47 = vmul.f32 %v7302_v49, %v1408_v43  ;;  %v896_v38 = vmul.f32 0.6931472, %v6021_v50  ;;  %v6023_v53 = vpop.eup %6022 }
  0xd2   : > { %v875_v57 = vsel %vm7366_vm7, %v872_v11, %v869_v35  ;;  %v7422_v59 = vunpack.c.h.bf16 %v628_v41  ;;  %v1481_v2 = vmul.f32 %v7285_v37, %v1405_v30  ;;  %v891_v61 = vand.u32 2147483647, %v7383_v3 }
  0xd3   : > { %v1407_v60 = vsub.f32 %v875_v57, %v7274_v29  ;;  %v930_v4 = vadd.f32 1.0, %v7409_v42  ;;  %v1544_v5 = vpack.c.bf16 %v1484_v47, %v1482_v54  ;;  %v902_v7 = vsel %vm7377_vm8, %v899_v27, %v896_v38 }
  0xd4   : > { %v914_v8 = vmul.f32 0.6931472, %v6023_v53  ;;  %v889_v9 = vadd.f32 1.0, %v888_v48  ;;  %v1410_v11 = vsub.f32 %v902_v7, %v7279_v32  ;;  %v909_v12 = vand.u32 2147483647, %v7389_v6 }
  0xd5   : > { %v1483_v52 = vmul.f32 %v7285_v37, %v1407_v60  ;;  %6028 = vlog2.f32 %v930_v4  ;;  %1748 = vmatprep.mubr.bf16.mxu0 %v1544_v5  ;;  %v907_v14 = vadd.f32 1.0, %v906_v58  ;;  %v933_v19 = vmul.f32 -0.5, %v7409_v42 }
  0xd6   : > { %v920_v51 = vsel %vm7401_vm9, %v917_v55, %v914_v8  ;;  %v948_v62 = vadd.f32 1.0, %v7422_v59  ;;  %v1486_v25 = vmul.f32 %v7302_v49, %v1410_v11  ;;  %v951_v63 = vmul.f32 -0.5, %v7422_v59 }
  0xd7   : > { %v1543_v24 = vpack.c.bf16 %v1483_v52, %v1481_v2  ;;  %v1412_v1 = vsub.f32 %v920_v51, %v7279_v32  ;;  %v890_v26 = vmul.f32 %v889_v9, %v7383_v3  ;;  %vm7441_vm10 = vcmp.lt.f32.partialorder %v891_v61, 0.0004427343 }
  0xd8   : > { %6030 = vlog2.f32 %v948_v62  ;;  %vm7448_vm11 = vcmp.lt.f32.partialorder %v909_v12, 0.0004427343  ;;  %v7452_v36 = vunpack.c.l.bf16 %v627_v21  ;;  %v7454_v39 = vunpack.c.l.bf16 %v628_v41 }
  0xd9   : > { %1749 = vmatmul.mubr.bf16.gmra.mxu0 %v1543_v24  ;;  %v1488_v33 = vmul.f32 %v7302_v49, %v1412_v1  ;;  %v6025_v40 = vpop.eup %6024  ;;  %v908_v43 = vmul.f32 %v907_v14, %v7389_v6  ;;  %v934_v23 = vadd.f32 1.0, %v933_v19  ;;  %v936_v35 = vand.u32 2147483647, %v7409_v42 }
  0xda   : > { %v887_v54 = vmul.f32 0.6931472, %v6025_v40  ;;  %v952_v30 = vadd.f32 1.0, %v951_v63  ;;  %v921_v55 = vadd.f32 1.0, %v7452_v36  ;;  %v924_v47 = vmul.f32 -0.5, %v7452_v36 }
  0xdb   : > { %v6027_v48 = vpop.eup %6026  ;;  %v1546_v50 = vpack.c.bf16 %v1488_v33, %v1486_v25  ;;  %v939_v21 = vadd.f32 1.0, %v7454_v39  ;;  %v7461_v57 = vunpack.c.h.bf16 %v629_v28  ;;  %v954_v38 = vand.u32 2147483647, %v7422_v59  ;;  %v631_v33 = vld [vmem:[%s7220_s8 + $0x50] sm:$0xff] }
  0xdc   : > { %v905_v58 = vmul.f32 0.6931472, %v6027_v48  ;;  %v893_v41 = vsel %vm7441_vm10, %v890_v26, %v887_v54  ;;  %6032 = vlog2.f32 %v921_v55  ;;  %v7466_v53 = vunpack.c.h.bf16 %v630_v31  ;;  %v632_v55 = vld [vmem:[%s7220_s8 + $0x58] sm:$0xff] }
  0xdd   : > { %1756 = vmatprep.mubr.bf16.mxu0 %v1546_v50  ;;  %v1409_v2 = vsub.f32 %v893_v41, %v7274_v29  ;;  %v927_v61 = vand.u32 2147483647, %v7452_v36  ;;  %6034 = vlog2.f32 %v939_v21  ;;  %vm7473_vm12 = vcmp.lt.f32.partialorder %v936_v35, 0.0004427343 }
  0xde   : > { %v911_v60 = vsel %vm7448_vm11, %v908_v43, %v905_v58  ;;  %v942_v7 = vmul.f32 -0.5, %v7454_v39  ;;  %v935_v9 = vmul.f32 %v934_v23, %v7409_v42  ;;  %v925_v52 = vadd.f32 1.0, %v924_v47 }
  0xdf   : > { %v1411_v4 = vsub.f32 %v911_v60, %v7274_v29  ;;  %v1485_v8 = vmul.f32 %v7285_v37, %v1409_v2  ;;  %v966_v11 = vadd.f32 1.0, %v7461_v57  ;;  %v953_v51 = vmul.f32 %v952_v30, %v7422_v59 }
  0xe0   : > { %v969_v14 = vmul.f32 -0.5, %v7461_v57  ;;  %v984_v19 = vadd.f32 1.0, %v7466_v53  ;;  %vm7485_vm13 = vcmp.lt.f32.partialorder %v954_v38, 0.0004427343  ;;  %vm7489_vm14 = vcmp.lt.f32.partialorder %v927_v61, 0.0004427343 }
  0xe1   : > { %v1487_v12 = vmul.f32 %v7285_v37, %v1411_v4  ;;  %v945_v25 = vand.u32 2147483647, %v7454_v39  ;;  %6036 = vlog2.f32 %v966_v11  ;;  %v943_v27 = vadd.f32 1.0, %v942_v7 }
  0xe2   : > { %v6029_v62 = vpop.eup %6028  ;;  %6038 = vlog2.f32 %v984_v19  ;;  %v926_v34 = vmul.f32 %v925_v52, %v7452_v36  ;;  %v987_v40 = vmul.f32 -0.5, %v7466_v53  ;;  %v7497_v43 = vunpack.c.l.bf16 %v629_v28 }
  0xe3   : > { %v1545_v63 = vpack.c.bf16 %v1487_v12, %v1485_v8  ;;  %v932_v26 = vmul.f32 0.6931472, %v6029_v62  ;;  %v7499_v23 = vunpack.c.l.bf16 %v630_v31  ;;  %v970_v50 = vadd.f32 1.0, %v969_v14 }
  0xe4   : > { %v972_v54 = vand.u32 2147483647, %v7461_v57  ;;  %v990_v30 = vand.u32 2147483647, %v7466_v53  ;;  %v957_v21 = vadd.f32 1.0, %v7497_v43  ;;  %v7508_v28 = vunpack.c.h.bf16 %v631_v33 }
  0xe5   : > { %v6031_v35 = vpop.eup %6030  ;;  %1757 = vmatmul.mubr.bf16.gmra.mxu0 %v1545_v63  ;;  %v938_v48 = vsel %vm7473_vm12, %v935_v9, %v932_v26  ;;  %v944_v31 = vmul.f32 %v943_v27, %v7454_v39  ;;  %vm7511_vm15 = vcmp.lt.f32.partialorder %v945_v25, 0.0004427343  ;;  %v960_v38 = vmul.f32 -0.5, %v7497_v43 }
  0xe6   : > { %v950_v58 = vmul.f32 0.6931472, %v6031_v35  ;;  %v1414_v47 = vsub.f32 %v938_v48, %v7279_v32  ;;  %v975_v60 = vadd.f32 1.0, %v7499_v23  ;;  %v988_v61 = vadd.f32 1.0, %v987_v40 }
  0xe7   : > { %6040 = vlog2.f32 %v957_v21  ;;  %v7519_v4 = vunpack.c.h.bf16 %v632_v55  ;;  %v963_v8 = vand.u32 2147483647, %v7497_v43  ;;  %v971_v52 = vmul.f32 %v970_v50, %v7461_v57 }
  0xe8   : > { %v956_v2 = vsel %vm7485_vm13, %v953_v51, %v950_v58  ;;  %v1490_v7 = vmul.f32 %v7302_v49, %v1414_v47  ;;  %6042 = vlog2.f32 %v975_v60  ;;  %vm7525_vm0 = vcmp.lt.f32.partialorder %v972_v54, 0.0004427343  ;;  %v7554_v60 = vld [vmem:[%s7220_s8 + $0x60] sm:$0xff] }
  0xe9   : > { %v1416_v5 = vsub.f32 %v956_v2, %v7279_v32  ;;  %v6033_v9 = vpop.eup %6032  ;;  %vm7529_vm1 = vcmp.lt.f32.partialorder %v990_v30, 0.0004427343  ;;  %v1002_v51 = vadd.f32 1.0, %v7508_v28  ;;  %v961_v24 = vadd.f32 1.0, %v960_v38 }
  0xea   : > { %v6035_v14 = vpop.eup %6034  ;;  %v923_v62 = vmul.f32 0.6931472, %v6033_v9  ;;  %v978_v25 = vmul.f32 -0.5, %v7499_v23  ;;  %v989_v26 = vmul.f32 %v988_v61, %v7466_v53  ;;  %v1020_v27 = vadd.f32 1.0, %v7519_v4 }
  0xeb   : > { %v1492_v19 = vmul.f32 %v7302_v49, %v1416_v5  ;;  %v941_v63 = vmul.f32 0.6931472, %v6035_v14  ;;  %6044 = vlog2.f32 %v1002_v51  ;;  %vm7540_vm2 = vcmp.lt.f32.partialorder %v963_v8, 0.0004427343 }
  0xec   : > { %v929_v35 = vsel %vm7489_vm14, %v926_v34, %v923_v62  ;;  %v981_v50 = vand.u32 2147483647, %v7499_v23  ;;  %v1005_v58 = vmul.f32 -0.5, %v7508_v28  ;;  %6046 = vlog2.f32 %v1020_v27 }
  0xed   : > { %v1548_v40 = vpack.c.bf16 %v1492_v19, %v1490_v7  ;;  %v947_v54 = vsel %vm7511_vm15, %v944_v31, %v941_v63  ;;  %v1413_v30 = vsub.f32 %v929_v35, %v7274_v29  ;;  %v962_v1 = vmul.f32 %v961_v24, %v7497_v43 }
  0xee   : > { %v6037_v47 = vpop.eup %6036  ;;  %v1415_v21 = vsub.f32 %v947_v54, %v7274_v29  ;;  %v979_v34 = vadd.f32 1.0, %v978_v25  ;;  %v7551_v38 = vunpack.c.l.bf16 %v631_v33  ;;  %v1023_v61 = vmul.f32 -0.5, %v7519_v4 }
  0xef   : > { %1764 = vmatprep.mubr.bf16.mxu0 %v1548_v40  ;;  %v6039_v2 = vpop.eup %6038  ;;  %v1489_v41 = vmul.f32 %v7285_v37, %v1413_v30  ;;  %v968_v31 = vmul.f32 0.6931472, %v6037_v47  ;;  %v7558_v5 = vunpack.c.l.bf16 %v632_v55  ;;  %vm7561_vm3 = vcmp.lt.f32.partialorder %v981_v50, 0.0004427343 }
  0xf0   : > { %v1491_v7 = vmul.f32 %v7285_v37, %v1415_v21  ;;  %v986_v8 = vmul.f32 0.6931472, %v6039_v2  ;;  %v1008_v33 = vand.u32 2147483647, %v7508_v28  ;;  %v1006_v14 = vadd.f32 1.0, %v1005_v58 }
  0xf1   : > { %v974_v51 = vsel %vm7525_vm0, %v971_v52, %v968_v31  ;;  %v993_v19 = vadd.f32 1.0, %v7551_v38  ;;  %v7570_v62 = vunpack.c.h.bf16 %v7554_v60  ;;  %v1011_v63 = vadd.f32 1.0, %v7558_v5  ;;  %v634_v52 = vld [vmem:[%s7220_s8 + $0x68] sm:$0xff] }
  0xf2   : > { %v1547_v55 = vpack.c.bf16 %v1491_v7, %v1489_v41  ;;  %v992_v24 = vsel %vm7529_vm1, %v989_v26, %v986_v8  ;;  %v1418_v25 = vsub.f32 %v974_v51, %v7279_v32  ;;  %v980_v40 = vmul.f32 %v979_v34, %v7499_v23 }
  0xf3   : > { %10054 = vst [vmem:[#allocation30_spill] sm:$0xff] %v7570_v62  ;;  %v1420_v27 = vsub.f32 %v992_v24, %v7279_v32  ;;  %v1024_v11 = vadd.f32 1.0, %v1023_v61  ;;  %6048 = vlog2.f32 %v993_v19  ;;  %vm7580_vm4 = vcmp.lt.f32.partialorder %v1008_v33, 0.0004427343 }
  0xf4   : > { %v6041_v35 = vpop.eup %6040  ;;  %1765 = vmatmul.mubr.bf16.gmra.mxu0 %v1547_v55  ;;  %v1494_v50 = vmul.f32 %v7302_v49, %v1418_v25  ;;  %v1026_v12 = vand.u32 2147483647, %v7519_v4  ;;  %6050 = vlog2.f32 %v1011_v63  ;;  %v996_v47 = vmul.f32 -0.5, %v7551_v38 }
  0xf5   : > { %v6043_v26 = vpop.eup %6042  ;;  %v1496_v30 = vmul.f32 %v7302_v49, %v1420_v27  ;;  %v959_v58 = vmul.f32 0.6931472, %v6041_v35  ;;  %v999_v21 = vand.u32 2147483647, %v7551_v38  ;;  %v1007_v2 = vmul.f32 %v1006_v14, %v7508_v28 }
  0xf6   : > { %v977_v34 = vmul.f32 0.6931472, %v6043_v26  ;;  %v7589_v41 = vunpack.c.h.bf16 %v634_v52  ;;  %v1038_v31 = vadd.f32 1.0, %v7570_v62  ;;  %v1025_v8 = vmul.f32 %v1024_v11, %v7519_v4 }
  0xf7   : > { %v1550_v61 = vpack.c.bf16 %v1496_v30, %v1494_v50  ;;  %v965_v7 = vsel %vm7540_vm2, %v962_v1, %v959_v58  ;;  %v1014_v33 = vmul.f32 -0.5, %v7558_v5  ;;  %vm7599_vm5 = vcmp.lt.f32.partialorder %v1026_v12, 0.0004427343 }
  0xf8   : > { %10057 = vst [vmem:[#allocation31_spill] sm:$0xff] %v7589_v41  ;;  %v6045_v51 = vpop.eup %6044  ;;  %v983_v19 = vsel %vm7561_vm3, %v980_v40, %v977_v34  ;;  %v1417_v55 = vsub.f32 %v965_v7, %v7274_v29  ;;  %6052 = vlog2.f32 %v1038_v31  ;;  %v997_v1 = vadd.f32 1.0, %v996_v47 }
  0xf9   : > { %1772 = vmatprep.mubr.bf16.mxu0 %v1550_v61  ;;  %v1419_v24 = vsub.f32 %v983_v19, %v7274_v29  ;;  %v1004_v48 = vmul.f32 0.6931472, %v6045_v51  ;;  %vm7604_vm6 = vcmp.lt.f32.partialorder %v999_v21, 0.0004427343  ;;  %v6047_v63 = vpop.eup %6046  ;;  %v1017_v27 = vand.u32 2147483647, %v7558_v5 }
  0xfa   : > { %v1493_v9 = vmul.f32 %v7285_v37, %v1417_v55  ;;  %v1041_v40 = vmul.f32 -0.5, %v7570_v62  ;;  %v1056_v11 = vadd.f32 1.0, %v7589_v41  ;;  %v1022_v12 = vmul.f32 0.6931472, %v6047_v63  ;;  %v635_v21 = vld [vmem:[%s7220_s8 + $0x70] sm:$0xff]  ;;  %v636_v19 = vld [vmem:[%s7220_s8 + $0x78] sm:$0xff] }
  0xfb   : > { %v1495_v35 = vmul.f32 %v7285_v37, %v1419_v24  ;;  %v1010_v50 = vsel %vm7580_vm4, %v1007_v2, %v1004_v48  ;;  %v1015_v26 = vadd.f32 1.0, %v1014_v33  ;;  %v1044_v58 = vand.u32 2147483647, %v7570_v62 }
  0xfc   : > { %v1422_v30 = vsub.f32 %v1010_v50, %v7279_v32  ;;  %6054 = vlog2.f32 %v1056_v11  ;;  %v1059_v47 = vmul.f32 -0.5, %v7589_v41  ;;  %v1028_v31 = vsel %vm7599_vm5, %v1025_v8, %v1022_v12 }
  0xfd   : > { %v1549_v34 = vpack.c.bf16 %v1495_v35, %v1493_v9  ;;  %v7622_v61 = vunpack.c.l.bf16 %v7554_v60  ;;  %v7624_v54 = vunpack.c.l.bf16 %v634_v52  ;;  %v1424_v2 = vsub.f32 %v1028_v31, %v7279_v32 }
  0xfe   : > { %v1498_v7 = vmul.f32 %v7302_v49, %v1422_v30  ;;  %v998_v33 = vmul.f32 %v997_v1, %v7551_v38  ;;  %v1042_v51 = vadd.f32 1.0, %v1041_v40  ;;  %v1062_v55 = vand.u32 2147483647, %v7589_v41 }
  0xff   : > { %10062 = vst [vmem:[#allocation32_spill] sm:$0xff] %v7624_v54  ;;  %1773 = vmatmul.mubr.bf16.gmra.mxu0 %v1549_v34  ;;  %v1029_v24 = vadd.f32 1.0, %v7622_v61  ;;  %v1047_v8 = vadd.f32 1.0, %v7624_v54  ;;  %v7633_v14 = vunpack.c.h.bf16 %v635_v21  ;;  %v1500_v52 = vmul.f32 %v7302_v49, %v1424_v2 }
 0x100   : > { %v6049_v60 = vpop.eup %6048  ;;  %v1016_v48 = vmul.f32 %v1015_v26, %v7558_v5  ;;  %vm7637_vm7 = vcmp.lt.f32.partialorder %v1017_v27, 0.0004427343  ;;  %vm7641_vm8 = vcmp.lt.f32.partialorder %v1044_v58, 0.0004427343  ;;  %v1060_v11 = vadd.f32 1.0, %v1059_v47 }
 0x101   : > { %10063 = vst [vmem:[#allocation33_spill] sm:$0xff] %v7633_v14  ;;  %v6051_v9 = vpop.eup %6050  ;;  %v995_v40 = vmul.f32 0.6931472, %v6049_v60  ;;  %6056 = vlog2.f32 %v1029_v24  ;;  %v7645_v35 = vunpack.c.h.bf16 %v636_v19  ;;  %v1552_v50 = vpack.c.bf16 %v1500_v52, %v1498_v7 }
 0x102   : > { %v1013_v12 = vmul.f32 0.6931472, %v6051_v9  ;;  %v1043_v30 = vmul.f32 %v1042_v51, %v7570_v62  ;;  %6058 = vlog2.f32 %v1047_v8  ;;  %vm7650_vm9 = vcmp.lt.f32.partialorder %v1062_v55, 0.0004427343 }
 0x103   : > { %10068 = vst [vmem:[#allocation34_spill] sm:$0xff] %v7645_v35  ;;  %v1001_v27 = vsel %vm7604_vm6, %v998_v33, %v995_v40  ;;  %v1032_v58 = vmul.f32 -0.5, %v7622_v61  ;;  %v1074_v34 = vadd.f32 1.0, %v7633_v14  ;;  %1780 = vmatprep.mubr.bf16.mxu0 %v1552_v50  ;;  %v1035_v2 = vand.u32 2147483647, %v7622_v61 }
 0x104   : > { %v1019_v47 = vsel %vm7637_vm7, %v1016_v48, %v1013_v12  ;;  %v1421_v31 = vsub.f32 %v1001_v27, %v7274_v29  ;;  %v1050_v7 = vmul.f32 -0.5, %v7624_v54  ;;  %v1061_v51 = vmul.f32 %v1060_v11, %v7589_v41  ;;  %v5926_v27 = vld [vmem:[#allocation10 + $0x74] ss:$8 sps:$4 sm:$0xff]  }
 0x105   : > { %v6053_v25 = vpop.eup %6052  ;;  %v1423_v33 = vsub.f32 %v1019_v47, %v7274_v29  ;;  %6060 = vlog2.f32 %v1074_v34  ;;  %v1092_v55 = vadd.f32 1.0, %v7645_v35  ;;  %v1053_v60 = vand.u32 2147483647, %v7624_v54  ;;  %2025 = vmatprep.subr.bf16.mxu1 %v5926_v27 }
 0x106   : > { %v1497_v24 = vmul.f32 %v7285_v37, %v1421_v31  ;;  %v1040_v8 = vmul.f32 0.6931472, %v6053_v25  ;;  %v1077_v52 = vmul.f32 -0.5, %v7633_v14  ;;  %v1033_v63 = vadd.f32 1.0, %v1032_v58 }
 0x107   : > { %v1499_v48 = vmul.f32 %v7285_v37, %v1423_v33  ;;  %6062 = vlog2.f32 %v1092_v55  ;;  %v1095_v9 = vmul.f32 -0.5, %v7645_v35  ;;  %vm7671_vm10 = vcmp.lt.f32.partialorder %v1035_v2, 0.0004427343 }
 0x108   : > { %v1046_v40 = vsel %vm7641_vm8, %v1043_v30, %v1040_v8  ;;  %v1051_v50 = vadd.f32 1.0, %v1050_v7  ;;  %v7675_v12 = vunpack.c.l.bf16 %v635_v21  ;;  %v1080_v31 = vand.u32 2147483647, %v7633_v14  ;;  %v637_v8 = vld [vmem:[%s7220_s8 + $0x80] sm:$0xff] }
 0x109   : > { %v6055_v34 = vpop.eup %6054  ;;  %v1551_v47 = vpack.c.bf16 %v1499_v48, %v1497_v24  ;;  %v1426_v58 = vsub.f32 %v1046_v40, %v7279_v32  ;;  %v7679_v25 = vunpack.c.l.bf16 %v636_v19  ;;  %v1078_v30 = vadd.f32 1.0, %v1077_v52  ;;  %v638_v19 = vld [vmem:[%s7220_s8 + $0x88] sm:$0xff] }
 0x10a   : > { %10073 = vst [vmem:[#allocation35_spill] sm:$0xff] %v7675_v12  ;;  %v1058_v1 = vmul.f32 0.6931472, %v6055_v34  ;;  %v1098_v2 = vand.u32 2147483647, %v7645_v35  ;;  %v1065_v33 = vadd.f32 1.0, %v7675_v12  ;;  %v1034_v21 = vmul.f32 %v1033_v63, %v7622_v61 }
 0x10b   : > { %10074 = vst [vmem:[#allocation36_spill] sm:$0xff] %v7679_v25  ;;  %1781 = vmatmul.mubr.bf16.gmra.mxu0 %v1551_v47  ;;  %vm7684_vm11 = vcmp.lt.f32.partialorder %v1053_v60, 0.0004427343  ;;  %v1096_v55 = vadd.f32 1.0, %v1095_v9  ;;  %v1083_v24 = vadd.f32 1.0, %v7679_v25  ;;  %v1052_v48 = vmul.f32 %v1051_v50, %v7624_v54 }
 0x10c   : > { %v1064_v52 = vsel %vm7650_vm9, %v1061_v51, %v1058_v1  ;;  %6064 = vlog2.f32 %v1065_v33  ;;  %v1068_v40 = vmul.f32 -0.5, %v7675_v12  ;;  %v1502_v60 = vmul.f32 %v7302_v49, %v1426_v58 }
 0x10d   : > { %v1428_v27 = vsub.f32 %v1064_v52, %v7279_v32  ;;  %vm7697_vm12 = vcmp.lt.f32.partialorder %v1080_v31, 0.0004427343  ;;  %6066 = vlog2.f32 %v1083_v24  ;;  %v1079_v34 = vmul.f32 %v1078_v30, %v7633_v14 }
 0x10e   : > { %v6057_v9 = vpop.eup %6056  ;;  %vm7702_vm13 = vcmp.lt.f32.partialorder %v1098_v2, 0.0004427343  ;;  %v7706_v51 = vunpack.c.h.bf16 %v637_v8  ;;  %v7708_v50 = vunpack.c.h.bf16 %v638_v19  ;;  %v1097_v31 = vmul.f32 %v1096_v55, %v7645_v35 }
 0x10f   : > { %v6059_v47 = vpop.eup %6058  ;;  %v1504_v1 = vmul.f32 %v7302_v49, %v1428_v27  ;;  %v1031_v58 = vmul.f32 0.6931472, %v6057_v9  ;;  %v1071_v33 = vand.u32 2147483647, %v7675_v12  ;;  %v1069_v52 = vadd.f32 1.0, %v1068_v40 }
 0x110   : > { %10081 = vst [vmem:[#allocation37_spill] sm:$0xff] %v7706_v51  ;;  %10082 = vst [vmem:[#allocation38_spill] sm:$0xff] %v7708_v50  ;;  %v1049_v24 = vmul.f32 0.6931472, %v6059_v47  ;;  %v1086_v30 = vmul.f32 -0.5, %v7679_v25  ;;  %v1110_v2 = vadd.f32 1.0, %v7706_v51  ;;  %v7722_v40 = vunpack.c.l.bf16 %v637_v8 }
 0x111   : > { %v1554_v14 = vpack.c.bf16 %v1504_v1, %v1502_v60  ;;  %v1037_v41 = vsel %vm7671_vm10, %v1034_v21, %v1031_v58  ;;  %v1089_v54 = vand.u32 2147483647, %v7679_v25  ;;  %v1128_v62 = vadd.f32 1.0, %v7708_v50 }
 0x112   : > { %v6061_v27 = vpop.eup %6060  ;;  %v1055_v55 = vsel %vm7684_vm11, %v1052_v48, %v1049_v24  ;;  %v1425_v9 = vsub.f32 %v1037_v41, %v7274_v29  ;;  %6068 = vlog2.f32 %v1110_v2  ;;  %10083 = vst [vmem:[#allocation39_spill] sm:$0xff] %v7722_v40  ;;  %v1113_v11 = vmul.f32 -0.5, %v7706_v51 }
 0x113   : > { %1788 = vmatprep.mubr.bf16.mxu0 %v1554_v14  ;;  %v1427_v47 = vsub.f32 %v1055_v55, %v7274_v29  ;;  %v1076_v60 = vmul.f32 0.6931472, %v6061_v27  ;;  %6070 = vlog2.f32 %v1128_v62  ;;  %v1087_v58 = vadd.f32 1.0, %v1086_v30 }
 0x114   : > { %v6063_v21 = vpop.eup %6062  ;;  %v1501_v1 = vmul.f32 %v7285_v37, %v1425_v9  ;;  %v1116_v7 = vand.u32 2147483647, %v7706_v51  ;;  %v1131_v48 = vmul.f32 -0.5, %v7708_v50  ;;  %v7732_v24 = vunpack.c.l.bf16 %v638_v19 }
 0x115   : > { %v1503_v41 = vmul.f32 %v7285_v37, %v1427_v47  ;;  %v1082_v14 = vsel %vm7697_vm12, %v1079_v34, %v1076_v60  ;;  %v1094_v8 = vmul.f32 0.6931472, %v6063_v21  ;;  %v1070_v62 = vmul.f32 %v1069_v52, %v7675_v12  ;;  %v639_v34 = vld [vmem:[%s7220_s8 + $0x90] sm:$0xff] }
 0x116   : > { %10084 = vst [vmem:[#allocation40_spill] sm:$0xff] %v7732_v24  ;;  %v1430_v2 = vsub.f32 %v1082_v14, %v7279_v32  ;;  %vm7736_vm14 = vcmp.lt.f32.partialorder %v1071_v33, 0.0004427343  ;;  %v1101_v30 = vadd.f32 1.0, %v7722_v40  ;;  %vm7743_vm15 = vcmp.lt.f32.partialorder %v1089_v54, 0.0004427343 }
 0x117   : > { %v1553_v55 = vpack.c.bf16 %v1503_v41, %v1501_v1  ;;  %v1100_v9 = vsel %vm7702_vm13, %v1097_v31, %v1094_v8  ;;  %v1114_v19 = vadd.f32 1.0, %v1113_v11  ;;  %v1119_v52 = vadd.f32 1.0, %v7732_v24  ;;  %v640_v11 = vld [vmem:[%s7220_s8 + $0x98] sm:$0xff] }
 0x118   : > { %v1432_v47 = vsub.f32 %v1100_v9, %v7279_v32  ;;  %v1506_v33 = vmul.f32 %v7302_v49, %v1430_v2  ;;  %6072 = vlog2.f32 %v1101_v30  ;;  %v1088_v21 = vmul.f32 %v1087_v58, %v7679_v25  ;;  %v641_v25 = vld [vmem:[%s7220_s8 + $0xa0] sm:$0xff] }
 0x119   : > { %v6065_v60 = vpop.eup %6064  ;;  %1789 = vmatmul.mubr.bf16.gmra.mxu0 %v1553_v55  ;;  %vm7752_vm0 = vcmp.lt.f32.partialorder %v1116_v7, 0.0004427343  ;;  %v1132_v54 = vadd.f32 1.0, %v1131_v48  ;;  %v1134_v31 = vand.u32 2147483647, %v7708_v50  ;;  %6074 = vlog2.f32 %v1119_v52 }
 0x11a   : > { %v6067_v1 = vpop.eup %6066  ;;  %v1508_v41 = vmul.f32 %v7302_v49, %v1432_v47  ;;  %v1067_v14 = vmul.f32 0.6931472, %v6065_v60  ;;  %v7759_v8 = vunpack.c.h.bf16 %v639_v34  ;;  %v1115_v30 = vmul.f32 %v1114_v19, %v7706_v51 }
 0x11b   : > { %v1085_v2 = vmul.f32 0.6931472, %v6067_v1  ;;  %v1104_v58 = vmul.f32 -0.5, %v7722_v40  ;;  %v1107_v7 = vand.u32 2147483647, %v7722_v40  ;;  %v7766_v9 = vunpack.c.h.bf16 %v640_v11 }
 0x11c   : > { %10091 = vst [vmem:[#allocation41_spill] sm:$0xff] %v7759_v8  ;;  %v1556_v55 = vpack.c.bf16 %v1508_v41, %v1506_v33  ;;  %v1073_v48 = vsel %vm7736_vm14, %v1070_v62, %v1067_v14  ;;  %v1146_v35 = vadd.f32 1.0, %v7759_v8  ;;  %v1122_v60 = vmul.f32 -0.5, %v7732_v24 }
 0x11d   : > { %10092 = vst [vmem:[#allocation42_spill] sm:$0xff] %v7766_v9  ;;  %v1091_v47 = vsel %vm7743_vm15, %v1088_v21, %v1085_v2  ;;  %v1429_v52 = vsub.f32 %v1073_v48, %v7274_v29  ;;  %v1149_v19 = vmul.f32 -0.5, %v7759_v8  ;;  %v1133_v33 = vmul.f32 %v1132_v54, %v7708_v50 }
 0x11e   : > { %1796 = vmatprep.mubr.bf16.mxu0 %v1556_v55  ;;  %v1431_v1 = vsub.f32 %v1091_v47, %v7274_v29  ;;  %6076 = vlog2.f32 %v1146_v35  ;;  %v1164_v62 = vadd.f32 1.0, %v7766_v9  ;;  %vm7778_vm1 = vcmp.lt.f32.partialorder %v1134_v31, 0.0004427343 }
 0x11f   : > { %v6069_v27 = vpop.eup %6068  ;;  %v1505_v41 = vmul.f32 %v7285_v37, %v1429_v52  ;;  %v1105_v21 = vadd.f32 1.0, %v1104_v58  ;;  %vm7782_vm2 = vcmp.lt.f32.partialorder %v1107_v7, 0.0004427343  ;;  %v1125_v35 = vand.u32 2147483647, %v7732_v24 }
 0x120   : > { %v6071_v2 = vpop.eup %6070  ;;  %v1507_v55 = vmul.f32 %v7285_v37, %v1431_v1  ;;  %v1112_v54 = vmul.f32 0.6931472, %v6069_v27  ;;  %6078 = vlog2.f32 %v1164_v62  ;;  %v1123_v47 = vadd.f32 1.0, %v1122_v60 }
 0x121   : > { %v1130_v48 = vmul.f32 0.6931472, %v6071_v2  ;;  %v1150_v52 = vadd.f32 1.0, %v1149_v19  ;;  %v1152_v31 = vand.u32 2147483647, %v7759_v8  ;;  %v7791_v7 = vunpack.c.l.bf16 %v639_v34 }
 0x122   : > { %v1555_v50 = vpack.c.bf16 %v1507_v55, %v1505_v41  ;;  %v1118_v58 = vsel %vm7752_vm0, %v1115_v30, %v1112_v54  ;;  %v7793_v51 = vunpack.c.l.bf16 %v640_v11  ;;  %v1167_v62 = vmul.f32 -0.5, %v7766_v9  ;;  %v642_v54 = vld [vmem:[%s7220_s8 + $0xa8] sm:$0xff] }
 0x123   : > { %10097 = vst [vmem:[#allocation43_spill] sm:$0xff] %v7791_v7  ;;  %v1136_v1 = vsel %vm7778_vm1, %v1133_v33, %v1130_v48  ;;  %v1434_v27 = vsub.f32 %v1118_v58, %v7279_v32  ;;  %v1170_v60 = vand.u32 2147483647, %v7766_v9  ;;  %v1106_v26 = vmul.f32 %v1105_v21, %v7722_v40 }
 0x124   : > { %10098 = vst [vmem:[#allocation44_spill] sm:$0xff] %v7793_v51  ;;  %1797 = vmatmul.mubr.bf16.gmra.mxu0 %v1555_v50  ;;  %v1436_v19 = vsub.f32 %v1136_v1, %v7279_v32  ;;  %vm7803_vm3 = vcmp.lt.f32.partialorder %v1125_v35, 0.0004427343  ;;  %v1137_v11 = vadd.f32 1.0, %v7791_v7  ;;  %v1124_v41 = vmul.f32 %v1123_v47, %v7732_v24 }
 0x125   : > { %v6073_v30 = vpop.eup %6072  ;;  %v1510_v33 = vmul.f32 %v7302_v49, %v1434_v27  ;;  %v1155_v63 = vadd.f32 1.0, %v7793_v51  ;;  %v7811_v2 = vunpack.c.h.bf16 %v641_v25  ;;  %vm7814_vm4 = vcmp.lt.f32.partialorder %v1152_v31, 0.0004427343 }
 0x126   : > { %v1512_v50 = vmul.f32 %v7302_v49, %v1436_v19  ;;  %v1103_v55 = vmul.f32 0.6931472, %v6073_v30  ;;  %6080 = vlog2.f32 %v1137_v11  ;;  %v6075_v35 = vpop.eup %6074  ;;  %v1151_v48 = vmul.f32 %v1150_v52, %v7759_v8 }
 0x127   : > { %10101 = vst [vmem:[#allocation45_spill] sm:$0xff] %v7811_v2  ;;  %v1168_v58 = vadd.f32 1.0, %v1167_v62  ;;  %vm7820_vm5 = vcmp.lt.f32.partialorder %v1170_v60, 0.0004427343  ;;  %6082 = vlog2.f32 %v1155_v63  ;;  %v1121_v19 = vmul.f32 0.6931472, %v6075_v35 }
 0x128   : > { %v1558_v47 = vpack.c.bf16 %v1512_v50, %v1510_v33  ;;  %v1109_v27 = vsel %vm7782_vm2, %v1106_v26, %v1103_v55  ;;  %v1140_v31 = vmul.f32 -0.5, %v7791_v7  ;;  %v1143_v11 = vand.u32 2147483647, %v7791_v7 }
 0x129   : > { %v1433_v30 = vsub.f32 %v1109_v27, %v7274_v29  ;;  %v7829_v24 = vunpack.c.h.bf16 %v642_v54  ;;  %v1182_v52 = vadd.f32 1.0, %v7811_v2  ;;  %v1127_v62 = vsel %vm7803_vm3, %v1124_v41, %v1121_v19 }
 0x12a   : > { %1804 = vmatprep.mubr.bf16.mxu0 %v1558_v47  ;;  %v1158_v60 = vmul.f32 -0.5, %v7793_v51  ;;  %v1161_v14 = vand.u32 2147483647, %v7793_v51  ;;  %v7836_v26 = vunpack.c.l.bf16 %v641_v25  ;;  %v1435_v63 = vsub.f32 %v1127_v62, %v7274_v29 }
 0x12b   : > { %10106 = vst [vmem:[#allocation46_spill] sm:$0xff] %v7829_v24  ;;  %v6077_v33 = vpop.eup %6076  ;;  %v1509_v50 = vmul.f32 %v7285_v37, %v1433_v30  ;;  %6084 = vlog2.f32 %v1182_v52  ;;  %v1200_v55 = vadd.f32 1.0, %v7829_v24  ;;  %v1169_v47 = vmul.f32 %v1168_v58, %v7766_v9 }
 0x12c   : > { %v1148_v35 = vmul.f32 0.6931472, %v6077_v33  ;;  %v1141_v27 = vadd.f32 1.0, %v1140_v31  ;;  %v1185_v34 = vmul.f32 -0.5, %v7811_v2  ;;  %v1511_v19 = vmul.f32 %v7285_v37, %v1435_v63 }
 0x12d   : > { %v6079_v41 = vpop.eup %6078  ;;  %vm7844_vm6 = vcmp.lt.f32.partialorder %v1143_v11, 0.0004427343  ;;  %6086 = vlog2.f32 %v1200_v55  ;;  %v7848_v30 = vunpack.c.l.bf16 %v642_v54  ;;  %v1159_v58 = vadd.f32 1.0, %v1158_v60  ;;  %v643_v60 = vld [vmem:[%s7220_s8 + $0xb0] sm:$0xff] }
 0x12e   : > { %v1154_v52 = vsel %vm7814_vm4, %v1151_v48, %v1148_v35  ;;  %v1166_v62 = vmul.f32 0.6931472, %v6079_v41  ;;  %v1188_v31 = vand.u32 2147483647, %v7811_v2  ;;  %v1557_v33 = vpack.c.bf16 %v1511_v19, %v1509_v50  ;;  %v644_v35 = vld [vmem:[%s7220_s8 + $0xb8] sm:$0xff] }
 0x12f   : > { %10109 = vst [vmem:[#allocation47_spill] sm:$0xff] %v7848_v30  ;;  %v1438_v9 = vsub.f32 %v1154_v52, %v7279_v32  ;;  %vm7854_vm7 = vcmp.lt.f32.partialorder %v1161_v14, 0.0004427343  ;;  %v1173_v11 = vadd.f32 1.0, %v7836_v26  ;;  %v1142_v55 = vmul.f32 %v1141_v27, %v7791_v7 }
 0x130   : > { %v1172_v54 = vsel %vm7820_vm5, %v1169_v47, %v1166_v62  ;;  %v1186_v21 = vadd.f32 1.0, %v1185_v34  ;;  %v1203_v48 = vmul.f32 -0.5, %v7829_v24  ;;  %1805 = vmatmul.mubr.bf16.gmra.mxu0 %v1557_v33  ;;  %v1191_v41 = vadd.f32 1.0, %v7848_v30 }
 0x131   : > { %v1440_v50 = vsub.f32 %v1172_v54, %v7279_v32  ;;  %v1514_v14 = vmul.f32 %v7302_v49, %v1438_v9  ;;  %6088 = vlog2.f32 %v1173_v11  ;;  %v1160_v19 = vmul.f32 %v1159_v58, %v7793_v51 }
 0x132   : > { %vm7869_vm8 = vcmp.lt.f32.partialorder %v1188_v31, 0.0004427343  ;;  %v1206_v47 = vand.u32 2147483647, %v7829_v24  ;;  %v1176_v27 = vmul.f32 -0.5, %v7836_v26  ;;  %6090 = vlog2.f32 %v1191_v41 }
 0x133   : > { %v6081_v34 = vpop.eup %6080  ;;  %v1516_v52 = vmul.f32 %v7302_v49, %v1440_v50  ;;  %v7876_v62 = vunpack.c.h.bf16 %v643_v60  ;;  %v7878_v9 = vunpack.c.h.bf16 %v644_v35  ;;  %v1204_v54 = vadd.f32 1.0, %v1203_v48 }
 0x134   : > { %v6083_v33 = vpop.eup %6082  ;;  %v1139_v11 = vmul.f32 0.6931472, %v6081_v34  ;;  %v1179_v58 = vand.u32 2147483647, %v7836_v26  ;;  %v1187_v8 = vmul.f32 %v1186_v21, %v7811_v2  ;;  %vm7885_vm9 = vcmp.lt.f32.partialorder %v1206_v47, 0.0004427343 }
 0x135   : > { %10114 = vst [vmem:[#allocation48_spill] sm:$0xff] %v7876_v62  ;;  %10115 = vst [vmem:[#allocation49_spill] sm:$0xff] %v7878_v9  ;;  %v1560_v31 = vpack.c.bf16 %v1516_v52, %v1514_v14  ;;  %v1157_v51 = vmul.f32 0.6931472, %v6083_v33  ;;  %v1218_v7 = vadd.f32 1.0, %v7876_v62  ;;  %v1177_v41 = vadd.f32 1.0, %v1176_v27 }
 0x136   : > { %v1145_v40 = vsel %vm7844_vm6, %v1142_v55, %v1139_v11  ;;  %v1236_v12 = vadd.f32 1.0, %v7878_v9  ;;  %v1194_v21 = vmul.f32 -0.5, %v7848_v30  ;;  %v1205_v55 = vmul.f32 %v1204_v54, %v7829_v24 }
 0x137   : > { %1812 = vmatprep.mubr.bf16.mxu0 %v1560_v31  ;;  %v1163_v48 = vsel %vm7854_vm7, %v1160_v19, %v1157_v51  ;;  %v1437_v14 = vsub.f32 %v1145_v40, %v7274_v29  ;;  %6092 = vlog2.f32 %v1218_v7  ;;  %vm7896_vm10 = vcmp.lt.f32.partialorder %v1179_v58, 0.0004427343 }
 0x138   : > { %v6085_v34 = vpop.eup %6084  ;;  %v1439_v25 = vsub.f32 %v1163_v48, %v7274_v29  ;;  %6094 = vlog2.f32 %v1236_v12  ;;  %v1197_v51 = vand.u32 2147483647, %v7848_v30  ;;  %v1221_v40 = vmul.f32 -0.5, %v7876_v62 }
 0x139   : > { %v1513_v27 = vmul.f32 %v7285_v37, %v1437_v14  ;;  %v1184_v52 = vmul.f32 0.6931472, %v6085_v34  ;;  %v1178_v19 = vmul.f32 %v1177_v41, %v7836_v26  ;;  %v7905_v33 = vunpack.c.l.bf16 %v643_v60  ;;  %v645_v41 = vld [vmem:[%s7220_s8 + $0xc0] sm:$0xff] }
 0x13a   : > { %v6087_v63 = vpop.eup %6086  ;;  %v1515_v7 = vmul.f32 %v7285_v37, %v1439_v25  ;;  %v7907_v11 = vunpack.c.l.bf16 %v644_v35  ;;  %v1195_v58 = vadd.f32 1.0, %v1194_v21  ;;  %v1239_v31 = vmul.f32 -0.5, %v7878_v9 }
 0x13b   : > { %10120 = vst [vmem:[#allocation50_spill] sm:$0xff] %v7905_v33  ;;  %v1190_v12 = vsel %vm7869_vm8, %v1187_v8, %v1184_v52  ;;  %v1202_v54 = vmul.f32 0.6931472, %v6087_v63  ;;  %v1224_v34 = vand.u32 2147483647, %v7876_v62  ;;  %v1209_v25 = vadd.f32 1.0, %v7905_v33 }
 0x13c   : > { %10121 = vst [vmem:[#allocation51_spill] sm:$0xff] %v7907_v11  ;;  %v1559_v48 = vpack.c.bf16 %v1515_v7, %v1513_v27  ;;  %v1442_v14 = vsub.f32 %v1190_v12, %v7279_v32  ;;  %vm7917_vm11 = vcmp.lt.f32.partialorder %v1197_v51, 0.0004427343  ;;  %v1222_v1 = vadd.f32 1.0, %v1221_v40  ;;  %v647_v12 = vld [vmem:[%s7220_s8 + $0xd0] sm:$0xff] }
 0x13d   : > { %v1208_v60 = vsel %vm7885_vm9, %v1205_v55, %v1202_v54  ;;  %v1227_v8 = vadd.f32 1.0, %v7907_v11  ;;  %v1242_v63 = vand.u32 2147483647, %v7878_v9  ;;  %6096 = vlog2.f32 %v1209_v25 }
 0x13e   : > { %v6089_v21 = vpop.eup %6088  ;;  %1813 = vmatmul.mubr.bf16.gmra.mxu0 %v1559_v48  ;;  %v1444_v27 = vsub.f32 %v1208_v60, %v7279_v32  ;;  %v1518_v52 = vmul.f32 %v7302_v49, %v1442_v14  ;;  %v1196_v55 = vmul.f32 %v1195_v58, %v7848_v30  ;;  %v1240_v51 = vadd.f32 1.0, %v1239_v31  ;;  %v646_v48 = vld [vmem:[%s7220_s8 + $0xc8] sm:$0xff] }
 0x13f   : > { %v1175_v50 = vmul.f32 0.6931472, %v6089_v21  ;;  %6098 = vlog2.f32 %v1227_v8  ;;  %v6091_v7 = vpop.eup %6090  ;;  %vm7928_vm12 = vcmp.lt.f32.partialorder %v1224_v34, 0.0004427343  ;;  %v1212_v54 = vmul.f32 -0.5, %v7905_v33 }
 0x140   : > { %v1520_v40 = vmul.f32 %v7302_v49, %v1444_v27  ;;  %v7934_v60 = vunpack.c.h.bf16 %v645_v41  ;;  %v1193_v25 = vmul.f32 0.6931472, %v6091_v7  ;;  %v1223_v58 = vmul.f32 %v1222_v1, %v7876_v62 }
 0x141   : > { %v1181_v14 = vsel %vm7896_vm10, %v1178_v19, %v1175_v50  ;;  %v7939_v31 = vunpack.c.l.bf16 %v645_v41  ;;  %vm7942_vm13 = vcmp.lt.f32.partialorder %v1242_v63, 0.0004427343  ;;  %v1230_v27 = vmul.f32 -0.5, %v7907_v11 }
 0x142   : > { %10126 = vst [vmem:[#allocation52_spill] sm:$0xff] %v7934_v60  ;;  %v1562_v8 = vpack.c.bf16 %v1520_v40, %v1518_v52  ;;  %v1441_v21 = vsub.f32 %v1181_v14, %v7274_v29  ;;  %v1199_v24 = vsel %vm7917_vm11, %v1196_v55, %v1193_v25  ;;  %v1241_v47 = vmul.f32 %v1240_v51, %v7878_v9 }
 0x143   : > { %10127 = vst [vmem:[#allocation53_spill] sm:$0xff] %v7939_v31  ;;  %v7950_v19 = vunpack.c.h.bf16 %v646_v48  ;;  %v1254_v1 = vadd.f32 1.0, %v7934_v60  ;;  %v1443_v52 = vsub.f32 %v1199_v24, %v7274_v29  ;;  %v1213_v50 = vadd.f32 1.0, %v1212_v54 }
 0x144   : > { %v6093_v41 = vpop.eup %6092  ;;  %1820 = vmatprep.mubr.bf16.mxu0 %v1562_v8  ;;  %v1517_v63 = vmul.f32 %v7285_v37, %v1441_v21  ;;  %v1215_v7 = vand.u32 2147483647, %v7905_v33  ;;  %v1245_v55 = vadd.f32 1.0, %v7939_v31  ;;  %v1231_v9 = vadd.f32 1.0, %v1230_v27 }
 0x145   : > { %10130 = vst [vmem:[#allocation54_spill] sm:$0xff] %v7950_v19  ;;  %v6095_v40 = vpop.eup %6094  ;;  %v1220_v14 = vmul.f32 0.6931472, %v6093_v41  ;;  %6100 = vlog2.f32 %v1254_v1  ;;  %v1272_v35 = vadd.f32 1.0, %v7950_v19  ;;  %v1519_v51 = vmul.f32 %v7285_v37, %v1443_v52 }
 0x146   : > { %v1238_v25 = vmul.f32 0.6931472, %v6095_v40  ;;  %v7959_v8 = vunpack.c.l.bf16 %v646_v48  ;;  %v1233_v54 = vand.u32 2147483647, %v7907_v11  ;;  %v1257_v62 = vmul.f32 -0.5, %v7934_v60 }
 0x147   : > { %v1226_v24 = vsel %vm7928_vm12, %v1223_v58, %v1220_v14  ;;  %6102 = vlog2.f32 %v1272_v35  ;;  %v1561_v21 = vpack.c.bf16 %v1519_v51, %v1517_v63  ;;  %vm7969_vm14 = vcmp.lt.f32.partialorder %v1215_v7, 0.0004427343 }
 0x148   : > { %10131 = vst [vmem:[#allocation55_spill] sm:$0xff] %v7959_v8  ;;  %v1244_v1 = vsel %vm7942_vm13, %v1241_v47, %v1238_v25  ;;  %v1446_v41 = vsub.f32 %v1226_v24, %v7279_v32  ;;  %6104 = vlog2.f32 %v1245_v55  ;;  %v1214_v27 = vmul.f32 %v1213_v50, %v7905_v33  ;;  %v648_v55 = vld [vmem:[%s7220_s8 + $0xd8] sm:$0xff] }
 0x149   : > { %v1448_v52 = vsub.f32 %v1244_v1, %v7279_v32  ;;  %1821 = vmatmul.mubr.bf16.gmra.mxu0 %v1561_v21  ;;  %v1232_v34 = vmul.f32 %v1231_v9, %v7907_v11  ;;  %v1263_v47 = vadd.f32 1.0, %v7959_v8  ;;  %vm7979_vm15 = vcmp.lt.f32.partialorder %v1233_v54, 0.0004427343 }
 0x14a   : > { %v1522_v58 = vmul.f32 %v7302_v49, %v1446_v41  ;;  %v6097_v63 = vpop.eup %6096  ;;  %v1260_v7 = vand.u32 2147483647, %v7934_v60  ;;  %v1275_v35 = vmul.f32 -0.5, %v7950_v19  ;;  %v1258_v24 = vadd.f32 1.0, %v1257_v62 }
 0x14b   : > { %v1524_v40 = vmul.f32 %v7302_v49, %v1448_v52  ;;  %v1211_v25 = vmul.f32 0.6931472, %v6097_v63  ;;  %6106 = vlog2.f32 %v1263_v47  ;;  %v7986_v50 = vunpack.c.h.bf16 %v647_v12 }
 0x14c   : > { %v6099_v51 = vpop.eup %6098  ;;  %v1278_v1 = vand.u32 2147483647, %v7950_v19  ;;  %v1248_v54 = vmul.f32 -0.5, %v7939_v31  ;;  %v1266_v52 = vmul.f32 -0.5, %v7959_v8  ;;  %v7993_v11 = vunpack.c.h.bf16 %v648_v55 }
 0x14d   : > { %10136 = vst [vmem:[#allocation56_spill] sm:$0xff] %v7986_v50  ;;  %v1564_v9 = vpack.c.bf16 %v1524_v40, %v1522_v58  ;;  %v1229_v21 = vmul.f32 0.6931472, %v6099_v51  ;;  %v1217_v41 = vsel %vm7969_vm14, %v1214_v27, %v1211_v25  ;;  %v1290_v33 = vadd.f32 1.0, %v7986_v50 }
 0x14e   : > { %10137 = vst [vmem:[#allocation57_spill] sm:$0xff] %v7993_v11  ;;  %v1445_v58 = vsub.f32 %v1217_v41, %v7274_v29  ;;  %vm7999_vm0 = vcmp.lt.f32.partialorder %v1260_v7, 0.0004427343  ;;  %v1276_v63 = vadd.f32 1.0, %v1275_v35  ;;  %v1259_v27 = vmul.f32 %v1258_v24, %v7934_v60 }
 0x14f   : > { %1828 = vmatprep.mubr.bf16.mxu0 %v1564_v9  ;;  %v1235_v62 = vsel %vm7979_vm15, %v1232_v34, %v1229_v21  ;;  %6108 = vlog2.f32 %v1290_v33  ;;  %v1308_v40 = vadd.f32 1.0, %v7993_v11  ;;  %vm8007_vm1 = vcmp.lt.f32.partialorder %v1278_v1, 0.0004427343 }
 0x150   : > { %v1447_v48 = vsub.f32 %v1235_v62, %v7274_v29  ;;  %v1521_v51 = vmul.f32 %v7285_v37, %v1445_v58  ;;  %v1249_v34 = vadd.f32 1.0, %v1248_v54  ;;  %v1251_v14 = vand.u32 2147483647, %v7939_v31 }
 0x151   : > { %v1267_v35 = vadd.f32 1.0, %v1266_v52  ;;  %6110 = vlog2.f32 %v1308_v40  ;;  %v8013_v21 = vunpack.c.l.bf16 %v647_v12  ;;  %v1277_v33 = vmul.f32 %v1276_v63, %v7950_v19  ;;  %v649_v19 = vld [vmem:[%s7220_s8 + $0xe0] sm:$0xff] }
 0x152   : > { %v6101_v7 = vpop.eup %6100  ;;  %v1523_v9 = vmul.f32 %v7285_v37, %v1447_v48  ;;  %v1269_v41 = vand.u32 2147483647, %v7959_v8  ;;  %v1293_v1 = vmul.f32 -0.5, %v7986_v50  ;;  %v1311_v54 = vmul.f32 -0.5, %v7993_v11 }
 0x153   : > { %10142 = vst [vmem:[#allocation58_spill] sm:$0xff] %v8013_v21  ;;  %v1256_v24 = vmul.f32 0.6931472, %v6101_v7  ;;  %v8019_v60 = vunpack.c.l.bf16 %v648_v55  ;;  %v1281_v48 = vadd.f32 1.0, %v8013_v21  ;;  %v1250_v63 = vmul.f32 %v1249_v34, %v7939_v31 }
 0x154   : > { %v6103_v62 = vpop.eup %6102  ;;  %v1563_v58 = vpack.c.bf16 %v1523_v9, %v1521_v51  ;;  %vm8025_vm2 = vcmp.lt.f32.partialorder %v1251_v14, 0.0004427343  ;;  %v1268_v55 = vmul.f32 %v1267_v35, %v7959_v8  ;;  %v1296_v34 = vand.u32 2147483647, %v7986_v50  ;;  %v650_v14 = vld [vmem:[%s7220_s8 + $0xe8] sm:$0xff] }
 0x155   : > { %10143 = vst [vmem:[#allocation59_spill] sm:$0xff] %v8019_v60  ;;  %v1262_v12 = vsel %vm7999_vm0, %v1259_v27, %v1256_v24  ;;  %v1274_v52 = vmul.f32 0.6931472, %v6103_v62  ;;  %v6105_v7 = vpop.eup %6104  ;;  %6112 = vlog2.f32 %v1281_v48  ;;  %v1299_v9 = vadd.f32 1.0, %v8019_v60 }
 0x156   : > { %1829 = vmatmul.mubr.bf16.gmra.mxu0 %v1563_v58  ;;  %v1450_v51 = vsub.f32 %v1262_v12, %v7279_v32  ;;  %v1247_v27 = vmul.f32 0.6931472, %v6105_v7  ;;  %v1294_v24 = vadd.f32 1.0, %v1293_v1  ;;  %v1312_v31 = vadd.f32 1.0, %v1311_v54  ;;  %v5930_v54 = vld [vmem:[#allocation10 + $0x50] ss:$8 sps:$4 sm:$0xff]  }
 0x157   : > { %v1280_v47 = vsel %vm8007_vm1, %v1277_v33, %v1274_v52  ;;  %6114 = vlog2.f32 %v1299_v9  ;;  %vm8041_vm3 = vcmp.lt.f32.partialorder %v1269_v41, 0.0004427343  ;;  %v1284_v25 = vmul.f32 -0.5, %v8013_v21 }
 0x158   : > { %v1452_v62 = vsub.f32 %v1280_v47, %v7279_v32  ;;  %v1526_v58 = vmul.f32 %v7302_v49, %v1450_v51  ;;  %v6107_v12 = vpop.eup %6106  ;;  %v1253_v35 = vsel %vm8025_vm2, %v1250_v63, %v1247_v27  ;;  %v8046_v33 = vunpack.c.h.bf16 %v649_v19 }
 0x159   : > { %v1265_v52 = vmul.f32 0.6931472, %v6107_v12  ;;  %v1449_v7 = vsub.f32 %v1253_v35, %v7274_v29  ;;  %v8050_v51 = vunpack.c.h.bf16 %v650_v14  ;;  %vm8052_vm4 = vcmp.lt.f32.partialorder %v1296_v34, 0.0004427343 }
 0x15a   : > { %10148 = vst [vmem:[#allocation60_spill] sm:$0xff] %v8046_v33  ;;  %v1528_v1 = vmul.f32 %v7302_v49, %v1452_v62  ;;  %v1314_v41 = vand.u32 2147483647, %v7993_v11  ;;  %v1302_v63 = vmul.f32 -0.5, %v8019_v60  ;;  %v1326_v40 = vadd.f32 1.0, %v8046_v33 }
 0x15b   : > { %10149 = vst [vmem:[#allocation61_spill] sm:$0xff] %v8050_v51  ;;  %v1271_v47 = vsel %vm8041_vm3, %v1268_v55, %v1265_v52  ;;  %v1295_v27 = vmul.f32 %v1294_v24, %v7986_v50  ;;  %v1313_v62 = vmul.f32 %v1312_v31, %v7993_v11  ;;  %v1525_v35 = vmul.f32 %v7285_v37, %v1449_v7  ;;  %v652_v31 = vld [vmem:[%s7220_s8 + $0xf8] sm:$0xff] }
 0x15c   : > { %v1566_v9 = vpack.c.bf16 %v1528_v1, %v1526_v58  ;;  %v6109_v12 = vpop.eup %6108  ;;  %v1451_v34 = vsub.f32 %v1271_v47, %v7274_v29  ;;  %6116 = vlog2.f32 %v1326_v40  ;;  %v1344_v8 = vadd.f32 1.0, %v8050_v51 }
 0x15d   : > { %v1292_v30 = vmul.f32 0.6931472, %v6109_v12  ;;  %v1285_v2 = vadd.f32 1.0, %v1284_v25  ;;  %v1287_v58 = vand.u32 2147483647, %v8013_v21  ;;  %v8067_v1 = vunpack.c.l.bf16 %v649_v19 }
 0x15e   : > { %1836 = vmatprep.mubr.bf16.mxu1 %v1566_v9  ;;  %v6111_v55 = vpop.eup %6110  ;;  %v1527_v24 = vmul.f32 %v7285_v37, %v1451_v34  ;;  %vm8070_vm5 = vcmp.lt.f32.partialorder %v1314_v41, 0.0004427343  ;;  %v1303_v48 = vadd.f32 1.0, %v1302_v63  ;;  %6118 = vlog2.f32 %v1344_v8  ;;  %v5924_v19 = vld [vmem:[#allocation10 + $0x70] ss:$8 sps:$4 sm:$0xff]  }
 0x15f   : > { %10152 = vst [vmem:[#allocation62_spill] sm:$0xff] %v8067_v1  ;;  %v1298_v52 = vsel %vm8052_vm4, %v1295_v27, %v1292_v30  ;;  %v1310_v7 = vmul.f32 0.6931472, %v6111_v55  ;;  %v1305_v25 = vand.u32 2147483647, %v8019_v60  ;;  %v8077_v40 = vunpack.c.l.bf16 %v650_v14  ;;  %v651_v27 = vld [vmem:[%s7220_s8 + $0xf0] sm:$0xff] }
 0x160   : > { %v1565_v9 = vpack.c.bf16 %v1527_v24, %v1525_v35  ;;  %v1454_v47 = vsub.f32 %v1298_v52, %v7279_v32  ;;  %v1329_v41 = vmul.f32 -0.5, %v8046_v33  ;;  %v1317_v12 = vadd.f32 1.0, %v8067_v1  ;;  %v5929_v63 = vld [vmem:[#allocation10 + $0x64] ss:$8 sps:$4 sm:$0xff]   ;;  %v5927_v52 = vld [vmem:[#allocation10 + $0x60] ss:$8 sps:$4 sm:$0xff]  }
 0x161   : > { %10155 = vst [vmem:[#allocation63_spill] sm:$0xff] %v8077_v40  ;;  %v1316_v8 = vsel %vm8070_vm5, %v1313_v62, %v1310_v7  ;;  %v1286_v30 = vmul.f32 %v1285_v2, %v8013_v21  ;;  %vm8085_vm6 = vcmp.lt.f32.partialorder %v1287_v58, 0.0004427343  ;;  %v1347_v14 = vmul.f32 -0.5, %v8050_v51  ;;  %v5935_v58 = vld [vmem:[#allocation10 + $0x44] ss:$8 sps:$4 sm:$0xff]  }
 0x162   : > { %v6113_v34 = vpop.eup %6112  ;;  %1837 = vmatmul.mubr.bf16.vlgmr.msra.gmra.mxu1 %v1565_v9  ;;  %v1456_v35 = vsub.f32 %v1316_v8, %v7279_v32  ;;  %v1530_v55 = vmul.f32 %v7302_v49, %v1454_v47  ;;  %6120 = vlog2.f32 %v1317_v12  ;;  %v1335_v24 = vadd.f32 1.0, %v8077_v40  ;;  %v5932_v47 = vld [vmem:[#allocation10 + $0x54] ss:$8 sps:$4 sm:$0xff]  }
 0x163   : > { %v1283_v62 = vmul.f32 0.6931472, %v6113_v34  ;;  %v1304_v2 = vmul.f32 %v1303_v48, %v8019_v60  ;;  %vm8096_vm7 = vcmp.lt.f32.partialorder %v1305_v25, 0.0004427343  ;;  %2026 = vmatpush1.bf16.msra.mxu1 %v5924_v19  ;;  %v1330_v50 = vadd.f32 1.0, %v1329_v41 }
 0x164   : > { %v6115_v7 = vpop.eup %6114  ;;  %v1532_v9 = vmul.f32 %v7302_v49, %v1456_v35  ;;  %6122 = vlog2.f32 %v1335_v24  ;;  %v8101_v8 = vunpack.c.h.bf16 %v651_v27  ;;  %2027 = vmatprep.subr.bf16.mxu1 %v5929_v63  ;;  %v1332_v48 = vand.u32 2147483647, %v8046_v33 }
 0x165   : > { %v1289_v12 = vsel %vm8085_vm6, %v1286_v30, %v1283_v62  ;;  %v1301_v34 = vmul.f32 0.6931472, %v6115_v7  ;;  %v1348_v25 = vadd.f32 1.0, %v1347_v14  ;;  %v1320_v11 = vmul.f32 -0.5, %v8067_v1 }
 0x166   : > { %10160 = vst [vmem:[#allocation64_spill] sm:$0xff] %v8101_v8  ;;  %v1568_v21 = vpack.c.bf16 %v1532_v9, %v1530_v55  ;;  %v1453_v19 = vsub.f32 %v1289_v12, %v7274_v29  ;;  %v8108_v60 = vunpack.c.h.bf16 %v652_v31  ;;  %v1350_v63 = vand.u32 2147483647, %v8050_v51 }
 0x167   : > { %v1307_v41 = vsel %vm8096_vm7, %v1304_v2, %v1301_v34  ;;  %v1338_v35 = vmul.f32 -0.5, %v8077_v40  ;;  %v1362_v30 = vadd.f32 1.0, %v8101_v8  ;;  %2028 = vmatpush1.bf16.msra.mxu1 %v5927_v52  ;;  %v1331_v24 = vmul.f32 %v1330_v50, %v8046_v33  ;;  %v5933_v34 = vld [vmem:[#allocation10 + $0x40] ss:$8 sps:$4 sm:$0xff]  }
 0x168   : > { %10161 = vst [vmem:[#allocation65_spill] sm:$0xff] %v8108_v60  ;;  %1844 = vmatprep.mubr.bf16.mxu1 %v1568_v21  ;;  %v1455_v14 = vsub.f32 %v1307_v41, %v7274_v29  ;;  %v1529_v55 = vmul.f32 %v7285_v37, %v1453_v19  ;;  %v1380_v62 = vadd.f32 1.0, %v8108_v60  ;;  %2029 = vmatprep.subr.bf16.mxu1 %v5932_v47  ;;  %vm8119_vm8 = vcmp.lt.f32.partialorder %v1332_v48, 0.0004427343 }
 0x169   : > { %v6117_v2 = vpop.eup %6116  ;;  %v1349_v9 = vmul.f32 %v1348_v25, %v8050_v51  ;;  %6124 = vlog2.f32 %v1362_v30  ;;  %v1321_v12 = vadd.f32 1.0, %v1320_v11  ;;  %vm8125_vm9 = vcmp.lt.f32.partialorder %v1350_v63, 0.0004427343  ;;  %v5938_v11 = vld [vmem:[#allocation10 + $0x34] ss:$8 sps:$4 sm:$0xff]  }
 0x16a   : > { %v1531_v21 = vmul.f32 %v7285_v37, %v1455_v14  ;;  %v1328_v52 = vmul.f32 0.6931472, %v6117_v2  ;;  %6126 = vlog2.f32 %v1380_v62  ;;  %v1323_v47 = vand.u32 2147483647, %v8067_v1 }
 0x16b   : > { %v6119_v19 = vpop.eup %6118  ;;  %v1339_v48 = vadd.f32 1.0, %v1338_v35  ;;  %v8130_v41 = vunpack.c.l.bf16 %v651_v27  ;;  %2030 = vmatpush1.bf16.msra.mxu1 %v5930_v54  ;;  %v8134_v14 = vunpack.c.l.bf16 %v652_v31  ;;  %v1341_v62 = vand.u32 2147483647, %v8077_v40 }
 0x16c   : > { %v1567_v33 = vpack.c.bf16 %v1531_v21, %v1529_v55  ;;  %v1334_v25 = vsel %vm8119_vm8, %v1331_v24, %v1328_v52  ;;  %v1346_v30 = vmul.f32 0.6931472, %v6119_v19  ;;  %2031 = vmatprep.subr.bf16.mxu1 %v5935_v58  ;;  %v1365_v2 = vmul.f32 -0.5, %v8101_v8 }
 0x16d   : > { %10166 = vst [vmem:[#allocation66_spill] sm:$0xff] %v8130_v41  ;;  %10167 = vst [vmem:[#allocation67_spill] sm:$0xff] %v8134_v14  ;;  %v1458_v63 = vsub.f32 %v1334_v25, %v7279_v32  ;;  %v1353_v35 = vadd.f32 1.0, %v8130_v41  ;;  %v1322_v54 = vmul.f32 %v1321_v12, %v8067_v1  ;;  %v1383_v55 = vmul.f32 -0.5, %v8108_v60  ;;  %v5941_v12 = vld [vmem:[#allocation10 + $0x24] ss:$8 sps:$4 sm:$0xff]  }
 0x16e   : > { %1845 = vmatmul.mubr.bf16.gmra.mxu1 %v1567_v33  ;;  %v1352_v27 = vsel %vm8125_vm9, %v1349_v9, %v1346_v30  ;;  %v1371_v31 = vadd.f32 1.0, %v8134_v14  ;;  %vm8147_vm10 = vcmp.lt.f32.partialorder %v1323_v47, 0.0004427343  ;;  %v5936_v33 = vld [vmem:[#allocation10 + $0x30] ss:$8 sps:$4 sm:$0xff]   ;;  %v1340_v9 = vmul.f32 %v1339_v48, %v8077_v40 }
 0x16f   : > { %v6121_v24 = vpop.eup %6120  ;;  %v1460_v58 = vsub.f32 %v1352_v27, %v7279_v32  ;;  %v1534_v7 = vmul.f32 %v7302_v49, %v1458_v63  ;;  %6128 = vlog2.f32 %v1353_v35  ;;  %2032 = vmatpush1.bf16.msra.mxu1 %v5933_v34  ;;  %vm8153_vm11 = vcmp.lt.f32.partialorder %v1341_v62, 0.0004427343  ;;  %v5939_v62 = vld [vmem:[#allocation10 + $0x20] ss:$8 sps:$4 sm:$0xff]  }
 0x170   : > { %v1319_v52 = vmul.f32 0.6931472, %v6121_v24  ;;  %6130 = vlog2.f32 %v1371_v31  ;;  %2033 = vmatprep.subr.bf16.mxu1 %v5938_v11  ;;  %v1366_v47 = vadd.f32 1.0, %v1365_v2  ;;  %v1368_v34 = vand.u32 2147483647, %v8101_v8 }
 0x171   : > { %v6123_v19 = vpop.eup %6122  ;;  %v1536_v50 = vmul.f32 %v7302_v49, %v1460_v58  ;;  %v1384_v35 = vadd.f32 1.0, %v1383_v55  ;;  %v1386_v11 = vand.u32 2147483647, %v8108_v60  ;;  %v1356_v31 = vmul.f32 -0.5, %v8130_v41 }
 0x172   : > { %v1325_v30 = vsel %vm8147_vm10, %v1322_v54, %v1319_v52  ;;  %v1337_v63 = vmul.f32 0.6931472, %v6123_v19  ;;  %v1374_v2 = vmul.f32 -0.5, %v8134_v14  ;;  %v5944_v54 = vld [vmem:[#allocation10 + $0x14] ss:$8 sps:$4 sm:$0xff]  }
 0x173   : > { %v1570_v27 = vpack.c.bf16 %v1536_v50, %v1534_v7  ;;  %v1457_v48 = vsub.f32 %v1325_v30, %v7274_v29  ;;  %2034 = vmatpush1.bf16.msra.mxu1 %v5936_v33  ;;  %v1367_v7 = vmul.f32 %v1366_v47, %v8101_v8  ;;  %vm8169_vm12 = vcmp.lt.f32.partialorder %v1368_v34, 0.0004427343  ;;  %v5942_v19 = vld [vmem:[#allocation10 + $0x10] ss:$8 sps:$4 sm:$0xff]  }
 0x174   : > { %v1343_v24 = vsel %vm8153_vm11, %v1340_v9, %v1337_v63  ;;  %2035 = vmatprep.subr.bf16.mxu1 %v5941_v12  ;;  %v1385_v33 = vmul.f32 %v1384_v35, %v8108_v60  ;;  %vm1387_vm13 = vcmp.lt.f32.partialorder %v1386_v11, 0.0004427343  ;;  %v1357_v25 = vadd.f32 1.0, %v1356_v31  ;;  %v5947_v35 = vld [vmem:[#allocation10 + $0x4] ss:$8 sps:$4 sm:$0xff]  }
 0x175   : > { %1852 = vmatprep.mubr.bf16.mxu1 %v1570_v27  ;;  %v1459_v58 = vsub.f32 %v1343_v24, %v7274_v29  ;;  %v1533_v55 = vmul.f32 %v7285_v37, %v1457_v48  ;;  %v1359_v63 = vand.u32 2147483647, %v8130_v41  ;;  %v1375_v27 = vadd.f32 1.0, %v1374_v2 }
 0x176   : > { %v6125_v21 = vpop.eup %6124  ;;  %v1377_v48 = vand.u32 2147483647, %v8134_v14  ;;  %v1358_v31 = vmul.f32 %v1357_v25, %v8130_v41 }
 0x177   : > { %v6127_v9 = vpop.eup %6126  ;;  %v1535_v50 = vmul.f32 %v7285_v37, %v1459_v58  ;;  %v1364_v12 = vmul.f32 0.6931472, %v6125_v21  ;;  %2036 = vmatpush1.bf16.msra.mxu1 %v5939_v62  ;;  %vm1360_vm14 = vcmp.lt.f32.partialorder %v1359_v63, 0.0004427343  ;;  %v1376_v2 = vmul.f32 %v1375_v27, %v8134_v14 }
 0x178   : > { %v1382_v30 = vmul.f32 0.6931472, %v6127_v9  ;;  %2037 = vmatprep.subr.bf16.mxu1 %v5944_v54  ;;  %v5945_v54 = vld [vmem:[#allocation10] ss:$8 sps:$4 sm:$0xff]   ;;  %vm1378_vm15 = vcmp.lt.f32.partialorder %v1377_v48, 0.0004427343 }
 0x179   : > { %v1569_v47 = vpack.c.bf16 %v1535_v50, %v1533_v55  ;;  %v1370_v34 = vsel %vm8169_vm12, %v1367_v7, %v1364_v12 }
 0x17a   : > { %v1388_v24 = vsel %vm1387_vm13, %v1385_v33, %v1382_v30  ;;  %v1462_v8 = vsub.f32 %v1370_v34, %v7279_v32 }
 0x17b   : > { %1853 = vmatmul.mubr.bf16.gmra.mxu1 %v1569_v47  ;;  %v1464_v11 = vsub.f32 %v1388_v24, %v7279_v32  ;;  %v8193_v47 = vld [vmem:[%s9849_s5] ss:$0 sm:$0xff] }
 0x17c   : > { %v6129_v62 = vpop.eup %6128  ;;  %v1538_v58 = vmul.f32 %v7302_v49, %v1462_v8  ;;  %2038 = vmatpush1.bf16.msra.mxu1 %v5942_v19 }
 0x17d   : > { %v6131_v55 = vpop.eup %6130  ;;  %v1540_v7 = vmul.f32 %v7302_v49, %v1464_v11  ;;  %v1355_v21 = vmul.f32 0.6931472, %v6129_v62  ;;  %2039 = vmatprep.subr.bf16.mxu1 %v5947_v35  ;;  %v9906_v49 = vmov 0  }
 0x17e   : > { %v1373_v52 = vmul.f32 0.6931472, %v6131_v55 }
 0x17f   : > { %v1572_v33 = vpack.c.bf16 %v1540_v7, %v1538_v58  ;;  %v1361_v9 = vsel %vm1360_vm14, %v1358_v31, %v1355_v21 }
 0x180   : > { %v1379_v32 = vsel %vm1378_vm15, %v1376_v2, %v1373_v52  ;;  %v1461_v50 = vsub.f32 %v1361_v9, %v7274_v29  ;;  %2040 = vmatpush1.bf16.msra.mxu1 %v5945_v54 }
 0x181   : > { %1860 = vmatprep.mubr.bf16.mxu1 %v1572_v33  ;;  %v1463_v8 = vsub.f32 %v1379_v32, %v7274_v29 }
 0x182   : > { %v1537_v12 = vmul.f32 %v7285_v37, %v1461_v50 }
 0x183   : > { %v1539_v19 = vmul.f32 %v7285_v37, %v1463_v8 }
 0x185   : > { %v1571_v25 = vpack.c.bf16 %v1539_v19, %v1537_v12 }
 0x187   : > { %1861 = vmatmul.mubr.bf16.gmra.mxu1 %v1571_v25 }
 0x188   : > { %2057 = vmatprep.mubr.bf16.mxu1 %v9906_v49 }
 0x191   : > { %v5601_v30 = vpop.f32.mrf.mxu0 }
 0x193   : > { %v5602_v63 = vpop.f32.mrf.mxu0 }
 0x194   : > { %v5603_v27 = vadd.f32 %v5602_v63, %v5601_v30 }
 0x195   : > { %v5604_v34 = vpop.f32.mrf.mxu0 }
 0x196   : > { %v1743_v29 = vadd.f32 %v5603_v27, %v8193_v47 }
 0x197   : > { %v5605_v48 = vpop.f32.mrf.mxu0 }
 0x198   : > { %v5606_v35 = vadd.f32 %v5605_v48, %v5604_v34  ;;  %v1869_v31 = vmax.f32 %v1743_v29, 0.0 }
 0x199   : > { %v5607_v24 = vpop.f32.mrf.mxu0 }
 0x19a   : > { %v1746_v37 = vadd.f32 %v5606_v35, %v8193_v47 }
 0x19b   : > { %v5608_v11 = vpop.f32.mrf.mxu0 }
 0x19c   : > { %v1870_v62 = vmax.f32 %v1746_v37, 0.0  ;;  %v5609_v58 = vadd.f32 %v5608_v11, %v5607_v24 }
 0x19d   : > { %v5610_v2 = vpop.f32.mrf.mxu0 }
 0x19e   : > { %v1901_v54 = vpack.c.bf16 %v1870_v62, %v1869_v31  ;;  %v1751_v7 = vadd.f32 %v5609_v58, %v8193_v47 }
 0x19f   : > { %v5611_v55 = vpop.f32.mrf.mxu0 }
 0x1a0   : > { %v5612_v21 = vadd.f32 %v5611_v55, %v5610_v2  ;;  %2058 = vmatmul.mubr.bf16.vlgmr.msra.gmra.mxu1 %v1901_v54  ;;  %v1871_v33 = vmax.f32 %v1751_v7, 0.0 }
 0x1a1   : > { %2067 = vmatprep.mubr.bf16.mxu1 %v9906_v49 }
 0x1a2   : > { %v1754_v52 = vadd.f32 %v5612_v21, %v8193_v47 }
 0x1a4   : > { %v1872_v9 = vmax.f32 %v1754_v52, 0.0 }
 0x1a5   : > { %v5613_v32 = vpop.f32.mrf.mxu0 }
 0x1a6   : > { %v1902_v50 = vpack.c.bf16 %v1872_v9, %v1871_v33 }
 0x1a7   : > { %v5614_v8 = vpop.f32.mrf.mxu0 }
 0x1a8   : > { %v5615_v12 = vadd.f32 %v5614_v8, %v5613_v32  ;;  %2068 = vmatmul.mubr.bf16.gmra.mxu1 %v1902_v50 }
 0x1a9   : > { %v5616_v19 = vpop.f32.mrf.mxu0  ;;  %2077 = vmatprep.mubr.bf16.mxu1 %v9906_v49 }
 0x1aa   : > { %v1759_v30 = vadd.f32 %v5615_v12, %v8193_v47 }
 0x1ab   : > { %v5617_v25 = vpop.f32.mrf.mxu0 }
 0x1ac   : > { %v5618_v63 = vadd.f32 %v5617_v25, %v5616_v19  ;;  %v1873_v34 = vmax.f32 %v1759_v30, 0.0 }
 0x1ae   : > { %v1762_v27 = vadd.f32 %v5618_v63, %v8193_v47 }
 0x1b0   : > { %v1874_v48 = vmax.f32 %v1762_v27, 0.0 }
 0x1b2   : > { %v1903_v29 = vpack.c.bf16 %v1874_v48, %v1873_v34 }
 0x1b4   : > { %2078 = vmatmul.mubr.bf16.gmra.mxu1 %v1903_v29  ;;  %v5619_v35 = vpop.f32.mrf.mxu0 }
 0x1b5   : > { %2087 = vmatprep.mubr.bf16.mxu1 %v9906_v49 }
 0x1b6   : > { %v5620_v24 = vpop.f32.mrf.mxu0 }
 0x1b7   : > { %v5621_v37 = vadd.f32 %v5620_v24, %v5619_v35 }
 0x1b8   : > { %v5622_v11 = vpop.f32.mrf.mxu0 }
 0x1b9   : > { %v1767_v62 = vadd.f32 %v5621_v37, %v8193_v47 }
 0x1ba   : > { %v5623_v31 = vpop.f32.mrf.mxu0 }
 0x1bb   : > { %v5624_v58 = vadd.f32 %v5623_v31, %v5622_v11  ;;  %v1875_v54 = vmax.f32 %v1767_v62, 0.0  ;;  %v5948_v62 = vld [vmem:[#allocation11 + $0x38] sm:$0xff]  }
 0x1bc   : > { %5721 = vmatprep.subr.bf16.mxu0 %v5948_v62 }
 0x1bd   : > { %v1770_v2 = vadd.f32 %v5624_v58, %v8193_v47  ;;  %v5949_v58 = vld [vmem:[#allocation11 + $0x30] sm:$0xff]   ;;  %5722 = vmatpush3.bf16.msra.mxu0 %v5948_v62 }
 0x1be   : > { %5723 = vmatprep.subr.bf16.mxu0 %v5949_v58 }
 0x1bf   : > { %v1876_v55 = vmax.f32 %v1770_v2, 0.0  ;;  %v5625_v7 = vpop.f32.mrf.mxu0 }
 0x1c1   : > { %v5626_v21 = vpop.f32.mrf.mxu0  ;;  %v1904_v52 = vpack.c.bf16 %v1876_v55, %v1875_v54  ;;  %5724 = vmatpush3.bf16.msra.mxu0 %v5949_v58 }
 0x1c2   : > { %v5627_v33 = vadd.f32 %v5626_v21, %v5625_v7  ;;  %v5950_v7 = vld [vmem:[#allocation11 + $0x28] sm:$0xff]  }
 0x1c3   : > { %v5628_v9 = vpop.f32.mrf.mxu0  ;;  %2088 = vmatmul.mubr.bf16.gmra.mxu1 %v1904_v52  ;;  %5725 = vmatprep.subr.bf16.mxu0 %v5950_v7 }
 0x1c4   : > { %2097 = vmatprep.mubr.bf16.mxu1 %v9906_v49  ;;  %v1775_v50 = vadd.f32 %v5627_v33, %v8193_v47 }
 0x1c5   : > { %v5629_v32 = vpop.f32.mrf.mxu0  ;;  %5726 = vmatpush3.bf16.msra.mxu0 %v5950_v7 }
 0x1c6   : > { %v5630_v8 = vadd.f32 %v5629_v32, %v5628_v9  ;;  %v1877_v19 = vmax.f32 %v1775_v50, 0.0  ;;  %v5951_v9 = vld [vmem:[#allocation11 + $0x20] sm:$0xff]  }
 0x1c7   : > { %5727 = vmatprep.subr.bf16.mxu0 %v5951_v9 }
 0x1c8   : > { %v1778_v12 = vadd.f32 %v5630_v8, %v8193_v47 }
 0x1c9   : > { %5728 = vmatpush3.bf16.msra.mxu0 %v5951_v9 }
 0x1ca   : > { %v1878_v25 = vmax.f32 %v1778_v12, 0.0 }
 0x1cb   : > { %v5631_v30 = vpop.f32.mrf.mxu0 }
 0x1cc   : > { %v1905_v63 = vpack.c.bf16 %v1878_v25, %v1877_v19 }
 0x1cd   : > { %v5632_v27 = vpop.f32.mrf.mxu0 }
 0x1ce   : > { %v5633_v34 = vadd.f32 %v5632_v27, %v5631_v30  ;;  %2098 = vmatmul.mubr.bf16.gmra.mxu1 %v1905_v63 }
 0x1cf   : > { %v5634_v48 = vpop.f32.mrf.mxu0  ;;  %2107 = vmatprep.mubr.bf16.mxu1 %v9906_v49 }
 0x1d0   : > { %v1783_v35 = vadd.f32 %v5633_v34, %v8193_v47 }
 0x1d1   : > { %v5635_v29 = vpop.f32.mrf.mxu0 }
 0x1d2   : > { %v5636_v24 = vadd.f32 %v5635_v29, %v5634_v48  ;;  %v1879_v11 = vmax.f32 %v1783_v35, 0.0 }
 0x1d4   : > { %v1786_v37 = vadd.f32 %v5636_v24, %v8193_v47 }
 0x1d6   : > { %v1880_v31 = vmax.f32 %v1786_v37, 0.0 }
 0x1d8   : > { %v1906_v2 = vpack.c.bf16 %v1880_v31, %v1879_v11 }
 0x1d9   : > { %v5637_v54 = vpop.f32.mrf.mxu0 }
 0x1da   : > { %2108 = vmatmul.mubr.bf16.gmra.mxu1 %v1906_v2 }
 0x1db   : > { %v5638_v55 = vpop.f32.mrf.mxu0  ;;  %2117 = vmatprep.mubr.bf16.mxu1 %v9906_v49 }
 0x1dc   : > { %v5639_v21 = vadd.f32 %v5638_v55, %v5637_v54 }
 0x1dd   : > { %v5640_v52 = vpop.f32.mrf.mxu0 }
 0x1de   : > { %v1791_v32 = vadd.f32 %v5639_v21, %v8193_v47 }
 0x1df   : > { %v5641_v33 = vpop.f32.mrf.mxu0 }
 0x1e0   : > { %v5642_v50 = vadd.f32 %v5641_v33, %v5640_v52  ;;  %v1881_v12 = vmax.f32 %v1791_v32, 0.0 }
 0x1e2   : > { %v1794_v8 = vadd.f32 %v5642_v50, %v8193_v47 }
 0x1e4   : > { %v1882_v19 = vmax.f32 %v1794_v8, 0.0  ;;  %v5643_v25 = vpop.f32.mrf.mxu0  ;;  %v5952_v8 = vld [vmem:[#allocation11 + $0x18] sm:$0xff]  }
 0x1e5   : > { %5729 = vmatprep.subr.bf16.mxu0 %v5952_v8 }
 0x1e6   : > { %v5644_v30 = vpop.f32.mrf.mxu0  ;;  %v1907_v63 = vpack.c.bf16 %v1882_v19, %v1881_v12  ;;  %5730 = vmatpush3.bf16.msra.mxu0 %v5952_v8 }
 0x1e7   : > { %v5645_v27 = vadd.f32 %v5644_v30, %v5643_v25 }
 0x1e8   : > { %v5646_v34 = vpop.f32.mrf.mxu0  ;;  %2118 = vmatmul.mubr.bf16.gmra.mxu1 %v1907_v63 }
 0x1e9   : > { %2127 = vmatprep.mubr.bf16.mxu1 %v9906_v49  ;;  %v1799_v29 = vadd.f32 %v5645_v27, %v8193_v47 }
 0x1ea   : > { %v5647_v48 = vpop.f32.mrf.mxu0 }
 0x1eb   : > { %v5648_v35 = vadd.f32 %v5647_v48, %v5646_v34  ;;  %v1883_v37 = vmax.f32 %v1799_v29, 0.0 }
 0x1ed   : > { %v1802_v24 = vadd.f32 %v5648_v35, %v8193_v47 }
 0x1ef   : > { %v1884_v11 = vmax.f32 %v1802_v24, 0.0 }
 0x1f0   : > { %v5649_v31 = vpop.f32.mrf.mxu0 }
 0x1f1   : > { %v1908_v62 = vpack.c.bf16 %v1884_v11, %v1883_v37 }
 0x1f2   : > { %v5650_v58 = vpop.f32.mrf.mxu0 }
 0x1f3   : > { %2128 = vmatmul.mubr.bf16.gmra.mxu1 %v1908_v62  ;;  %v5651_v2 = vadd.f32 %v5650_v58, %v5649_v31  ;;  %v5953_v62 = vld [vmem:[#allocation11 + $0x10] sm:$0xff]  }
 0x1f4   : > { %2137 = vmatprep.mubr.bf16.mxu1 %v9906_v49  ;;  %v5652_v54 = vpop.f32.mrf.mxu0  ;;  %5731 = vmatprep.subr.bf16.mxu0 %v5953_v62 }
 0x1f5   : > { %v1807_v7 = vadd.f32 %v5651_v2, %v8193_v47  ;;  %5732 = vmatpush3.bf16.msra.mxu0 %v5953_v62 }
 0x1f6   : > { %v5653_v55 = vpop.f32.mrf.mxu0 }
 0x1f7   : > { %v5654_v21 = vadd.f32 %v5653_v55, %v5652_v54  ;;  %v1885_v33 = vmax.f32 %v1807_v7, 0.0 }
 0x1f9   : > { %v1810_v52 = vadd.f32 %v5654_v21, %v8193_v47 }
 0x1fb   : > { %v1886_v9 = vmax.f32 %v1810_v52, 0.0 }
 0x1fd   : > { %v1909_v50 = vpack.c.bf16 %v1886_v9, %v1885_v33 }
 0x1fe   : > { %v5655_v32 = vpop.f32.mrf.mxu0 }
 0x1ff   : > { %2138 = vmatmul.mubr.bf16.gmra.mxu1 %v1909_v50 }
 0x200   : > { %v5656_v12 = vpop.f32.mrf.mxu0  ;;  %2147 = vmatprep.mubr.bf16.mxu1 %v9906_v49 }
 0x201   : > { %v5657_v19 = vadd.f32 %v5656_v12, %v5655_v32 }
 0x202   : > { %v5658_v25 = vpop.f32.mrf.mxu0 }
 0x203   : > { %v1815_v63 = vadd.f32 %v5657_v19, %v8193_v47 }
 0x204   : > { %v5659_v30 = vpop.f32.mrf.mxu0 }
 0x205   : > { %v5660_v27 = vadd.f32 %v5659_v30, %v5658_v25  ;;  %v1887_v48 = vmax.f32 %v1815_v63, 0.0 }
 0x207   : > { %v1818_v34 = vadd.f32 %v5660_v27, %v8193_v47 }
 0x209   : > { %v1888_v29 = vmax.f32 %v1818_v34, 0.0  ;;  %v5661_v35 = vpop.f32.mrf.mxu0 }
 0x20b   : > { %v1910_v24 = vpack.c.bf16 %v1888_v29, %v1887_v48  ;;  %v5662_v37 = vpop.f32.mrf.mxu0  ;;  %v5954_v29 = vld [vmem:[#allocation11 + $0x8] sm:$0xff]  }
 0x20c   : > { %v5663_v11 = vadd.f32 %v5662_v37, %v5661_v35  ;;  %5733 = vmatprep.subr.bf16.mxu0 %v5954_v29 }
 0x20d   : > { %2148 = vmatmul.mubr.bf16.gmra.mxu1 %v1910_v24  ;;  %v5664_v31 = vpop.f32.mrf.mxu0  ;;  %5734 = vmatpush3.bf16.msra.mxu0 %v5954_v29 }
 0x20e   : > { %2157 = vmatprep.mubr.bf16.mxu1 %v9906_v49  ;;  %v1823_v2 = vadd.f32 %v5663_v11, %v8193_v47 }
 0x20f   : > { %v5665_v58 = vpop.f32.mrf.mxu0 }
 0x210   : > { %v5666_v54 = vadd.f32 %v5665_v58, %v5664_v31  ;;  %v1889_v7 = vmax.f32 %v1823_v2, 0.0 }
 0x212   : > { %v1826_v55 = vadd.f32 %v5666_v54, %v8193_v47 }
 0x214   : > { %v1890_v21 = vmax.f32 %v1826_v55, 0.0 }
 0x216   : > { %v5667_v52 = vpop.f32.mrf.mxu0  ;;  %v1911_v33 = vpack.c.bf16 %v1890_v21, %v1889_v7 }
 0x218   : > { %v5668_v9 = vpop.f32.mrf.mxu0  ;;  %2158 = vmatmul.mubr.bf16.gmra.mxu1 %v1911_v33 }
 0x219   : > { %v5669_v32 = vadd.f32 %v5668_v9, %v5667_v52  ;;  %2167 = vmatprep.mubr.bf16.mxu1 %v9906_v49 }
 0x21a   : > { %v5670_v50 = vpop.f32.mrf.mxu0 }
 0x21b   : > { %v1831_v12 = vadd.f32 %v5669_v32, %v8193_v47 }
 0x21c   : > { %v5671_v8 = vpop.f32.mrf.mxu0 }
 0x21d   : > { %v5672_v19 = vadd.f32 %v5671_v8, %v5670_v50  ;;  %v1891_v30 = vmax.f32 %v1831_v12, 0.0  ;;  %v5955_v50 = vld [vmem:[#allocation11] sm:$0xff]  }
 0x21e   : > { %5735 = vmatprep.subr.bf16.mxu0 %v5955_v50 }
 0x21f   : > { %v1834_v25 = vadd.f32 %v5672_v19, %v8193_v47  ;;  %5736 = vmatpush3.bf16.msra.mxu0 %v5955_v50  ;;  %v1933_v50 = vld [vmem:[%s9851_s7] sm:$0x3] }
 0x221   : > { %v1892_v63 = vmax.f32 %v1834_v25, 0.0 }
 0x222   : > { %v5673_v27 = vpop.f32.mrf.mxu1 }
 0x223   : > { %v1912_v34 = vpack.c.bf16 %v1892_v63, %v1891_v30 }
 0x224   : > { %v5674_v48 = vpop.f32.mrf.mxu1 }
 0x225   : > { %2168 = vmatmul.mubr.bf16.gmra.mxu1 %v1912_v34  ;;  %v5675_v35 = vadd.f32 %v5674_v48, %v5673_v27 }
 0x226   : > { %2177 = vmatprep.mubr.bf16.mxu1 %v9906_v49  ;;  %v5676_v24 = vpop.f32.mrf.mxu1 }
 0x227   : > { %v1839_v37 = vadd.f32 %v5675_v35, %v8193_v47 }
 0x228   : > { %v5677_v11 = vpop.f32.mrf.mxu1 }
 0x229   : > { %v5678_v31 = vadd.f32 %v5677_v11, %v5676_v24  ;;  %v1893_v62 = vmax.f32 %v1839_v37, 0.0 }
 0x22b   : > { %v1842_v58 = vadd.f32 %v5678_v31, %v8193_v47 }
 0x22d   : > { %v1894_v2 = vmax.f32 %v1842_v58, 0.0 }
 0x22e   : > { %v5679_v54 = vpop.f32.mrf.mxu1 }
 0x22f   : > { %v1913_v55 = vpack.c.bf16 %v1894_v2, %v1893_v62 }
 0x230   : > { %v5680_v7 = vpop.f32.mrf.mxu1 }
 0x231   : > { %v5681_v21 = vadd.f32 %v5680_v7, %v5679_v54  ;;  %2178 = vmatmul.mubr.bf16.gmra.mxu1 %v1913_v55 }
 0x232   : > { %v5682_v52 = vpop.f32.mrf.mxu1  ;;  %2187 = vmatprep.mubr.bf16.mxu1 %v9906_v49 }
 0x233   : > { %v1847_v33 = vadd.f32 %v5681_v21, %v8193_v47 }
 0x234   : > { %v5683_v9 = vpop.f32.mrf.mxu1 }
 0x235   : > { %v5684_v32 = vadd.f32 %v5683_v9, %v5682_v52  ;;  %v1895_v8 = vmax.f32 %v1847_v33, 0.0 }
 0x237   : > { %v1850_v12 = vadd.f32 %v5684_v32, %v8193_v47 }
 0x239   : > { %v1896_v19 = vmax.f32 %v1850_v12, 0.0  ;;  %v8251_v12 = vrot.slane %v1933_v50, %v7265_v20 }
 0x23b   : > { %v5685_v25 = vpop.f32.mrf.mxu1  ;;  %v1914_v30 = vpack.c.bf16 %v1896_v19, %v1895_v8  ;;  %v8248_v8 = vrot.slane %v1933_v50, %v7259_v18 }
 0x23d   : > { %v5686_v63 = vpop.f32.mrf.mxu1  ;;  %2188 = vmatmul.mubr.bf16.gmra.mxu1 %v1914_v30 }
 0x23e   : > { %v5687_v27 = vadd.f32 %v5686_v63, %v5685_v25  ;;  %2197 = vmatprep.mubr.bf16.mxu1 %v9906_v49 }
 0x23f   : > { %v5688_v34 = vpop.f32.mrf.mxu1 }
 0x240   : > { %v1855_v48 = vadd.f32 %v5687_v27, %v8193_v47 }
 0x241   : > { %v5689_v29 = vpop.f32.mrf.mxu1 }
 0x242   : > { %v5690_v35 = vadd.f32 %v5689_v29, %v5688_v34  ;;  %v1897_v24 = vmax.f32 %v1855_v48, 0.0 }
 0x244   : > { %v1858_v37 = vadd.f32 %v5690_v35, %v8193_v47 }
 0x246   : > { %v1898_v11 = vmax.f32 %v1858_v37, 0.0 }
 0x247   : > { %v5691_v31 = vpop.f32.mrf.mxu1 }
 0x248   : > { %v1915_v62 = vpack.c.bf16 %v1898_v11, %v1897_v24 }
 0x249   : > { %v5692_v58 = vpop.f32.mrf.mxu1 }
 0x24a   : > { %v5693_v2 = vadd.f32 %v5692_v58, %v5691_v31  ;;  %2198 = vmatmul.mubr.bf16.gmra.mxu1 %v1915_v62 }
 0x24b   : > { %v5694_v54 = vpop.f32.mrf.mxu1  ;;  %2207 = vmatprep.mubr.bf16.mxu1 %v9906_v49 }
 0x24c   : > { %v1863_v55 = vadd.f32 %v5693_v2, %v8193_v47 }
 0x24d   : > { %v5695_v7 = vpop.f32.mrf.mxu1 }
 0x24e   : > { %v5696_v21 = vadd.f32 %v5695_v7, %v5694_v54  ;;  %v1899_v52 = vmax.f32 %v1863_v55, 0.0 }
 0x250   : > { %v1866_v33 = vadd.f32 %v5696_v21, %v8193_v47 }
 0x252   : > { %v1900_v9 = vmax.f32 %v1866_v33, 0.0 }
 0x254   : > { %v1916_v32 = vpack.c.bf16 %v1900_v9, %v1899_v52 }
 0x256   : > { %2208 = vmatmul.mubr.bf16.gmra.mxu1 %v1916_v32 }
 0x257   : > { %3405 = vmatprep.mubr.bf16.mxu1 %v9906_v49 }
 0x260   : > { %v2059_v19 = vpop.f32.mrf.mxu1 }
 0x261   : > { %v8254_v25 = vadd.f32 %v2059_v19, %v8248_v8 }
 0x262   : > { %v2061_v47 = vpop.f32.mrf.mxu1 }
 0x263   : > { %2479 = vst [vmem:[%s8256_s25] sm:$0xff] %v8254_v25  ;;  %v2062_v30 = vadd.f32 %v2061_v47, %v8251_v12 }
 0x264   : > { %v2063_v63 = vpop.f32.mrf.mxu1 }
 0x265   : > { %v2225_v27 = vmul.f32 1.442695, %v2062_v30  ;;  %v8262_v34 = vadd.f32 %v2063_v63, %v8248_v8 }
 0x266   : > { %v2065_v48 = vpop.f32.mrf.mxu1 }
 0x267   : > { %6132 = vpow2.f32 %v2225_v27  ;;  %2481 = vst [vmem:[%s8256_s25 + $0x10] sm:$0xff] %v8262_v34  ;;  %v2066_v29 = vadd.f32 %v2065_v48, %v8251_v12 }
 0x268   : > { %v2069_v35 = vpop.f32.mrf.mxu1 }
 0x269   : > { %v2229_v24 = vmul.f32 1.442695, %v2066_v29  ;;  %v8268_v37 = vadd.f32 %v2069_v35, %v8248_v8 }
 0x26a   : > { %v2071_v11 = vpop.f32.mrf.mxu1 }
 0x26b   : > { %6134 = vpow2.f32 %v2229_v24  ;;  %2483 = vst [vmem:[%s8256_s25 + $0x20] sm:$0xff] %v8268_v37  ;;  %v2072_v31 = vadd.f32 %v2071_v11, %v8251_v12 }
 0x26c   : > { %v2073_v62 = vpop.f32.mrf.mxu1 }
 0x26d   : > { %v2233_v58 = vmul.f32 1.442695, %v2072_v31  ;;  %v8274_v2 = vadd.f32 %v2073_v62, %v8248_v8 }
 0x26e   : > { %v2075_v54 = vpop.f32.mrf.mxu1 }
 0x26f   : > { %6136 = vpow2.f32 %v2233_v58  ;;  %2485 = vst [vmem:[%s8256_s25 + $0x30] sm:$0xff] %v8274_v2  ;;  %v2076_v55 = vadd.f32 %v2075_v54, %v8251_v12 }
 0x271   : > { %v2237_v7 = vmul.f32 1.442695, %v2076_v55 }
 0x273   : > { %6138 = vpow2.f32 %v2237_v7 }
 0x274   : > { %v6133_v21 = vpop.eup %6132  ;;  %v2079_v52 = vpop.f32.mrf.mxu1 }
 0x275   : > { %v2352_v33 = vadd.f32 0.0001, %v6133_v21  ;;  %v8280_v9 = vadd.f32 %v2079_v52, %v8248_v8 }
 0x276   : > { %v2081_v32 = vpop.f32.mrf.mxu1 }
 0x277   : > { %2480 = vst [vmem:[%s8256_s25 + $0x8] sm:$0xff] %v2352_v33  ;;  %6140 = vrsqrt.f32 %v2352_v33  ;;  %2487 = vst [vmem:[%s8256_s25 + $0x40] sm:$0xff] %v8280_v9  ;;  %v2082_v50 = vadd.f32 %v2081_v32, %v8251_v12  ;;  %vm2545_vm0 = vcmp.eq.f32.partialorder %v2352_v33, inf  ;;  %v2548_v52 = vand.u32 2147483648, %v2352_v33 }
 0x278   : > { %v6135_v19 = vpop.eup %6134  ;;  %v2083_v47 = vpop.f32.mrf.mxu1  ;;  %vm2547_vm1 = vcmp.eq.f32.partialorder %v2352_v33, 0.0 }
 0x279   : > { %v2354_v30 = vadd.f32 0.0001, %v6135_v19  ;;  %v2241_v63 = vmul.f32 1.442695, %v2082_v50  ;;  %v8287_v27 = vadd.f32 %v2083_v47, %v8248_v8 }
 0x27a   : > { %v2085_v48 = vpop.f32.mrf.mxu1 }
 0x27b   : > { %2482 = vst [vmem:[%s8256_s25 + $0x18] sm:$0xff] %v2354_v30  ;;  %6142 = vpow2.f32 %v2241_v63  ;;  %2489 = vst [vmem:[%s8256_s25 + $0x50] sm:$0xff] %v8287_v27  ;;  %v2086_v29 = vadd.f32 %v2085_v48, %v8251_v12  ;;  %v2767_v48 = vld [vmem:[%s7230_s12] sm:$0xff]  ;;  %vm2552_vm2 = vcmp.eq.f32.partialorder %v2354_v30, inf  ;;  %vm2554_vm3 = vcmp.eq.f32.partialorder %v2354_v30, 0.0 }
 0x27c   : > { %v6137_v35 = vpop.eup %6136  ;;  %6144 = vrsqrt.f32 %v2354_v30 }
 0x27d   : > { %v2356_v24 = vadd.f32 0.0001, %v6137_v35  ;;  %v2245_v11 = vmul.f32 1.442695, %v2086_v29 }
 0x27f   : > { %2484 = vst [vmem:[%s8256_s25 + $0x28] sm:$0xff] %v2356_v24  ;;  %6146 = vrsqrt.f32 %v2356_v24  ;;  %vm2559_vm4 = vcmp.eq.f32.partialorder %v2356_v24, inf  ;;  %v2562_v14 = vand.u32 2147483648, %v2356_v24  ;;  %vm2561_vm5 = vcmp.eq.f32.partialorder %v2356_v24, 0.0 }
 0x280   : > { %v6139_v31 = vpop.eup %6138  ;;  %6148 = vpow2.f32 %v2245_v11 }
 0x281   : > { %v8294_v62 = vadd.f32 0.0001, %v6139_v31 }
 0x283   : > { %2486 = vst [vmem:[%s8256_s25 + $0x38] sm:$0xff] %v8294_v62  ;;  %6150 = vrsqrt.f32 %v8294_v62  ;;  %v2089_v54 = vpop.f32.mrf.mxu1  ;;  %vm2566_vm6 = vcmp.eq.f32.partialorder %v8294_v62, inf  ;;  %vm2568_vm7 = vcmp.eq.f32.partialorder %v8294_v62, 0.0 }
 0x284   : > { %v6141_v58 = vpop.eup %6140  ;;  %v8300_v55 = vadd.f32 %v2089_v54, %v8248_v8 }
 0x285   : > { %v2544_v7 = vmul.f32 %v6141_v58, %v2352_v33  ;;  %v2091_v21 = vpop.f32.mrf.mxu1 }
 0x286   : > { %2491 = vst [vmem:[%s8256_s25 + $0x60] sm:$0xff] %v8300_v55  ;;  %v2092_v32 = vadd.f32 %v2091_v21, %v8251_v12  ;;  %v2768_v21 = vld [vmem:[%s7230_s12 + $0x8] sm:$0xff] }
 0x287   : > { %v2546_v50 = vsel %vm2545_vm0, %v2352_v33, %v2544_v7  ;;  %v2093_v47 = vpop.f32.mrf.mxu1  ;;  %v2555_v7 = vand.u32 2147483648, %v2354_v30 }
 0x288   : > { %v6143_v19 = vpop.eup %6142  ;;  %v2549_v63 = vsel %vm2547_vm1, %v2548_v52, %v2546_v50  ;;  %v2249_v11 = vmul.f32 1.442695, %v2092_v32  ;;  %v8309_v31 = vadd.f32 %v2093_v47, %v8248_v8 }
 0x289   : > { %v6145_v29 = vpop.eup %6144  ;;  %v8306_v35 = vadd.f32 0.0001, %v6143_v19  ;;  %v2095_v58 = vpop.f32.mrf.mxu1  ;;  %v2799_v52 = vmul.f32 %v2767_v48, %v2549_v63 }
 0x28a   : > { %v2551_v54 = vmul.f32 %v6145_v29, %v2354_v30  ;;  %2493 = vst [vmem:[%s8256_s25 + $0x70] sm:$0xff] %v8309_v31  ;;  %v2096_v33 = vadd.f32 %v2095_v58, %v8251_v12 }
 0x28b   : > { %2488 = vst [vmem:[%s8256_s25 + $0x48] sm:$0xff] %v8306_v35  ;;  %6152 = vrsqrt.f32 %v8306_v35  ;;  %v2831_v63 = vadd.f32 %v2799_v52, %v8254_v25  ;;  %v2770_v52 = vld [vmem:[%s7230_s12 + $0x18] sm:$0xff]  ;;  %vm2573_vm8 = vcmp.eq.f32.partialorder %v8306_v35, inf  ;;  %vm2575_vm9 = vcmp.eq.f32.partialorder %v8306_v35, 0.0 }
 0x28c   : > { %v6147_v50 = vpop.eup %6146  ;;  %6154 = vpow2.f32 %v2249_v11  ;;  %v2553_v32 = vsel %vm2552_vm2, %v2354_v30, %v2551_v54  ;;  %v2253_v47 = vmul.f32 1.442695, %v2096_v33 }
 0x28d   : > { %v6149_v19 = vpop.eup %6148  ;;  %v2556_v29 = vsel %vm2554_vm3, %v2555_v7, %v2553_v32  ;;  %v2558_v49 = vmul.f32 %v6147_v50, %v2356_v24  ;;  %v2769_v7 = vld [vmem:[%s7230_s12 + $0x10] sm:$0xff] }
 0x28e   : > { %v8318_v41 = vadd.f32 0.0001, %v6149_v19  ;;  %v2800_v60 = vmul.f32 %v2768_v21, %v2556_v29  ;;  %6156 = vpow2.f32 %v2253_v47  ;;  %v2099_v58 = vpop.f32.mrf.mxu1 }
 0x28f   : > { %v2560_v48 = vsel %vm2559_vm4, %v2356_v24, %v2558_v49  ;;  %v8324_v30 = vadd.f32 %v2099_v58, %v8248_v8  ;;  %v2569_v24 = vand.u32 2147483648, %v8294_v62 }
 0x290   : > { %v6151_v11 = vpop.eup %6150  ;;  %2490 = vst [vmem:[%s8256_s25 + $0x58] sm:$0xff] %v8318_v41  ;;  %v2832_v54 = vadd.f32 %v2800_v60, %v8262_v34  ;;  %v2563_v33 = vsel %vm2561_vm5, %v2562_v14, %v2560_v48  ;;  %6158 = vrsqrt.f32 %v8318_v41  ;;  %v2101_v21 = vpop.f32.mrf.mxu1  ;;  %vm2580_vm10 = vcmp.eq.f32.partialorder %v8318_v41, inf }
 0x291   : > { %v2565_v50 = vmul.f32 %v6151_v11, %v8294_v62  ;;  %2495 = vst [vmem:[%s8256_s25 + $0x80] sm:$0xff] %v8324_v30  ;;  %v2102_v49 = vadd.f32 %v2101_v21, %v8251_v12  ;;  %v2801_v14 = vmul.f32 %v2769_v7, %v2563_v33  ;;  %vm2582_vm11 = vcmp.eq.f32.partialorder %v8318_v41, 0.0 }
 0x292   : > { %v2863_v25 = vpack.c.bf16 %v2832_v54, %v2831_v63  ;;  %v2103_v32 = vpop.f32.mrf.mxu1 }
 0x293   : > { %v2567_v60 = vsel %vm2566_vm6, %v8294_v62, %v2565_v50  ;;  %v2257_v34 = vmul.f32 1.442695, %v2102_v49  ;;  %v8339_v19 = vadd.f32 %v2103_v32, %v8248_v8  ;;  %v2833_v48 = vadd.f32 %v2801_v14, %v8268_v37 }
 0x294   : > { %5737 = vmatprep.mubr.bf16.mxu0 %v2863_v25  ;;  %v2570_v47 = vsel %vm2568_vm7, %v2569_v24, %v2567_v60  ;;  %v2105_v29 = vpop.f32.mrf.mxu1 }
 0x295   : > { %v2802_v58 = vmul.f32 %v2770_v52, %v2570_v47  ;;  %6160 = vpow2.f32 %v2257_v34  ;;  %2497 = vst [vmem:[%s8256_s25 + $0x90] sm:$0xff] %v8339_v19  ;;  %v2106_v63 = vadd.f32 %v2105_v29, %v8251_v12  ;;  %v2771_v34 = vld [vmem:[%s7230_s12 + $0x20] sm:$0xff] }
 0x297   : > { %v2834_v11 = vadd.f32 %v2802_v58, %v8274_v2  ;;  %v2261_v54 = vmul.f32 1.442695, %v2106_v63  ;;  %v2576_v2 = vand.u32 2147483648, %v8306_v35  ;;  %v2772_v63 = vld [vmem:[%s7230_s12 + $0x28] sm:$0xff] }
 0x298   : > { %v6153_v62 = vpop.eup %6152 }
 0x299   : > { %v6155_v33 = vpop.eup %6154  ;;  %v2864_v7 = vpack.c.bf16 %v2834_v11, %v2833_v48  ;;  %v2572_v21 = vmul.f32 %v6153_v62, %v8306_v35  ;;  %6162 = vpow2.f32 %v2261_v54 }
 0x29a   : > { %v8347_v50 = vadd.f32 0.0001, %v6155_v33  ;;  %v2109_v49 = vpop.f32.mrf.mxu1 }
 0x29b   : > { %5738 = vmatmul.mubr.bf16.vlgmr.msra.gmra.mxu0 %v2864_v7  ;;  %v2574_v37 = vsel %vm2573_vm8, %v8306_v35, %v2572_v21  ;;  %v6157_v25 = vpop.eup %6156  ;;  %v8356_v24 = vadd.f32 %v2109_v49, %v8248_v8  ;;  %v2583_v35 = vand.u32 2147483648, %v8318_v41 }
 0x29c   : > { %2492 = vst [vmem:[%s8256_s25 + $0x68] sm:$0xff] %v8347_v50  ;;  %6164 = vrsqrt.f32 %v8347_v50  ;;  %v8359_v32 = vadd.f32 0.0001, %v6157_v25  ;;  %v2111_v60 = vpop.f32.mrf.mxu1  ;;  %v2577_v14 = vsel %vm2575_vm9, %v2576_v2, %v2574_v37  ;;  %vm2587_vm12 = vcmp.eq.f32.partialorder %v8347_v50, inf }
 0x29d   : > { %v6159_v52 = vpop.eup %6158  ;;  %2499 = vst [vmem:[%s8256_s25 + $0xa0] sm:$0xff] %v8356_v24  ;;  %v2112_v47 = vadd.f32 %v2111_v60, %v8251_v12  ;;  %v2803_v54 = vmul.f32 %v2771_v34, %v2577_v14  ;;  %vm2589_vm13 = vcmp.eq.f32.partialorder %v8347_v50, 0.0 }
 0x29e   : > { %v2579_v29 = vmul.f32 %v6159_v52, %v8318_v41  ;;  %2494 = vst [vmem:[%s8256_s25 + $0x78] sm:$0xff] %v8359_v32  ;;  %v2113_v58 = vpop.f32.mrf.mxu1  ;;  %6166 = vrsqrt.f32 %v8359_v32  ;;  %vm2594_vm14 = vcmp.eq.f32.partialorder %v8359_v32, inf  ;;  %vm2596_vm15 = vcmp.eq.f32.partialorder %v8359_v32, 0.0 }
 0x29f   : > { %v2265_v48 = vmul.f32 1.442695, %v2112_v47  ;;  %v8374_v11 = vadd.f32 %v2113_v58, %v8248_v8  ;;  %v2835_v52 = vadd.f32 %v2803_v54, %v8280_v9  ;;  %v2773_v54 = vld [vmem:[%s7230_s12 + $0x30] sm:$0xff] }
 0x2a0   : > { %v2581_v62 = vsel %vm2580_vm10, %v8318_v41, %v2579_v29  ;;  %v2115_v33 = vpop.f32.mrf.mxu1 }
 0x2a1   : > { %v2584_v7 = vsel %vm2582_vm11, %v2583_v35, %v2581_v62  ;;  %6168 = vpow2.f32 %v2265_v48  ;;  %2501 = vst [vmem:[%s8256_s25 + $0xb0] sm:$0xff] %v8374_v11  ;;  %v2116_v21 = vadd.f32 %v2115_v33, %v8251_v12  ;;  %v2590_v35 = vand.u32 2147483648, %v8347_v50 }
 0x2a2   : > { %v2804_v49 = vmul.f32 %v2772_v63, %v2584_v7  ;;  %v6161_v37 = vpop.eup %6160 }
 0x2a3   : > { %v8380_v2 = vadd.f32 0.0001, %v6161_v37  ;;  %v2269_v25 = vmul.f32 1.442695, %v2116_v21 }
 0x2a4   : > { %v2836_v60 = vadd.f32 %v2804_v49, %v8287_v27 }
 0x2a5   : > { %2496 = vst [vmem:[%s8256_s25 + $0x88] sm:$0xff] %v8380_v2  ;;  %6170 = vrsqrt.f32 %v8380_v2  ;;  %vm2601_vm0 = vcmp.eq.f32.partialorder %v8380_v2, inf  ;;  %vm2603_vm1 = vcmp.eq.f32.partialorder %v8380_v2, 0.0 }
 0x2a6   : > { %v2865_v41 = vpack.c.bf16 %v2836_v60, %v2835_v52  ;;  %v6163_v14 = vpop.eup %6162  ;;  %6172 = vpow2.f32 %v2269_v25  ;;  %v2597_v25 = vand.u32 2147483648, %v8359_v32  ;;  %v2774_v52 = vld [vmem:[%s7230_s12 + $0x38] sm:$0xff] }
 0x2a7   : > { %v8387_v34 = vadd.f32 0.0001, %v6163_v14 }
 0x2a8   : > { %5741 = vmatprep.mubr.bf16.mxu0 %v2865_v41  ;;  %v2119_v29 = vpop.f32.mrf.mxu1 }
 0x2a9   : > { %v6165_v47 = vpop.eup %6164  ;;  %2498 = vst [vmem:[%s8256_s25 + $0x98] sm:$0xff] %v8387_v34  ;;  %6174 = vrsqrt.f32 %v8387_v34  ;;  %v8393_v9 = vadd.f32 %v2119_v29, %v8248_v8  ;;  %vm2608_vm2 = vcmp.eq.f32.partialorder %v8387_v34, inf  ;;  %vm2610_vm3 = vcmp.eq.f32.partialorder %v8387_v34, 0.0 }
 0x2aa   : > { %v2586_v27 = vmul.f32 %v6165_v47, %v8347_v50  ;;  %v2121_v58 = vpop.f32.mrf.mxu1 }
 0x2ab   : > { %v6167_v63 = vpop.eup %6166  ;;  %2503 = vst [vmem:[%s8256_s25 + $0xc0] sm:$0xff] %v8393_v9  ;;  %v2122_v48 = vadd.f32 %v2121_v58, %v8251_v12 }
 0x2ac   : > { %v2588_v62 = vsel %vm2587_vm12, %v8347_v50, %v2586_v27  ;;  %v2123_v33 = vpop.f32.mrf.mxu1  ;;  %v2593_v21 = vmul.f32 %v6167_v63, %v8359_v32 }
 0x2ad   : > { %v2591_v7 = vsel %vm2589_vm13, %v2590_v35, %v2588_v62  ;;  %v2273_v49 = vmul.f32 1.442695, %v2122_v48  ;;  %v8406_v37 = vadd.f32 %v2123_v33, %v8248_v8 }
 0x2ae   : > { %v6169_v60 = vpop.eup %6168  ;;  %v2125_v41 = vpop.f32.mrf.mxu1  ;;  %v2595_v50 = vsel %vm2594_vm14, %v8359_v32, %v2593_v21  ;;  %v2805_v14 = vmul.f32 %v2773_v54, %v2591_v7  ;;  %v5956_v7 = vld [vmem:[#allocation13 + $0xe0] ss:$16 sps:$4 sm:$0xff]   ;;  %v5958_v21 = vld [vmem:[#allocation13 + $0xe4] ss:$16 sps:$4 sm:$0xff]  }
 0x2af   : > { %v8413_v47 = vadd.f32 0.0001, %v6169_v60  ;;  %6176 = vpow2.f32 %v2273_v49  ;;  %2505 = vst [vmem:[%s8256_s25 + $0xd0] sm:$0xff] %v8406_v37  ;;  %v2126_v29 = vadd.f32 %v2125_v41, %v8251_v12  ;;  %v2598_v27 = vsel %vm2596_vm15, %v2597_v25, %v2595_v50  ;;  %3373 = vmatprep.subr.bf16.mxu1 %v5958_v21 }
 0x2b0   : > { %v2806_v58 = vmul.f32 %v2774_v52, %v2598_v27  ;;  %v2837_v48 = vadd.f32 %v2805_v14, %v8300_v55  ;;  %v5961_v52 = vld [vmem:[#allocation13 + $0xc4] ss:$16 sps:$4 sm:$0xff]   ;;  %3374 = vmatpush1.bf16.msra.mxu1 %v5956_v7 }
 0x2b1   : > { %2500 = vst [vmem:[%s8256_s25 + $0xa8] sm:$0xff] %v8413_v47  ;;  %6178 = vrsqrt.f32 %v8413_v47  ;;  %v2277_v35 = vmul.f32 1.442695, %v2126_v29  ;;  %v2775_v27 = vld [vmem:[%s7230_s12 + $0x40] sm:$0xff]  ;;  %3375 = vmatprep.subr.bf16.mxu1 %v5961_v52  ;;  %vm2615_vm4 = vcmp.eq.f32.partialorder %v8413_v47, inf  ;;  %vm2617_vm5 = vcmp.eq.f32.partialorder %v8413_v47, 0.0 }
 0x2b2   : > { %v6171_v63 = vpop.eup %6170  ;;  %v2838_v32 = vadd.f32 %v2806_v58, %v8309_v31  ;;  %v2604_v31 = vand.u32 2147483648, %v8380_v2  ;;  %v5959_v58 = vld [vmem:[#allocation13 + $0xc0] ss:$16 sps:$4 sm:$0xff]  }
 0x2b3   : > { %v6173_v62 = vpop.eup %6172  ;;  %6180 = vpow2.f32 %v2277_v35  ;;  %v2129_v54 = vpop.f32.mrf.mxu1  ;;  %v2600_v33 = vmul.f32 %v6171_v63, %v8380_v2 }
 0x2b4   : > { %v8425_v49 = vadd.f32 0.0001, %v6173_v62  ;;  %v8428_v25 = vadd.f32 %v2129_v54, %v8248_v8  ;;  %v2866_v55 = vpack.c.bf16 %v2838_v32, %v2837_v48  ;;  %v2611_v32 = vand.u32 2147483648, %v8387_v34  ;;  %v2776_v62 = vld [vmem:[%s7230_s12 + $0x48] sm:$0xff]  ;;  %3376 = vmatpush1.bf16.msra.mxu1 %v5959_v58 }
 0x2b5   : > { %v2131_v60 = vpop.f32.mrf.mxu1  ;;  %v2602_v41 = vsel %vm2601_vm0, %v8380_v2, %v2600_v33 }
 0x2b6   : > { %v6175_v50 = vpop.eup %6174  ;;  %2502 = vst [vmem:[%s8256_s25 + $0xb8] sm:$0xff] %v8425_v49  ;;  %6182 = vrsqrt.f32 %v8425_v49  ;;  %2507 = vst [vmem:[%s8256_s25 + $0xe0] sm:$0xff] %v8428_v25  ;;  %v2132_v14 = vadd.f32 %v2131_v60, %v8251_v12  ;;  %5742 = vmatmul.mubr.bf16.gmra.mxu0 %v2866_v55  ;;  %v2605_v29 = vsel %vm2603_vm1, %v2604_v31, %v2602_v41  ;;  %vm2622_vm6 = vcmp.eq.f32.partialorder %v8425_v49, inf }
 0x2b7   : > { %v2133_v35 = vpop.f32.mrf.mxu1  ;;  %v2607_v2 = vmul.f32 %v6175_v50, %v8387_v34  ;;  %v2807_v7 = vmul.f32 %v2775_v27, %v2605_v29  ;;  %v5964_v29 = vld [vmem:[#allocation13 + $0xa4] ss:$16 sps:$4 sm:$0xff]   ;;  %vm2624_vm7 = vcmp.eq.f32.partialorder %v8425_v49, 0.0 }
 0x2b8   : > { %v2281_v63 = vmul.f32 1.442695, %v2132_v14  ;;  %v8442_v48 = vadd.f32 %v2133_v35, %v8248_v8  ;;  %3377 = vmatprep.subr.bf16.mxu1 %v5964_v29 }
 0x2b9   : > { %v2135_v54 = vpop.f32.mrf.mxu1  ;;  %v2609_v33 = vsel %vm2608_vm2, %v8387_v34, %v2607_v2  ;;  %v2839_v50 = vadd.f32 %v2807_v7, %v8324_v30  ;;  %v5962_v34 = vld [vmem:[#allocation13 + $0xa0] ss:$16 sps:$4 sm:$0xff]  }
 0x2ba   : > { %6184 = vpow2.f32 %v2281_v63  ;;  %2509 = vst [vmem:[%s8256_s25 + $0xf0] sm:$0xff] %v8442_v48  ;;  %v2136_v21 = vadd.f32 %v2135_v54, %v8251_v12  ;;  %v2612_v55 = vsel %vm2610_vm3, %v2611_v32, %v2609_v33  ;;  %3378 = vmatpush1.bf16.msra.mxu1 %v5962_v34 }
 0x2bb   : > { %v2808_v31 = vmul.f32 %v2776_v62, %v2612_v55  ;;  %v2618_v62 = vand.u32 2147483648, %v8413_v47  ;;  %v2777_v55 = vld [vmem:[%s7230_s12 + $0x50] sm:$0xff] }
 0x2bc   : > { %v6177_v52 = vpop.eup %6176  ;;  %v2285_v60 = vmul.f32 1.442695, %v2136_v21 }
 0x2bd   : > { %v8452_v41 = vadd.f32 0.0001, %v6177_v52  ;;  %v2840_v14 = vadd.f32 %v2808_v31, %v8339_v19 }
 0x2be   : > { %v6179_v35 = vpop.eup %6178  ;;  %6186 = vpow2.f32 %v2285_v60 }
 0x2bf   : > { %2504 = vst [vmem:[%s8256_s25 + $0xc8] sm:$0xff] %v8452_v41  ;;  %6188 = vrsqrt.f32 %v8452_v41  ;;  %v2867_v27 = vpack.c.bf16 %v2840_v14, %v2839_v50  ;;  %v2614_v58 = vmul.f32 %v6179_v35, %v8413_v47  ;;  %v2139_v63 = vpop.f32.mrf.mxu1  ;;  %v2778_v14 = vld [vmem:[%s7230_s12 + $0x58] sm:$0xff]  ;;  %vm2629_vm8 = vcmp.eq.f32.partialorder %v8452_v41, inf }
 0x2c0   : > { %v6181_v2 = vpop.eup %6180  ;;  %v8464_v19 = vadd.f32 %v2139_v63, %v8248_v8  ;;  %vm2631_vm9 = vcmp.eq.f32.partialorder %v8452_v41, 0.0 }
 0x2c1   : > { %v8461_v30 = vadd.f32 0.0001, %v6181_v2  ;;  %5745 = vmatprep.mubr.bf16.mxu0 %v2867_v27  ;;  %v2616_v32 = vsel %vm2615_vm4, %v8413_v47, %v2614_v58  ;;  %v2141_v54 = vpop.f32.mrf.mxu1  ;;  %v2625_v47 = vand.u32 2147483648, %v8425_v49 }
 0x2c2   : > { %2511 = vst [vmem:[%s8256_s25 + $0x100] sm:$0xff] %v8464_v19  ;;  %v2142_v7 = vadd.f32 %v2141_v54, %v8251_v12  ;;  %v2619_v21 = vsel %vm2617_vm5, %v2618_v62, %v2616_v32 }
 0x2c3   : > { %v6183_v33 = vpop.eup %6182  ;;  %2506 = vst [vmem:[%s8256_s25 + $0xd8] sm:$0xff] %v8461_v30  ;;  %6190 = vrsqrt.f32 %v8461_v30  ;;  %v2143_v31 = vpop.f32.mrf.mxu1  ;;  %v2809_v29 = vmul.f32 %v2777_v55, %v2619_v21  ;;  %v5967_v21 = vld [vmem:[#allocation13 + $0x84] ss:$16 sps:$4 sm:$0xff]   ;;  %vm2636_vm10 = vcmp.eq.f32.partialorder %v8461_v30, inf  ;;  %vm2638_vm11 = vcmp.eq.f32.partialorder %v8461_v30, 0.0 }
 0x2c4   : > { %v2621_v52 = vmul.f32 %v6183_v33, %v8425_v49  ;;  %v2289_v60 = vmul.f32 1.442695, %v2142_v7  ;;  %v8478_v50 = vadd.f32 %v2143_v31, %v8248_v8  ;;  %v5965_v7 = vld [vmem:[#allocation13 + $0x80] ss:$16 sps:$4 sm:$0xff]   ;;  %3379 = vmatprep.subr.bf16.mxu1 %v5967_v21 }
 0x2c5   : > { %v2145_v35 = vpop.f32.mrf.mxu1  ;;  %v2841_v54 = vadd.f32 %v2809_v29, %v8356_v24  ;;  %3380 = vmatpush1.bf16.msra.mxu1 %v5965_v7 }
 0x2c6   : > { %v2623_v34 = vsel %vm2622_vm6, %v8425_v49, %v2621_v52  ;;  %6192 = vpow2.f32 %v2289_v60  ;;  %2513 = vst [vmem:[%s8256_s25 + $0x110] sm:$0xff] %v8478_v50  ;;  %v2146_v58 = vadd.f32 %v2145_v35, %v8251_v12  ;;  %v5970_v60 = vld [vmem:[#allocation13 + $0x64] ss:$16 sps:$4 sm:$0xff]   ;;  %v5968_v35 = vld [vmem:[#allocation13 + $0x60] ss:$16 sps:$4 sm:$0xff]  }
 0x2c7   : > { %v6185_v27 = vpop.eup %6184  ;;  %v2626_v2 = vsel %vm2624_vm7, %v2625_v47, %v2623_v34  ;;  %v5977_v34 = vld [vmem:[#allocation13 + $0xe8] ss:$16 sps:$4 sm:$0xff]   ;;  %3381 = vmatprep.subr.bf16.mxu1 %v5970_v60 }
 0x2c8   : > { %v8488_v63 = vadd.f32 0.0001, %v6185_v27  ;;  %v2810_v32 = vmul.f32 %v2778_v14, %v2626_v2  ;;  %v2293_v62 = vmul.f32 1.442695, %v2146_v58  ;;  %v5973_v58 = vld [vmem:[#allocation13 + $0x44] ss:$16 sps:$4 sm:$0xff]  }
 0x2c9   : > { %v5979_v2 = vld [vmem:[#allocation13 + $0xec] ss:$16 sps:$4 sm:$0xff]   ;;  %3382 = vmatpush1.bf16.msra.mxu1 %v5968_v35 }
 0x2ca   : > { %2508 = vst [vmem:[%s8256_s25 + $0xe8] sm:$0xff] %v8488_v63  ;;  %6194 = vrsqrt.f32 %v8488_v63  ;;  %v2842_v49 = vadd.f32 %v2810_v32, %v8374_v11  ;;  %v2632_v11 = vand.u32 2147483648, %v8452_v41  ;;  %3566 = vmatprep.subr.bf16.mxu0 %v5979_v2  ;;  %3383 = vmatprep.subr.bf16.mxu1 %v5973_v58  ;;  %v5985_v2 = vld [vmem:[#allocation13 + $0xac] ss:$16 sps:$4 sm:$0xff]   ;;  %vm2643_vm12 = vcmp.eq.f32.partialorder %v8488_v63, inf }
 0x2cb   : > { %v6187_v33 = vpop.eup %6186  ;;  %6196 = vpow2.f32 %v2293_v62  ;;  %3567 = vmatpush1.bf16.msra.mxu0 %v5977_v34  ;;  %vm2645_vm13 = vcmp.eq.f32.partialorder %v8488_v63, 0.0 }
 0x2cc   : > { %v6189_v55 = vpop.eup %6188  ;;  %v8495_v31 = vadd.f32 0.0001, %v6187_v33  ;;  %v2868_v52 = vpack.c.bf16 %v2842_v49, %v2841_v54  ;;  %v2779_v49 = vld [vmem:[%s7230_s12 + $0x60] sm:$0xff] }
 0x2cd   : > { %v2149_v47 = vpop.f32.mrf.mxu1  ;;  %v2628_v14 = vmul.f32 %v6189_v55, %v8452_v41  ;;  %v5982_v33 = vld [vmem:[#allocation13 + $0xcc] ss:$16 sps:$4 sm:$0xff]   ;;  %v2639_v55 = vand.u32 2147483648, %v8461_v30 }
 0x2ce   : > { %2510 = vst [vmem:[%s8256_s25 + $0xf8] sm:$0xff] %v8495_v31  ;;  %6198 = vrsqrt.f32 %v8495_v31  ;;  %v8502_v24 = vadd.f32 %v2149_v47, %v8248_v8  ;;  %5746 = vmatmul.mubr.bf16.gmra.mxu0 %v2868_v52  ;;  %v2780_v52 = vld [vmem:[%s7230_s12 + $0x68] sm:$0xff]  ;;  %v5971_v47 = vld [vmem:[#allocation13 + $0x40] ss:$16 sps:$4 sm:$0xff]   ;;  %3568 = vmatprep.subr.bf16.mxu0 %v5982_v33  ;;  %vm2650_vm14 = vcmp.eq.f32.partialorder %v8495_v31, inf  ;;  %vm2652_vm15 = vcmp.eq.f32.partialorder %v8495_v31, 0.0 }
 0x2cf   : > { %v2151_v29 = vpop.f32.mrf.mxu1  ;;  %v2630_v27 = vsel %vm2629_vm8, %v8452_v41, %v2628_v14  ;;  %v5980_v14 = vld [vmem:[#allocation13 + $0xc8] ss:$16 sps:$4 sm:$0xff]   ;;  %3384 = vmatpush1.bf16.msra.mxu1 %v5971_v47  ;;  %v5988_v33 = vld [vmem:[#allocation13 + $0x8c] ss:$16 sps:$4 sm:$0xff]  }
 0x2d0   : > { %v6191_v32 = vpop.eup %6190  ;;  %2515 = vst [vmem:[%s8256_s25 + $0x120] sm:$0xff] %v8502_v24  ;;  %v2152_v62 = vadd.f32 %v2151_v29, %v8251_v12  ;;  %v2633_v54 = vsel %vm2631_vm9, %v2632_v11, %v2630_v27  ;;  %3569 = vmatpush1.bf16.msra.mxu0 %v5980_v14 }
 0x2d1   : > { %v2153_v7 = vpop.f32.mrf.mxu1  ;;  %v2635_v21 = vmul.f32 %v6191_v32, %v8461_v30  ;;  %v2811_v27 = vmul.f32 %v2779_v49, %v2633_v54  ;;  %v5976_v32 = vld [vmem:[#allocation13 + $0x24] ss:$16 sps:$4 sm:$0xff]   ;;  %3570 = vmatprep.subr.bf16.mxu0 %v5985_v2 }
 0x2d2   : > { %v2297_v41 = vmul.f32 1.442695, %v2152_v62  ;;  %v8517_v60 = vadd.f32 %v2153_v7, %v8248_v8  ;;  %3385 = vmatprep.subr.bf16.mxu1 %v5976_v32 }
 0x2d3   : > { %v2155_v11 = vpop.f32.mrf.mxu1  ;;  %v2637_v29 = vsel %vm2636_vm10, %v8461_v30, %v2635_v21  ;;  %v6193_v62 = vpop.eup %6192  ;;  %v5974_v21 = vld [vmem:[#allocation13 + $0x20] ss:$16 sps:$4 sm:$0xff]   ;;  %v5983_v30 = vld [vmem:[#allocation13 + $0xa8] ss:$16 sps:$4 sm:$0xff]   ;;  %v2843_v54 = vadd.f32 %v2811_v27, %v8393_v9  ;;  %v2646_v9 = vand.u32 2147483648, %v8488_v63 }
 0x2d4   : > { %6200 = vpow2.f32 %v2297_v41  ;;  %2517 = vst [vmem:[%s8256_s25 + $0x130] sm:$0xff] %v8517_v60  ;;  %v2156_v35 = vadd.f32 %v2155_v11, %v8251_v12  ;;  %v2640_v7 = vsel %vm2638_vm11, %v2639_v55, %v2637_v29  ;;  %v8524_v34 = vadd.f32 0.0001, %v6193_v62  ;;  %v5991_v41 = vld [vmem:[#allocation13 + $0x4] ss:$16 sps:$4 sm:$0xff]   ;;  %3386 = vmatpush1.bf16.msra.mxu1 %v5974_v21  ;;  %3571 = vmatpush1.bf16.msra.mxu0 %v5983_v30 }
 0x2d5   : > { %v2812_v1 = vmul.f32 %v2780_v52, %v2640_v7  ;;  %v5989_v29 = vld [vmem:[#allocation13] ss:$16 sps:$4 sm:$0xff]   ;;  %3572 = vmatprep.subr.bf16.mxu0 %v5988_v33  ;;  %3387 = vmatprep.subr.bf16.mxu1 %v5991_v41  ;;  %v2653_v30 = vand.u32 2147483648, %v8495_v31 }
 0x2d6   : > { %v2301_v51 = vmul.f32 1.442695, %v2156_v35  ;;  %2512 = vst [vmem:[%s8256_s25 + $0x108] sm:$0xff] %v8524_v34  ;;  %6202 = vrsqrt.f32 %v8524_v34  ;;  %v2781_v62 = vld [vmem:[%s7230_s12 + $0x70] sm:$0xff]  ;;  %vm2657_vm0 = vcmp.eq.f32.partialorder %v8524_v34, inf  ;;  %vm2659_vm1 = vcmp.eq.f32.partialorder %v8524_v34, 0.0 }
 0x2d7   : > { %v6195_v58 = vpop.eup %6194  ;;  %v2844_v49 = vadd.f32 %v2812_v1, %v8406_v37  ;;  %v5994_v35 = vld [vmem:[#allocation13 + $0x6c] ss:$16 sps:$4 sm:$0xff]  }
 0x2d8   : > { %v6197_v55 = vpop.eup %6196  ;;  %6204 = vpow2.f32 %v2301_v51  ;;  %v2642_v52 = vmul.f32 %v6195_v58, %v8488_v63  ;;  %v2159_v14 = vpop.f32.mrf.mxu1  ;;  %v5986_v51 = vld [vmem:[#allocation13 + $0x88] ss:$16 sps:$4 sm:$0xff]   ;;  %3388 = vmatpush1.bf16.msra.mxu1 %v5989_v29 }
 0x2d9   : > { %v8532_v47 = vadd.f32 0.0001, %v6197_v55  ;;  %v2869_v11 = vpack.c.bf16 %v2844_v49, %v2843_v54  ;;  %v8537_v1 = vadd.f32 %v2159_v14, %v8248_v8  ;;  %v2782_v58 = vld [vmem:[%s7230_s12 + $0x78] sm:$0xff]  ;;  %3573 = vmatpush1.bf16.msra.mxu0 %v5986_v51 }
 0x2da   : > { %v2644_v37 = vsel %vm2643_vm12, %v8488_v63, %v2642_v52  ;;  %v2161_v32 = vpop.f32.mrf.mxu1  ;;  %v5992_v52 = vld [vmem:[#allocation13 + $0x68] ss:$16 sps:$4 sm:$0xff]   ;;  %3574 = vmatprep.subr.bf16.mxu0 %v5994_v35  ;;  %v6000_v35 = vld [vmem:[#allocation13 + $0x2c] ss:$16 sps:$4 sm:$0xff]  }
 0x2db   : > { %v6199_v27 = vpop.eup %6198  ;;  %2514 = vst [vmem:[%s8256_s25 + $0x118] sm:$0xff] %v8532_v47  ;;  %6206 = vrsqrt.f32 %v8532_v47  ;;  %5749 = vmatprep.mubr.bf16.mxu0 %v2869_v11  ;;  %v2647_v2 = vsel %vm2645_vm13, %v2646_v9, %v2644_v37  ;;  %2519 = vst [vmem:[%s8256_s25 + $0x140] sm:$0xff] %v8537_v1  ;;  %v2162_v63 = vadd.f32 %v2161_v32, %v8251_v12  ;;  %v5997_v11 = vld [vmem:[#allocation13 + $0x4c] ss:$16 sps:$4 sm:$0xff]   ;;  %v5995_v29 = vld [vmem:[#allocation13 + $0x48] ss:$16 sps:$4 sm:$0xff]  }
 0x2dc   : > { %v2649_v7 = vmul.f32 %v6199_v27, %v8495_v31  ;;  %v2163_v21 = vpop.f32.mrf.mxu1  ;;  %v2813_v55 = vmul.f32 %v2781_v62, %v2647_v2  ;;  %vm2664_vm2 = vcmp.eq.f32.partialorder %v8532_v47, inf  ;;  %vm2666_vm3 = vcmp.eq.f32.partialorder %v8532_v47, 0.0 }
 0x2dd   : > { %v2305_v54 = vmul.f32 1.442695, %v2162_v63  ;;  %v8554_v49 = vadd.f32 %v2163_v21, %v8248_v8  ;;  %3575 = vmatpush1.bf16.msra.mxu0 %v5992_v52 }
 0x2de   : > { %v2651_v33 = vsel %vm2650_vm14, %v8495_v31, %v2649_v7  ;;  %v2165_v41 = vpop.f32.mrf.mxu1  ;;  %v2845_v31 = vadd.f32 %v2813_v55, %v8428_v25  ;;  %3576 = vmatprep.subr.bf16.mxu0 %v5997_v11  ;;  %v5998_v55 = vld [vmem:[#allocation13 + $0x28] ss:$16 sps:$4 sm:$0xff]   ;;  %v2783_v11 = vld [vmem:[%s7230_s12 + $0x80] sm:$0xff] }
 0x2df   : > { %v2654_v14 = vsel %vm2652_vm15, %v2653_v30, %v2651_v33  ;;  %6208 = vpow2.f32 %v2305_v54  ;;  %2521 = vst [vmem:[%s8256_s25 + $0x150] sm:$0xff] %v8554_v49  ;;  %v2166_v9 = vadd.f32 %v2165_v41, %v8251_v12 }
 0x2e0   : > { %v2814_v37 = vmul.f32 %v2782_v58, %v2654_v14  ;;  %v2660_v58 = vand.u32 2147483648, %v8524_v34 }
 0x2e1   : > { %v6201_v27 = vpop.eup %6200  ;;  %v2309_v63 = vmul.f32 1.442695, %v2166_v9  ;;  %3577 = vmatpush1.bf16.msra.mxu0 %v5995_v29  ;;  %v6003_v9 = vld [vmem:[#allocation13 + $0xc] ss:$16 sps:$4 sm:$0xff]  }
 0x2e2   : > { %v8560_v32 = vadd.f32 0.0001, %v6201_v27  ;;  %v2846_v51 = vadd.f32 %v2814_v37, %v8442_v48  ;;  %3578 = vmatprep.subr.bf16.mxu0 %v6000_v35  ;;  %v6001_v35 = vld [vmem:[#allocation13 + $0x8] ss:$16 sps:$4 sm:$0xff]  }
 0x2e3   : > { %v6203_v2 = vpop.eup %6202 }
 0x2e4   : > { %2516 = vst [vmem:[%s8256_s25 + $0x128] sm:$0xff] %v8560_v32  ;;  %6210 = vrsqrt.f32 %v8560_v32  ;;  %v2870_v62 = vpack.c.bf16 %v2846_v51, %v2845_v31  ;;  %v2656_v30 = vmul.f32 %v6203_v2, %v8524_v34  ;;  %v2667_v31 = vand.u32 2147483648, %v8532_v47  ;;  %v2784_v51 = vld [vmem:[%s7230_s12 + $0x88] sm:$0xff] }
 0x2e5   : > { %v6205_v7 = vpop.eup %6204  ;;  %6212 = vpow2.f32 %v2309_v63  ;;  %v2169_v21 = vpop.f32.mrf.mxu1  ;;  %3579 = vmatpush1.bf16.msra.mxu0 %v5998_v55  ;;  %vm2671_vm4 = vcmp.eq.f32.partialorder %v8560_v32, inf  ;;  %vm2673_vm5 = vcmp.eq.f32.partialorder %v8560_v32, 0.0 }
 0x2e6   : > { %v8568_v25 = vadd.f32 0.0001, %v6205_v7  ;;  %v8571_v48 = vadd.f32 %v2169_v21, %v8248_v8  ;;  %5750 = vmatmul.mubr.bf16.gmra.mxu0 %v2870_v62  ;;  %v2658_v33 = vsel %vm2657_vm0, %v8524_v34, %v2656_v30  ;;  %3580 = vmatprep.subr.bf16.mxu0 %v6003_v9 }
 0x2e7   : > { %v2171_v54 = vpop.f32.mrf.mxu1  ;;  %v2661_v14 = vsel %vm2659_vm1, %v2660_v58, %v2658_v33 }
 0x2e8   : > { %v6207_v52 = vpop.eup %6206  ;;  %2518 = vst [vmem:[%s8256_s25 + $0x138] sm:$0xff] %v8568_v25  ;;  %6214 = vrsqrt.f32 %v8568_v25  ;;  %2523 = vst [vmem:[%s8256_s25 + $0x160] sm:$0xff] %v8571_v48  ;;  %v2172_v41 = vadd.f32 %v2171_v54, %v8251_v12  ;;  %v2815_v62 = vmul.f32 %v2783_v11, %v2661_v14  ;;  %vm2678_vm6 = vcmp.eq.f32.partialorder %v8568_v25, inf }
 0x2e9   : > { %v2173_v37 = vpop.f32.mrf.mxu1  ;;  %v2663_v34 = vmul.f32 %v6207_v52, %v8532_v47  ;;  %3581 = vmatpush1.bf16.msra.mxu0 %v6001_v35  ;;  %vm2680_vm7 = vcmp.eq.f32.partialorder %v8568_v25, 0.0 }
 0x2ea   : > { %v2313_v27 = vmul.f32 1.442695, %v2172_v41  ;;  %v8586_v63 = vadd.f32 %v2173_v37, %v8248_v8  ;;  %v2847_v52 = vadd.f32 %v2815_v62, %v8464_v19 }
 0x2eb   : > { %v2175_v29 = vpop.f32.mrf.mxu1  ;;  %v2665_v2 = vsel %vm2664_vm2, %v8532_v47, %v2663_v34 }
 0x2ec   : > { %6216 = vpow2.f32 %v2313_v27  ;;  %2525 = vst [vmem:[%s8256_s25 + $0x170] sm:$0xff] %v8586_v63  ;;  %v2176_v7 = vadd.f32 %v2175_v29, %v8251_v12  ;;  %v2668_v21 = vsel %vm2666_vm3, %v2667_v31, %v2665_v2  ;;  %v6209_v30 = vpop.eup %6208  ;;  %v2785_v2 = vld [vmem:[%s7230_s12 + $0x90] sm:$0xff] }
 0x2ed   : > { %v2816_v58 = vmul.f32 %v2784_v51, %v2668_v21  ;;  %v8596_v54 = vadd.f32 0.0001, %v6209_v30  ;;  %v2786_v30 = vld [vmem:[%s7230_s12 + $0x98] sm:$0xff] }
 0x2ee   : > { %v2317_v33 = vmul.f32 1.442695, %v2176_v7 }
 0x2ef   : > { %v2848_v47 = vadd.f32 %v2816_v58, %v8478_v50  ;;  %2520 = vst [vmem:[%s8256_s25 + $0x148] sm:$0xff] %v8596_v54  ;;  %6218 = vrsqrt.f32 %v8596_v54  ;;  %v2674_v50 = vand.u32 2147483648, %v8560_v32  ;;  %vm2685_vm8 = vcmp.eq.f32.partialorder %v8596_v54, inf }
 0x2f0   : > { %6220 = vpow2.f32 %v2317_v33  ;;  %vm2687_vm9 = vcmp.eq.f32.partialorder %v8596_v54, 0.0 }
 0x2f1   : > { %v6211_v55 = vpop.eup %6210  ;;  %v2871_v41 = vpack.c.bf16 %v2848_v47, %v2847_v52  ;;  %v2179_v11 = vpop.f32.mrf.mxu1 }
 0x2f2   : > { %v6213_v14 = vpop.eup %6212  ;;  %v2670_v9 = vmul.f32 %v6211_v55, %v8560_v32  ;;  %v8607_v19 = vadd.f32 %v2179_v11, %v8248_v8 }
 0x2f3   : > { %v8604_v37 = vadd.f32 0.0001, %v6213_v14  ;;  %5753 = vmatprep.mubr.bf16.mxu0 %v2871_v41  ;;  %v2181_v34 = vpop.f32.mrf.mxu1 }
 0x2f4   : > { %v2672_v27 = vsel %vm2671_vm4, %v8560_v32, %v2670_v9  ;;  %2527 = vst [vmem:[%s8256_s25 + $0x180] sm:$0xff] %v8607_v19  ;;  %v2182_v51 = vadd.f32 %v2181_v34, %v8251_v12  ;;  %v2681_v32 = vand.u32 2147483648, %v8568_v25 }
 0x2f5   : > { %v6215_v31 = vpop.eup %6214  ;;  %2522 = vst [vmem:[%s8256_s25 + $0x158] sm:$0xff] %v8604_v37  ;;  %6222 = vrsqrt.f32 %v8604_v37  ;;  %v2675_v29 = vsel %vm2673_vm5, %v2674_v50, %v2672_v27  ;;  %v2183_v62 = vpop.f32.mrf.mxu1  ;;  %vm2692_vm10 = vcmp.eq.f32.partialorder %v8604_v37, inf  ;;  %vm2694_vm11 = vcmp.eq.f32.partialorder %v8604_v37, 0.0 }
 0x2f6   : > { %v2677_v35 = vmul.f32 %v6215_v31, %v8568_v25  ;;  %v2321_v7 = vmul.f32 1.442695, %v2182_v51  ;;  %v8622_v21 = vadd.f32 %v2183_v62, %v8248_v8  ;;  %v2817_v52 = vmul.f32 %v2785_v2, %v2675_v29 }
 0x2f7   : > { %v2185_v58 = vpop.f32.mrf.mxu1 }
 0x2f8   : > { %v2679_v33 = vsel %vm2678_vm6, %v8568_v25, %v2677_v35  ;;  %6224 = vpow2.f32 %v2321_v7  ;;  %2529 = vst [vmem:[%s8256_s25 + $0x190] sm:$0xff] %v8622_v21  ;;  %v2186_v55 = vadd.f32 %v2185_v58, %v8251_v12  ;;  %v2849_v50 = vadd.f32 %v2817_v52, %v8502_v24 }
 0x2f9   : > { %v6217_v47 = vpop.eup %6216  ;;  %v2682_v41 = vsel %vm2680_vm7, %v2681_v32, %v2679_v33  ;;  %v2787_v33 = vld [vmem:[%s7230_s12 + $0xa0] sm:$0xff] }
 0x2fa   : > { %v8632_v14 = vadd.f32 0.0001, %v6217_v47  ;;  %v2818_v11 = vmul.f32 %v2786_v30, %v2682_v41  ;;  %v2325_v9 = vmul.f32 1.442695, %v2186_v55 }
 0x2fc   : > { %2524 = vst [vmem:[%s8256_s25 + $0x168] sm:$0xff] %v8632_v14  ;;  %6226 = vrsqrt.f32 %v8632_v14  ;;  %v2850_v25 = vadd.f32 %v2818_v11, %v8517_v60  ;;  %v6219_v34 = vpop.eup %6218  ;;  %v2688_v60 = vand.u32 2147483648, %v8596_v54  ;;  %v2695_v11 = vand.u32 2147483648, %v8604_v37 }
 0x2fd   : > { %6228 = vpow2.f32 %v2325_v9  ;;  %v6221_v27 = vpop.eup %6220  ;;  %v2189_v31 = vpop.f32.mrf.mxu1  ;;  %v2684_v29 = vmul.f32 %v6219_v34, %v8596_v54  ;;  %v2788_v9 = vld [vmem:[%s7230_s12 + $0xa8] sm:$0xff]  ;;  %vm2699_vm12 = vcmp.eq.f32.partialorder %v8632_v14, inf  ;;  %vm2701_vm13 = vcmp.eq.f32.partialorder %v8632_v14, 0.0 }
 0x2fe   : > { %v2872_v51 = vpack.c.bf16 %v2850_v25, %v2849_v50  ;;  %v8640_v2 = vadd.f32 0.0001, %v6221_v27  ;;  %v8643_v62 = vadd.f32 %v2189_v31, %v8248_v8 }
 0x2ff   : > { %v2191_v35 = vpop.f32.mrf.mxu1  ;;  %v2686_v24 = vsel %vm2685_vm8, %v8596_v54, %v2684_v29 }
 0x300   : > { %5754 = vmatmul.mubr.bf16.gmra.mxu0 %v2872_v51  ;;  %2526 = vst [vmem:[%s8256_s25 + $0x178] sm:$0xff] %v8640_v2  ;;  %6230 = vrsqrt.f32 %v8640_v2  ;;  %2531 = vst [vmem:[%s8256_s25 + $0x1a0] sm:$0xff] %v8643_v62  ;;  %v2192_v7 = vadd.f32 %v2191_v35, %v8251_v12  ;;  %v2689_v58 = vsel %vm2687_vm9, %v2688_v60, %v2686_v24  ;;  %vm2706_vm14 = vcmp.eq.f32.partialorder %v8640_v2, inf }
 0x301   : > { %v2193_v30 = vpop.f32.mrf.mxu1  ;;  %v2819_v25 = vmul.f32 %v2787_v33, %v2689_v58  ;;  %vm2708_vm15 = vcmp.eq.f32.partialorder %v8640_v2, 0.0 }
 0x302   : > { %v6223_v32 = vpop.eup %6222  ;;  %v2329_v52 = vmul.f32 1.442695, %v2192_v7  ;;  %v8657_v47 = vadd.f32 %v2193_v30, %v8248_v8 }
 0x303   : > { %v2691_v55 = vmul.f32 %v6223_v32, %v8604_v37  ;;  %v2195_v41 = vpop.f32.mrf.mxu1  ;;  %v2851_v24 = vadd.f32 %v2819_v25, %v8537_v1  ;;  %v2702_v1 = vand.u32 2147483648, %v8632_v14 }
 0x304   : > { %6232 = vpow2.f32 %v2329_v52  ;;  %2533 = vst [vmem:[%s8256_s25 + $0x1b0] sm:$0xff] %v8657_v47  ;;  %v2196_v54 = vadd.f32 %v2195_v41, %v8251_v12 }
 0x305   : > { %v2693_v50 = vsel %vm2692_vm10, %v8604_v37, %v2691_v55  ;;  %v6225_v34 = vpop.eup %6224 }
 0x306   : > { %v2696_v27 = vsel %vm2694_vm11, %v2695_v11, %v2693_v50  ;;  %v8668_v31 = vadd.f32 0.0001, %v6225_v34  ;;  %v2333_v51 = vmul.f32 1.442695, %v2196_v54 }
 0x307   : > { %v2820_v29 = vmul.f32 %v2788_v9, %v2696_v27  ;;  %v2789_v9 = vld [vmem:[%s7230_s12 + $0xb0] sm:$0xff]  ;;  %v2790_v27 = vld [vmem:[%s7230_s12 + $0xb8] sm:$0xff] }
 0x308   : > { %2528 = vst [vmem:[%s8256_s25 + $0x188] sm:$0xff] %v8668_v31  ;;  %6234 = vrsqrt.f32 %v8668_v31  ;;  %vm2713_vm0 = vcmp.eq.f32.partialorder %v8668_v31, inf  ;;  %vm2715_vm1 = vcmp.eq.f32.partialorder %v8668_v31, 0.0 }
 0x309   : > { %v6227_v35 = vpop.eup %6226  ;;  %v2852_v60 = vadd.f32 %v2820_v29, %v8554_v49  ;;  %6236 = vpow2.f32 %v2333_v51 }
 0x30a   : > { %v6229_v7 = vpop.eup %6228  ;;  %v2698_v37 = vmul.f32 %v6227_v35, %v8632_v14  ;;  %v2199_v30 = vpop.f32.mrf.mxu1 }
 0x30b   : > { %v8676_v32 = vadd.f32 0.0001, %v6229_v7  ;;  %v2873_v58 = vpack.c.bf16 %v2852_v60, %v2851_v24  ;;  %v8680_v33 = vadd.f32 %v2199_v30, %v8248_v8 }
 0x30c   : > { %v2700_v52 = vsel %vm2699_vm12, %v8632_v14, %v2698_v37  ;;  %v2201_v49 = vpop.f32.mrf.mxu1  ;;  %v2709_v14 = vand.u32 2147483648, %v8640_v2 }
 0x30d   : > { %2530 = vst [vmem:[%s8256_s25 + $0x198] sm:$0xff] %v8676_v32  ;;  %6238 = vrsqrt.f32 %v8676_v32  ;;  %5757 = vmatprep.mubr.bf16.mxu0 %v2873_v58  ;;  %v6231_v55 = vpop.eup %6230  ;;  %2535 = vst [vmem:[%s8256_s25 + $0x1c0] sm:$0xff] %v8680_v33  ;;  %v2202_v41 = vadd.f32 %v2201_v49, %v8251_v12  ;;  %v2703_v11 = vsel %vm2701_vm13, %v2702_v1, %v2700_v52  ;;  %vm2720_vm2 = vcmp.eq.f32.partialorder %v8676_v32, inf }
 0x30e   : > { %v2203_v54 = vpop.f32.mrf.mxu1  ;;  %v2705_v50 = vmul.f32 %v6231_v55, %v8640_v2  ;;  %v2821_v35 = vmul.f32 %v2789_v9, %v2703_v11  ;;  %vm2722_vm3 = vcmp.eq.f32.partialorder %v8676_v32, 0.0 }
 0x30f   : > { %v2337_v25 = vmul.f32 1.442695, %v2202_v41  ;;  %v8694_v34 = vadd.f32 %v2203_v54, %v8248_v8 }
 0x310   : > { %v2205_v51 = vpop.f32.mrf.mxu1  ;;  %v2707_v29 = vsel %vm2706_vm14, %v8640_v2, %v2705_v50  ;;  %v2853_v52 = vadd.f32 %v2821_v35, %v8571_v48  ;;  %v2716_v48 = vand.u32 2147483648, %v8668_v31 }
 0x311   : > { %v6233_v24 = vpop.eup %6232  ;;  %6240 = vpow2.f32 %v2337_v25  ;;  %2537 = vst [vmem:[%s8256_s25 + $0x1d0] sm:$0xff] %v8694_v34  ;;  %v2206_v60 = vadd.f32 %v2205_v51, %v8251_v12  ;;  %v2710_v7 = vsel %vm2708_vm15, %v2709_v14, %v2707_v29  ;;  %v2791_v51 = vld [vmem:[%s7230_s12 + $0xc0] sm:$0xff] }
 0x312   : > { %v8704_v37 = vadd.f32 0.0001, %v6233_v24  ;;  %v2822_v30 = vmul.f32 %v2790_v27, %v2710_v7  ;;  %v2792_v7 = vld [vmem:[%s7230_s12 + $0xc8] sm:$0xff] }
 0x313   : > { %v2341_v58 = vmul.f32 1.442695, %v2206_v60 }
 0x314   : > { %2532 = vst [vmem:[%s8256_s25 + $0x1a8] sm:$0xff] %v8704_v37  ;;  %6242 = vrsqrt.f32 %v8704_v37  ;;  %v2854_v2 = vadd.f32 %v2822_v30, %v8586_v63  ;;  %vm2727_vm4 = vcmp.eq.f32.partialorder %v8704_v37, inf  ;;  %vm2729_vm5 = vcmp.eq.f32.partialorder %v8704_v37, 0.0 }
 0x315   : > { %v6235_v1 = vpop.eup %6234  ;;  %6244 = vpow2.f32 %v2341_v58 }
 0x316   : > { %v6237_v49 = vpop.eup %6236  ;;  %v2209_v55 = vpop.f32.mrf.mxu1  ;;  %v2874_v41 = vpack.c.bf16 %v2854_v2, %v2853_v52  ;;  %v2712_v11 = vmul.f32 %v6235_v1, %v8668_v31 }
 0x317   : > { %v8712_v9 = vadd.f32 0.0001, %v6237_v49  ;;  %v8715_v54 = vadd.f32 %v2209_v55, %v8248_v8 }
 0x318   : > { %v2211_v63 = vpop.f32.mrf.mxu1  ;;  %5758 = vmatmul.mubr.bf16.gmra.mxu0 %v2874_v41  ;;  %v2714_v50 = vsel %vm2713_vm0, %v8668_v31, %v2712_v11  ;;  %v2723_v31 = vand.u32 2147483648, %v8676_v32 }
 0x319   : > { %2534 = vst [vmem:[%s8256_s25 + $0x1b8] sm:$0xff] %v8712_v9  ;;  %6246 = vrsqrt.f32 %v8712_v9  ;;  %2539 = vst [vmem:[%s8256_s25 + $0x1e0] sm:$0xff] %v8715_v54  ;;  %v2212_v14 = vadd.f32 %v2211_v63, %v8251_v12  ;;  %v2717_v27 = vsel %vm2715_vm1, %v2716_v48, %v2714_v50  ;;  %vm2734_vm6 = vcmp.eq.f32.partialorder %v8712_v9, inf }
 0x31a   : > { %v6239_v25 = vpop.eup %6238  ;;  %v2213_v29 = vpop.f32.mrf.mxu1  ;;  %v2823_v52 = vmul.f32 %v2791_v51, %v2717_v27  ;;  %v2793_v51 = vld [vmem:[%s7230_s12 + $0xd0] sm:$0xff]  ;;  %vm2736_vm7 = vcmp.eq.f32.partialorder %v8712_v9, 0.0 }
 0x31b   : > { %v2719_v35 = vmul.f32 %v6239_v25, %v8676_v32  ;;  %v2345_v24 = vmul.f32 1.442695, %v2212_v14  ;;  %v8730_v60 = vadd.f32 %v2213_v29, %v8248_v8 }
 0x31c   : > { %v2215_v30 = vpop.f32.mrf.mxu1  ;;  %v2855_v11 = vadd.f32 %v2823_v52, %v8607_v19  ;;  %v2730_v19 = vand.u32 2147483648, %v8704_v37 }
 0x31d   : > { %v2721_v58 = vsel %vm2720_vm2, %v8676_v32, %v2719_v35  ;;  %6248 = vpow2.f32 %v2345_v24  ;;  %2541 = vst [vmem:[%s8256_s25 + $0x1f0] sm:$0xff] %v8730_v60  ;;  %v2216_v2 = vadd.f32 %v2215_v30, %v8251_v12  ;;  %v2737_v35 = vand.u32 2147483648, %v8712_v9  ;;  %v2794_v24 = vld [vmem:[%s7230_s12 + $0xd8] sm:$0xff] }
 0x31e   : > { %v2724_v1 = vsel %vm2722_vm3, %v2723_v31, %v2721_v58  ;;  %v6241_v8 = vpop.eup %6240 }
 0x31f   : > { %v2824_v49 = vmul.f32 %v2792_v7, %v2724_v1  ;;  %v2408_v55 = vadd.f32 0.0001, %v6241_v8  ;;  %v2349_v41 = vmul.f32 1.442695, %v2216_v2 }
 0x321   : > { %v2856_v48 = vadd.f32 %v2824_v49, %v8622_v21  ;;  %v6243_v63 = vpop.eup %6242  ;;  %2536 = vst [vmem:[%s8256_s25 + $0x1c8] sm:$0xff] %v2408_v55  ;;  %6250 = vrsqrt.f32 %v2408_v55  ;;  %vm2741_vm8 = vcmp.eq.f32.partialorder %v2408_v55, inf  ;;  %vm2743_vm9 = vcmp.eq.f32.partialorder %v2408_v55, 0.0 }
 0x322   : > { %v6245_v32 = vpop.eup %6244  ;;  %6252 = vpow2.f32 %v2349_v41  ;;  %v2726_v12 = vmul.f32 %v6243_v63, %v8704_v37 }
 0x323   : > { %v2875_v50 = vpack.c.bf16 %v2856_v48, %v2855_v11  ;;  %v2410_v25 = vadd.f32 0.0001, %v6245_v32 }
 0x324   : > { %v2728_v14 = vsel %vm2727_vm4, %v8704_v37, %v2726_v12  ;;  %v2795_v12 = vld [vmem:[%s7230_s12 + $0xe0] sm:$0xff] }
 0x325   : > { %5761 = vmatprep.mubr.bf16.mxu0 %v2875_v50  ;;  %2538 = vst [vmem:[%s8256_s25 + $0x1d8] sm:$0xff] %v2410_v25  ;;  %6254 = vrsqrt.f32 %v2410_v25  ;;  %v2731_v27 = vsel %vm2729_vm5, %v2730_v19, %v2728_v14  ;;  %vm2748_vm10 = vcmp.eq.f32.partialorder %v2410_v25, inf  ;;  %v2751_v14 = vand.u32 2147483648, %v2410_v25 }
 0x326   : > { %v6247_v21 = vpop.eup %6246  ;;  %v2825_v7 = vmul.f32 %v2793_v51, %v2731_v27  ;;  %vm2750_vm11 = vcmp.eq.f32.partialorder %v2410_v25, 0.0 }
 0x327   : > { %v2733_v29 = vmul.f32 %v6247_v21, %v8712_v9 }
 0x328   : > { %v2857_v37 = vadd.f32 %v2825_v7, %v8643_v62 }
 0x329   : > { %v2735_v31 = vsel %vm2734_vm6, %v8712_v9, %v2733_v29  ;;  %v2744_v9 = vand.u32 2147483648, %v2408_v55 }
 0x32a   : > { %v6249_v30 = vpop.eup %6248  ;;  %v2738_v58 = vsel %vm2736_vm7, %v2737_v35, %v2735_v31 }
 0x32b   : > { %v2412_v52 = vadd.f32 0.0001, %v6249_v30  ;;  %v2826_v2 = vmul.f32 %v2794_v24, %v2738_v58 }
 0x32d   : > { %2540 = vst [vmem:[%s8256_s25 + $0x1e8] sm:$0xff] %v2412_v52  ;;  %6256 = vrsqrt.f32 %v2412_v52  ;;  %v2858_v1 = vadd.f32 %v2826_v2, %v8657_v47  ;;  %v2796_v47 = vld [vmem:[%s7230_s12 + $0xe8] sm:$0xff]  ;;  %vm2755_vm12 = vcmp.eq.f32.partialorder %v2412_v52, inf  ;;  %v2758_v30 = vand.u32 2147483648, %v2412_v52 }
 0x32e   : > { %v6251_v8 = vpop.eup %6250  ;;  %vm2757_vm13 = vcmp.eq.f32.partialorder %v2412_v52, 0.0 }
 0x32f   : > { %v6253_v49 = vpop.eup %6252  ;;  %v2876_v41 = vpack.c.bf16 %v2858_v1, %v2857_v37  ;;  %v2740_v11 = vmul.f32 %v6251_v8, %v2408_v55  ;;  %v2798_v8 = vld [vmem:[%s7230_s12 + $0xf8] sm:$0xff] }
 0x330   : > { %v2414_v48 = vadd.f32 0.0001, %v6253_v49 }
 0x331   : > { %5762 = vmatmul.mubr.bf16.gmra.mxu0 %v2876_v41  ;;  %v2742_v63 = vsel %vm2741_vm8, %v2408_v55, %v2740_v11 }
 0x332   : > { %v6255_v32 = vpop.eup %6254  ;;  %2542 = vst [vmem:[%s8256_s25 + $0x1f8] sm:$0xff] %v2414_v48  ;;  %6258 = vrsqrt.f32 %v2414_v48  ;;  %v2745_v50 = vsel %vm2743_vm9, %v2744_v9, %v2742_v63  ;;  %vm2762_vm14 = vcmp.eq.f32.partialorder %v2414_v48, inf  ;;  %v2765_v1 = vand.u32 2147483648, %v2414_v48 }
 0x333   : > { %v2747_v62 = vmul.f32 %v6255_v32, %v2410_v25  ;;  %v2827_v21 = vmul.f32 %v2795_v12, %v2745_v50  ;;  %vm2764_vm15 = vcmp.eq.f32.partialorder %v2414_v48, 0.0  ;;  %v10174_v32 = vmov 0   ;;  %v8772_v12 = vld [vmem:[%s9853_s9] ss:$0 sm:$0xff] }
 0x335   : > { %v2749_v19 = vsel %vm2748_vm10, %v2410_v25, %v2747_v62  ;;  %v2859_v29 = vadd.f32 %v2827_v21, %v8680_v33  ;;  %v2797_v25 = vld [vmem:[%s7230_s12 + $0xf0] sm:$0xff]  ;;  %s9606_s12 = scalar_lea.hbm %s9857_s13, %s5580_s14 }
 0x336   : > { %v2752_v27 = vsel %vm2750_vm11, %v2751_v14, %v2749_v19 }
 0x337   : > { %v2828_v51 = vmul.f32 %v2796_v47, %v2752_v27 }
 0x339   : > { %v2860_v55 = vadd.f32 %v2828_v51, %v8694_v34 }
 0x33a   : > { %v6257_v35 = vpop.eup %6256 }
 0x33b   : > { %v2877_v24 = vpack.c.bf16 %v2860_v55, %v2859_v29  ;;  %v2754_v31 = vmul.f32 %v6257_v35, %v2412_v52 }
 0x33d   : > { %5765 = vmatprep.mubr.bf16.mxu0 %v2877_v24  ;;  %v2756_v7 = vsel %vm2755_vm12, %v2412_v52, %v2754_v31 }
 0x33e   : > { %v2759_v2 = vsel %vm2757_vm13, %v2758_v30, %v2756_v7 }
 0x33f   : > { %v6259_v58 = vpop.eup %6258  ;;  %v2829_v33 = vmul.f32 %v2797_v25, %v2759_v2 }
 0x340   : > { %v2761_v37 = vmul.f32 %v6259_v58, %v2414_v48 }
 0x341   : > { %v2861_v11 = vadd.f32 %v2829_v33, %v8715_v54 }
 0x342   : > { %v2763_v49 = vsel %vm2762_vm14, %v2414_v48, %v2761_v37 }
 0x343   : > { %v2766_v41 = vsel %vm2764_vm15, %v2765_v1, %v2763_v49 }
 0x344   : > { %v2830_v34 = vmul.f32 %v2798_v8, %v2766_v41 }
 0x346   : > { %v2862_v9 = vadd.f32 %v2830_v34, %v8730_v60 }
 0x348   : > { %v2878_v63 = vpack.c.bf16 %v2862_v9, %v2861_v11 }
 0x34a   : > { %5766 = vmatmul.mubr.bf16.gmra.mxu0 %v2878_v63 }
 0x34b   : > { %3598 = vmatprep.mubr.bf16.mxu0 %v10174_v32 }
 0x35b   : > { %v5739_v52 = vpop.f32.mrf.mxu0 }
 0x35c   : > { %v2993_v27 = vadd.f32 %v5739_v52, %v8772_v12 }
 0x35d   : > { %v2984_v50 = vpop.f32.mrf.mxu0 }
 0x35e   : > { %v2985_v48 = vadd.f32 %v8772_v12, %v2984_v50  ;;  %v3113_v29 = vmax.f32 %v2993_v27, 0.0  ;;  %v723_v27 = vadd.f32 %v7291_v44, %v7295_v46 }
 0x35f   : > { %v5740_v62 = vpop.f32.mrf.mxu0 }
 0x360   : > { %v3111_v54 = vmax.f32 %v2985_v48, 0.0  ;;  %v2996_v60 = vadd.f32 %v5740_v62, %v8772_v12  ;;  %724 = vadd.xlane.f32.xlu1 %v723_v27 }
 0x361   : > { %v2987_v14 = vpop.f32.mrf.mxu0 }
 0x362   : > { %v2988_v47 = vadd.f32 %v8772_v12, %v2987_v14  ;;  %v3114_v51 = vmax.f32 %v2996_v60, 0.0 }
 0x364   : > { %v3112_v19 = vmax.f32 %v2988_v47, 0.0  ;;  %v3144_v55 = vpack.c.bf16 %v3114_v51, %v3113_v29  ;;  %v720_v29 = vadd.f32 %v7256_v17, %v7267_v22  ;;  %v735_v22 = vadd.f32 %v7409_v42, %v7452_v36 }
 0x366   : > { %v3143_v21 = vpack.c.bf16 %v3112_v19, %v3111_v54 }
 0x368   : > { %3406 = vmatmul.mubr.bf16.vlgmr.msra.gmra.mxu1 %v3143_v21  ;;  %3599 = vmatmul.mubr.bf16.vlgmr.msra.gmra.mxu0 %v3143_v21  ;;  %v717_v21 = vadd.f32 %v7254_v16, %v7252_v15  ;;  %v729_v15 = vadd.f32 %v7325_v0, %v7383_v3  ;;  %v732_v16 = vadd.f32 %v7340_v13, %v7389_v6 }
 0x369   : > { %3415 = vmatprep.mubr.bf16.mxu1 %v10174_v32  ;;  %3608 = vmatprep.mubr.bf16.mxu0 %v10174_v32 }
 0x36a   : > { %718 = vadd.xlane.f32.xlu0 %v717_v21 }
 0x36e   : > { %721 = vadd.xlane.f32.xlu0 %v720_v29 }
 0x370   : > { %3416 = vmatmul.mubr.bf16.gmra.mxu1 %v3144_v55  ;;  %3609 = vmatmul.mubr.bf16.gmra.mxu0 %v3144_v55  ;;  %v726_v55 = vadd.f32 %v7293_v45, %v7314_v56 }
 0x371   : > { %3425 = vmatprep.mubr.bf16.mxu1 %v10174_v32  ;;  %3618 = vmatprep.mubr.bf16.mxu0 %v10174_v32 }
 0x372   : > { %727 = vadd.xlane.f32.xlu1 %v726_v55  ;;  %730 = vadd.xlane.f32.xlu0 %v729_v15 }
 0x376   : > { %v5743_v35 = vpop.f32.mrf.mxu0  ;;  %733 = vadd.xlane.f32.xlu1 %v732_v16  ;;  %736 = vadd.xlane.f32.xlu0 %v735_v22 }
 0x377   : > { %v3009_v8 = vadd.f32 %v5743_v35, %v8772_v12 }
 0x378   : > { %v3000_v24 = vpop.f32.mrf.mxu0 }
 0x379   : > { %v3001_v7 = vadd.f32 %v8772_v12, %v3000_v24  ;;  %v3117_v33 = vmax.f32 %v3009_v8, 0.0 }
 0x37a   : > { %v5744_v31 = vpop.f32.mrf.mxu0 }
 0x37b   : > { %v3115_v2 = vmax.f32 %v3001_v7, 0.0  ;;  %v3012_v37 = vadd.f32 %v5744_v31, %v8772_v12 }
 0x37c   : > { %v3003_v30 = vpop.f32.mrf.mxu0 }
 0x37d   : > { %v3004_v58 = vadd.f32 %v8772_v12, %v3003_v30  ;;  %v3118_v49 = vmax.f32 %v3012_v37, 0.0  ;;  %v738_v30 = vadd.f32 %v7422_v59, %v7454_v39 }
 0x37f   : > { %v3116_v25 = vmax.f32 %v3004_v58, 0.0  ;;  %v3146_v41 = vpack.c.bf16 %v3118_v49, %v3117_v33  ;;  %v741_v58 = vadd.f32 %v7461_v57, %v7497_v43  ;;  %739 = vadd.xlane.f32.xlu1 %v738_v30 }
 0x381   : > { %v3145_v1 = vpack.c.bf16 %v3116_v25, %v3115_v2  ;;  %742 = vadd.xlane.f32.xlu0 %v741_v58 }
 0x383   : > { %3426 = vmatmul.mubr.bf16.gmra.mxu1 %v3145_v1  ;;  %3619 = vmatmul.mubr.bf16.gmra.mxu0 %v3145_v1  ;;  %v744_v1 = vadd.f32 %v7466_v53, %v7499_v23 }
 0x384   : > { %3435 = vmatprep.mubr.bf16.mxu1 %v10174_v32  ;;  %3628 = vmatprep.mubr.bf16.mxu0 %v10174_v32 }
 0x385   : > { %745 = vadd.xlane.f32.xlu1 %v744_v1 }
 0x38b   : > { %3436 = vmatmul.mubr.bf16.gmra.mxu1 %v3146_v41  ;;  %3629 = vmatmul.mubr.bf16.gmra.mxu0 %v3146_v41 }
 0x38c   : > { %3445 = vmatprep.mubr.bf16.mxu1 %v10174_v32  ;;  %3638 = vmatprep.mubr.bf16.mxu0 %v10174_v32 }
 0x38e   : > { %v5747_v34 = vpop.f32.mrf.mxu0 }
 0x38f   : > { %v3025_v54 = vadd.f32 %v5747_v34, %v8772_v12 }
 0x390   : > { %v3016_v11 = vpop.f32.mrf.mxu0 }
 0x391   : > { %v3017_v63 = vadd.f32 %v8772_v12, %v3016_v11  ;;  %v3121_v60 = vmax.f32 %v3025_v54, 0.0 }
 0x392   : > { %v5748_v9 = vpop.f32.mrf.mxu0 }
 0x393   : > { %v3119_v62 = vmax.f32 %v3017_v63, 0.0  ;;  %v3028_v14 = vadd.f32 %v5748_v9, %v8772_v12 }
 0x394   : > { %v3019_v52 = vpop.f32.mrf.mxu0 }
 0x395   : > { %v3020_v50 = vadd.f32 %v8772_v12, %v3019_v52  ;;  %v3122_v19 = vmax.f32 %v3028_v14, 0.0 }
 0x397   : > { %v3120_v48 = vmax.f32 %v3020_v50, 0.0  ;;  %v3148_v51 = vpack.c.bf16 %v3122_v19, %v3121_v60 }
 0x399   : > { %v3147_v47 = vpack.c.bf16 %v3120_v48, %v3119_v62 }
 0x39b   : > { %3446 = vmatmul.mubr.bf16.gmra.mxu1 %v3147_v47  ;;  %3639 = vmatmul.mubr.bf16.gmra.mxu0 %v3147_v47 }
 0x39c   : > { %3455 = vmatprep.mubr.bf16.mxu1 %v10174_v32  ;;  %3648 = vmatprep.mubr.bf16.mxu0 %v10174_v32 }
 0x3a3   : > { %3456 = vmatmul.mubr.bf16.gmra.mxu1 %v3148_v51  ;;  %3649 = vmatmul.mubr.bf16.gmra.mxu0 %v3148_v51 }
 0x3a4   : > { %3465 = vmatprep.mubr.bf16.mxu1 %v10174_v32  ;;  %3658 = vmatprep.mubr.bf16.mxu0 %v10174_v32 }
 0x3a6   : > { %v5751_v35 = vpop.f32.mrf.mxu0 }
 0x3a7   : > { %v3041_v13 = vadd.f32 %v5751_v35, %v8772_v12 }
 0x3a8   : > { %v3032_v44 = vpop.f32.mrf.mxu0 }
 0x3a9   : > { %v3033_v45 = vadd.f32 %v8772_v12, %v3032_v44  ;;  %v3125_v42 = vmax.f32 %v3041_v13, 0.0 }
 0x3aa   : > { %v5752_v17 = vpop.f32.mrf.mxu0 }
 0x3ab   : > { %v3123_v24 = vmax.f32 %v3033_v45, 0.0  ;;  %v3044_v0 = vadd.f32 %v5752_v17, %v8772_v12 }
 0x3ac   : > { %v3035_v46 = vpop.f32.mrf.mxu0 }
 0x3ad   : > { %v3036_v56 = vadd.f32 %v8772_v12, %v3035_v46  ;;  %v3126_v6 = vmax.f32 %v3044_v0, 0.0 }
 0x3af   : > { %v3124_v31 = vmax.f32 %v3036_v56, 0.0  ;;  %v3150_v36 = vpack.c.bf16 %v3126_v6, %v3125_v42 }
 0x3b1   : > { %v3149_v3 = vpack.c.bf16 %v3124_v31, %v3123_v24 }
 0x3b3   : > { %3466 = vmatmul.mubr.bf16.gmra.mxu1 %v3149_v3  ;;  %3659 = vmatmul.mubr.bf16.gmra.mxu0 %v3149_v3 }
 0x3b4   : > { %3475 = vmatprep.mubr.bf16.mxu1 %v10174_v32  ;;  %3668 = vmatprep.mubr.bf16.mxu0 %v10174_v32 }
 0x3bb   : > { %3476 = vmatmul.mubr.bf16.gmra.mxu1 %v3150_v36  ;;  %3669 = vmatmul.mubr.bf16.gmra.mxu0 %v3150_v36 }
 0x3bc   : > { %3485 = vmatprep.mubr.bf16.mxu1 %v10174_v32  ;;  %3678 = vmatprep.mubr.bf16.mxu0 %v10174_v32 }
 0x3c0   : > { %v5755_v7 = vpop.f32.mrf.mxu0 }
 0x3c1   : > { %v3057_v57 = vadd.f32 %v5755_v7, %v8772_v12 }
 0x3c2   : > { %v3048_v2 = vpop.f32.mrf.mxu0 }
 0x3c3   : > { %v3049_v37 = vadd.f32 %v8772_v12, %v3048_v2  ;;  %v3129_v34 = vmax.f32 %v3057_v57, 0.0 }
 0x3c4   : > { %v5756_v25 = vpop.f32.mrf.mxu0 }
 0x3c5   : > { %v3127_v33 = vmax.f32 %v3049_v37, 0.0  ;;  %v3060_v59 = vadd.f32 %v5756_v25, %v8772_v12 }
 0x3c6   : > { %v3051_v8 = vpop.f32.mrf.mxu0 }
 0x3c7   : > { %v3052_v49 = vadd.f32 %v8772_v12, %v3051_v8  ;;  %v3130_v43 = vmax.f32 %v3060_v59, 0.0  ;;  %v3203_v8 = vsub.s32 2, %v7248_v10 }
 0x3c9   : > { %v3128_v41 = vmax.f32 %v3052_v49, 0.0  ;;  %v3152_v53 = vpack.c.bf16 %v3130_v43, %v3129_v34  ;;  %v3191_v49 = vld [vmem:[%s9855_s11] sm:$0xf] }
 0x3cb   : > { %v3151_v39 = vpack.c.bf16 %v3128_v41, %v3127_v33  ;;  %v3207_v33 = vsub.s32 3, %v7248_v10  ;;  %v8864_v41 = vrot.slane %v3191_v49, %v7265_v20 }
 0x3cd   : > { %3486 = vmatmul.mubr.bf16.gmra.mxu1 %v3151_v39  ;;  %3679 = vmatmul.mubr.bf16.gmra.mxu0 %v3151_v39  ;;  %v8866_v59 = vrot.slane %v3191_v49, %v3207_v33 }
 0x3ce   : > { %3495 = vmatprep.mubr.bf16.mxu1 %v10174_v32  ;;  %3688 = vmatprep.mubr.bf16.mxu0 %v10174_v32 }
 0x3d5   : > { %3496 = vmatmul.mubr.bf16.gmra.mxu1 %v3152_v53  ;;  %3689 = vmatmul.mubr.bf16.gmra.mxu0 %v3152_v53 }
 0x3d6   : > { %3505 = vmatprep.mubr.bf16.mxu1 %v10174_v32  ;;  %3698 = vmatprep.mubr.bf16.mxu0 %v10174_v32 }
 0x3d8   : > { %v5759_v23 = vpop.f32.mrf.mxu0 }
 0x3d9   : > { %v3073_v54 = vadd.f32 %v5759_v23, %v8772_v12 }
 0x3da   : > { %v3064_v11 = vpop.f32.mrf.mxu0 }
 0x3db   : > { %v3065_v63 = vadd.f32 %v8772_v12, %v3064_v11  ;;  %v3133_v60 = vmax.f32 %v3073_v54, 0.0 }
 0x3dc   : > { %v5760_v9 = vpop.f32.mrf.mxu0 }
 0x3dd   : > { %v3131_v62 = vmax.f32 %v3065_v63, 0.0  ;;  %v3076_v14 = vadd.f32 %v5760_v9, %v8772_v12 }
 0x3de   : > { %v3067_v52 = vpop.f32.mrf.mxu0 }
 0x3df   : > { %v3068_v50 = vadd.f32 %v8772_v12, %v3067_v52  ;;  %v3134_v19 = vmax.f32 %v3076_v14, 0.0 }
 0x3e1   : > { %v3132_v48 = vmax.f32 %v3068_v50, 0.0  ;;  %v3154_v21 = vpack.c.bf16 %v3134_v19, %v3133_v60 }
 0x3e3   : > { %v3153_v47 = vpack.c.bf16 %v3132_v48, %v3131_v62 }
 0x3e5   : > { %3506 = vmatmul.mubr.bf16.gmra.mxu1 %v3153_v47  ;;  %3699 = vmatmul.mubr.bf16.gmra.mxu0 %v3153_v47 }
 0x3e6   : > { %3515 = vmatprep.mubr.bf16.mxu1 %v10174_v32  ;;  %3708 = vmatprep.mubr.bf16.mxu0 %v10174_v32 }
 0x3ed   : > { %3516 = vmatmul.mubr.bf16.gmra.mxu1 %v3154_v21  ;;  %3709 = vmatmul.mubr.bf16.gmra.mxu0 %v3154_v21 }
 0x3ee   : > { %3525 = vmatprep.mubr.bf16.mxu1 %v10174_v32  ;;  %3718 = vmatprep.mubr.bf16.mxu0 %v10174_v32 }
 0x3f1   : > { %v5763_v27 = vpop.f32.mrf.mxu0 }
 0x3f2   : > { %v3089_v45 = vadd.f32 %v5763_v27, %v8772_v12 }
 0x3f3   : > { %v3080_v51 = vpop.f32.mrf.mxu0 }
 0x3f4   : > { %v3081_v55 = vadd.f32 %v8772_v12, %v3080_v51  ;;  %v3137_v56 = vmax.f32 %v3089_v45, 0.0 }
 0x3f5   : > { %v5764_v29 = vpop.f32.mrf.mxu0 }
 0x3f6   : > { %v3135_v16 = vmax.f32 %v3081_v55, 0.0  ;;  %v3092_v17 = vadd.f32 %v5764_v29, %v8772_v12 }
 0x3f7   : > { %v3083_v35 = vpop.f32.mrf.mxu0 }
 0x3f8   : > { %v3084_v15 = vadd.f32 %v8772_v12, %v3083_v35  ;;  %v3138_v46 = vmax.f32 %v3092_v17, 0.0 }
 0x3fa   : > { %v3136_v44 = vmax.f32 %v3084_v15, 0.0  ;;  %v3156_v24 = vpack.c.bf16 %v3138_v46, %v3137_v56 }
 0x3fc   : > { %v3155_v22 = vpack.c.bf16 %v3136_v44, %v3135_v16 }
 0x3fe   : > { %3526 = vmatmul.mubr.bf16.gmra.mxu1 %v3155_v22  ;;  %3719 = vmatmul.mubr.bf16.gmra.mxu0 %v3155_v22 }
 0x3ff   : > { %3535 = vmatprep.mubr.bf16.mxu1 %v10174_v32  ;;  %3728 = vmatprep.mubr.bf16.mxu0 %v10174_v32 }
 0x406   : > { %3536 = vmatmul.mubr.bf16.gmra.mxu1 %v3156_v24  ;;  %3729 = vmatmul.mubr.bf16.gmra.mxu0 %v3156_v24 }
 0x407   : > { %3545 = vmatprep.mubr.bf16.mxu1 %v10174_v32  ;;  %3738 = vmatprep.mubr.bf16.mxu0 %v10174_v32 }
 0x40a   : > { %v5767_v31 = vpop.f32.mrf.mxu0 }
 0x40b   : > { %v3105_v2 = vadd.f32 %v5767_v31, %v8772_v12 }
 0x40c   : > { %v3096_v0 = vpop.f32.mrf.mxu0 }
 0x40d   : > { %v3097_v13 = vadd.f32 %v8772_v12, %v3096_v0  ;;  %v3141_v37 = vmax.f32 %v3105_v2, 0.0 }
 0x40e   : > { %v5768_v3 = vpop.f32.mrf.mxu0 }
 0x40f   : > { %v3139_v36 = vmax.f32 %v3097_v13, 0.0  ;;  %v3108_v30 = vadd.f32 %v5768_v3, %v8772_v12 }
 0x410   : > { %v3099_v6 = vpop.f32.mrf.mxu0 }
 0x411   : > { %v3100_v42 = vadd.f32 %v8772_v12, %v3099_v6  ;;  %v3142_v25 = vmax.f32 %v3108_v30, 0.0  ;;  %v8861_v12 = vrot.slane %v3191_v49, %v3203_v8 }
 0x413   : > { %v3140_v7 = vmax.f32 %v3100_v42, 0.0  ;;  %v3158_v1 = vpack.c.bf16 %v3142_v25, %v3141_v37 }
 0x415   : > { %v3157_v58 = vpack.c.bf16 %v3140_v7, %v3139_v36 }
 0x417   : > { %3546 = vmatmul.mubr.bf16.gmra.mxu1 %v3157_v58  ;;  %3739 = vmatmul.mubr.bf16.gmra.mxu0 %v3157_v58 }
 0x418   : > { %3555 = vmatprep.mubr.bf16.mxu1 %v10174_v32  ;;  %3748 = vmatprep.mubr.bf16.mxu0 %v10174_v32  ;;  %v8869_v32 = vrot.slane %v3191_v49, %v7259_v18 }
 0x41f   : > { %3556 = vmatmul.mubr.bf16.gmra.mxu1 %v3158_v1  ;;  %3749 = vmatmul.mubr.bf16.gmra.mxu0 %v3158_v1 }
 0x428   : > { %v3407_v39 = vpop.f32.mrf.mxu1  ;;  %v3600_v57 = vpop.f32.mrf.mxu0 }
 0x429   : > { %v3601_v43 = vadd.f32 %v3600_v57, %v8861_v12  ;;  %v8877_v20 = vadd.f32 %v3407_v39, %v8869_v32 }
 0x42a   : > { %v3409_v34 = vpop.f32.mrf.mxu1  ;;  %v3602_v53 = vpop.f32.mrf.mxu0 }
 0x42b   : > { %v5402_v23 = vclamps-f32 %v3601_v43, 15.0  ;;  %v8873_v11 = vadd.f32 %v3409_v34, %v8864_v41  ;;  %v3603_v10 = vadd.f32 %v3602_v53, %v8866_v59 }
 0x42c   : > { %v3411_v9 = vpop.f32.mrf.mxu1  ;;  %v3604_v63 = vpop.f32.mrf.mxu0 }
 0x42d   : > { %v4655_v52 = vmul.f32 1.442695, %v5402_v23  ;;  %v5403_v18 = vclamps-f32 %v3603_v10, 15.0  ;;  %v3605_v50 = vadd.f32 %v3604_v63, %v8861_v12  ;;  %v3759_v14 = vmax.f32 %v8877_v20, %v8873_v11 }
 0x42e   : > { %v3413_v62 = vpop.f32.mrf.mxu1  ;;  %v3606_v48 = vpop.f32.mrf.mxu0  ;;  %v8886_v60 = vadd.f32 %v3411_v9, %v8869_v32 }
 0x42f   : > { %v4657_v47 = vmul.f32 1.442695, %v5403_v18  ;;  %v5404_v54 = vclamps-f32 %v3605_v50, 15.0  ;;  %v8883_v19 = vadd.f32 %v3413_v62, %v8864_v41  ;;  %6260 = vpow2.f32 %v4655_v52  ;;  %3760 = vmax.xlane.f32.xlu0 %v3759_v14 }
 0x430   : > { %v3607_v21 = vadd.f32 %v3606_v48, %v8866_v59  ;;  %v3417_v27 = vpop.f32.mrf.mxu1  ;;  %v3610_v51 = vpop.f32.mrf.mxu0 }
 0x431   : > { %6262 = vpow2.f32 %v4657_v47  ;;  %v4659_v29 = vmul.f32 1.442695, %v5404_v54  ;;  %v3611_v55 = vadd.f32 %v3610_v51, %v8861_v12  ;;  %v3762_v44 = vmax.f32 %v8886_v60, %v8883_v19 }
 0x432   : > { %v5405_v35 = vclamps-f32 %v3607_v21, 15.0  ;;  %v3419_v15 = vpop.f32.mrf.mxu1  ;;  %v3612_v16 = vpop.f32.mrf.mxu0  ;;  %v8897_v56 = vadd.f32 %v3417_v27, %v8869_v32 }
 0x433   : > { %v5406_v17 = vclamps-f32 %v3611_v55, 15.0  ;;  %v8893_v22 = vadd.f32 %v3419_v15, %v8864_v41  ;;  %v3613_v45 = vadd.f32 %v3612_v16, %v8866_v59  ;;  %3763 = vmax.xlane.f32.xlu1 %v3762_v44  ;;  %6264 = vpow2.f32 %v4659_v29 }
 0x434   : > { %v4661_v46 = vmul.f32 1.442695, %v5405_v35  ;;  %v3421_v24 = vpop.f32.mrf.mxu1  ;;  %v3614_v31 = vpop.f32.mrf.mxu0 }
 0x435   : > { %v4663_v0 = vmul.f32 1.442695, %v5406_v17  ;;  %v5407_v3 = vclamps-f32 %v3613_v45, 15.0  ;;  %v3615_v13 = vadd.f32 %v3614_v31, %v8861_v12  ;;  %v3765_v36 = vmax.f32 %v8897_v56, %v8893_v22 }
 0x436   : > { %6266 = vpow2.f32 %v4661_v46  ;;  %v3423_v6 = vpop.f32.mrf.mxu1  ;;  %v3616_v42 = vpop.f32.mrf.mxu0  ;;  %v8903_v30 = vadd.f32 %v3421_v24, %v8869_v32 }
 0x437   : > { %v4665_v7 = vmul.f32 1.442695, %v5407_v3  ;;  %v5408_v58 = vclamps-f32 %v3615_v13, 15.0  ;;  %v8906_v2 = vadd.f32 %v3423_v6, %v8864_v41  ;;  %6268 = vpow2.f32 %v4663_v0  ;;  %3766 = vmax.xlane.f32.xlu0 %v3765_v36 }
 0x438   : > { %v3617_v25 = vadd.f32 %v3616_v42, %v8866_v59 }
 0x439   : > { %6270 = vpow2.f32 %v4665_v7  ;;  %v4667_v37 = vmul.f32 1.442695, %v5408_v58  ;;  %v3768_v1 = vmax.f32 %v8903_v30, %v8906_v2 }
 0x43a   : > { %v5409_v8 = vclamps-f32 %v3617_v25, 15.0 }
 0x43b   : > { %3769 = vmax.xlane.f32.xlu1 %v3768_v1  ;;  %6272 = vpow2.f32 %v4667_v37 }
 0x43c   : > { %v4669_v49 = vmul.f32 1.442695, %v5409_v8  ;;  %v6261_v33 = vpop.eup %6260 }
 0x43e   : > { %v6263_v39 = vpop.eup %6262  ;;  %6274 = vpow2.f32 %v4669_v49 }
 0x43f   : > { %v5547_v57 = vpack.c.bf16 %v6263_v39, %v6261_v33 }
 0x440   : > { %v6265_v43 = vpop.eup %6264 }
 0x441   : > { %4975 = vst [vmem:[%s8912_s24] sm:$0xff] %v5547_v57 }
 0x443   : > { %v6267_v34 = vpop.eup %6266  ;;  %v3427_v23 = vpop.f32.mrf.mxu1 }
 0x444   : > { %v5548_v53 = vpack.c.bf16 %v6267_v34, %v6265_v43  ;;  %v3620_v10 = vpop.f32.mrf.mxu0  ;;  %v6269_v9 = vpop.eup %6268  ;;  %v8922_v54 = vadd.f32 %v3427_v23, %v8869_v32 }
 0x445   : > { %v3621_v63 = vadd.f32 %v3620_v10, %v8861_v12  ;;  %v3429_v18 = vpop.f32.mrf.mxu1 }
 0x446   : > { %v6271_v52 = vpop.eup %6270  ;;  %4976 = vst [vmem:[%s8912_s24 + $0x8] sm:$0xff] %v5548_v53  ;;  %v3622_v50 = vpop.f32.mrf.mxu0  ;;  %v8918_v14 = vadd.f32 %v3429_v18, %v8864_v41 }
 0x447   : > { %v5549_v62 = vpack.c.bf16 %v6271_v52, %v6269_v9  ;;  %v5410_v48 = vclamps-f32 %v3621_v63, 15.0  ;;  %v3623_v47 = vadd.f32 %v3622_v50, %v8866_v59  ;;  %v3431_v21 = vpop.f32.mrf.mxu1 }
 0x448   : > { %v3624_v27 = vpop.f32.mrf.mxu0  ;;  %v6273_v35 = vpop.eup %6272  ;;  %v3771_v44 = vmax.f32 %v8922_v54, %v8918_v14  ;;  %v8932_v0 = vadd.f32 %v3431_v21, %v8869_v32 }
 0x449   : > { %4977 = vst [vmem:[%s8912_s24 + $0x10] sm:$0xff] %v5549_v62  ;;  %v4671_v51 = vmul.f32 1.442695, %v5410_v48  ;;  %v5411_v29 = vclamps-f32 %v3623_v47, 15.0  ;;  %v3625_v55 = vadd.f32 %v3624_v27, %v8861_v12  ;;  %v3433_v15 = vpop.f32.mrf.mxu1 }
 0x44a   : > { %v3626_v16 = vpop.f32.mrf.mxu0  ;;  %v8929_v24 = vadd.f32 %v3433_v15, %v8864_v41  ;;  %3772 = vmax.xlane.f32.xlu0 %v3771_v44 }
 0x44b   : > { %v6275_v17 = vpop.eup %6274  ;;  %v4673_v45 = vmul.f32 1.442695, %v5411_v29  ;;  %v5412_v46 = vclamps-f32 %v3625_v55, 15.0  ;;  %6276 = vpow2.f32 %v4671_v51  ;;  %v3627_v3 = vadd.f32 %v3626_v16, %v8866_v59  ;;  %v3437_v13 = vpop.f32.mrf.mxu1 }
 0x44c   : > { %v5550_v31 = vpack.c.bf16 %v6275_v17, %v6273_v35  ;;  %v3630_v6 = vpop.f32.mrf.mxu0  ;;  %v3774_v37 = vmax.f32 %v8932_v0, %v8929_v24  ;;  %v8944_v39 = vadd.f32 %v3437_v13, %v8869_v32 }
 0x44d   : > { %6278 = vpow2.f32 %v4673_v45  ;;  %v4675_v42 = vmul.f32 1.442695, %v5412_v46  ;;  %v3631_v36 = vadd.f32 %v3630_v6, %v8861_v12  ;;  %v5413_v7 = vclamps-f32 %v3627_v3, 15.0  ;;  %v3439_v58 = vpop.f32.mrf.mxu1 }
 0x44e   : > { %4978 = vst [vmem:[%s8912_s24 + $0x18] sm:$0xff] %v5550_v31  ;;  %v3632_v25 = vpop.f32.mrf.mxu0  ;;  %v8940_v8 = vadd.f32 %v3439_v58, %v8864_v41  ;;  %3775 = vmax.xlane.f32.xlu1 %v3774_v37 }
 0x44f   : > { %v5414_v1 = vclamps-f32 %v3631_v36, 15.0  ;;  %v3633_v49 = vadd.f32 %v3632_v25, %v8866_v59  ;;  %v4677_v33 = vmul.f32 1.442695, %v5413_v7  ;;  %v3441_v57 = vpop.f32.mrf.mxu1  ;;  %6280 = vpow2.f32 %v4675_v42 }
 0x450   : > { %v3634_v43 = vpop.f32.mrf.mxu0  ;;  %v3777_v63 = vmax.f32 %v8944_v39, %v8940_v8  ;;  %v8950_v18 = vadd.f32 %v3441_v57, %v8869_v32 }
 0x451   : > { %v4679_v34 = vmul.f32 1.442695, %v5414_v1  ;;  %v5415_v53 = vclamps-f32 %v3633_v49, 15.0  ;;  %v3635_v23 = vadd.f32 %v3634_v43, %v8861_v12  ;;  %6282 = vpow2.f32 %v4677_v33  ;;  %v3443_v10 = vpop.f32.mrf.mxu1 }
 0x452   : > { %v3636_v9 = vpop.f32.mrf.mxu0  ;;  %v8953_v62 = vadd.f32 %v3443_v10, %v8864_v41  ;;  %3778 = vmax.xlane.f32.xlu0 %v3777_v63 }
 0x453   : > { %v4681_v52 = vmul.f32 1.442695, %v5415_v53  ;;  %v5416_v50 = vclamps-f32 %v3635_v23, 15.0  ;;  %6284 = vpow2.f32 %v4679_v34  ;;  %v3637_v48 = vadd.f32 %v3636_v9, %v8866_v59 }
 0x454   : > { %v3780_v21 = vmax.f32 %v8950_v18, %v8953_v62 }
 0x455   : > { %6286 = vpow2.f32 %v4681_v52  ;;  %v4683_v47 = vmul.f32 1.442695, %v5416_v50  ;;  %v5417_v27 = vclamps-f32 %v3637_v48, 15.0 }
 0x456   : > { %3781 = vmax.xlane.f32.xlu1 %v3780_v21 }
 0x457   : > { %v4685_v51 = vmul.f32 1.442695, %v5417_v27  ;;  %6288 = vpow2.f32 %v4683_v47 }
 0x458   : > { %v6277_v29 = vpop.eup %6276 }
 0x459   : > { %6290 = vpow2.f32 %v4685_v51 }
 0x45a   : > { %v6279_v55 = vpop.eup %6278 }
 0x45b   : > { %v5551_v35 = vpack.c.bf16 %v6279_v55, %v6277_v29  ;;  %v3447_v15 = vpop.f32.mrf.mxu1  ;;  %v3640_v16 = vpop.f32.mrf.mxu0 }
 0x45c   : > { %v3641_v44 = vadd.f32 %v3640_v16, %v8861_v12  ;;  %v6281_v17 = vpop.eup %6280  ;;  %v8965_v36 = vadd.f32 %v3447_v15, %v8869_v32 }
 0x45d   : > { %4979 = vst [vmem:[%s8912_s24 + $0x20] sm:$0xff] %v5551_v35  ;;  %v3449_v45 = vpop.f32.mrf.mxu1  ;;  %v3642_v46 = vpop.f32.mrf.mxu0 }
 0x45e   : > { %v6283_v31 = vpop.eup %6282  ;;  %v5418_v3 = vclamps-f32 %v3641_v44, 15.0  ;;  %v8961_v13 = vadd.f32 %v3449_v45, %v8864_v41  ;;  %v3643_v6 = vadd.f32 %v3642_v46, %v8866_v59 }
 0x45f   : > { %v5552_v42 = vpack.c.bf16 %v6283_v31, %v6281_v17  ;;  %v3451_v7 = vpop.f32.mrf.mxu1  ;;  %v3644_v58 = vpop.f32.mrf.mxu0 }
 0x460   : > { %v6285_v25 = vpop.eup %6284  ;;  %v4687_v37 = vmul.f32 1.442695, %v5418_v3  ;;  %v5419_v1 = vclamps-f32 %v3643_v6, 15.0  ;;  %v3645_v49 = vadd.f32 %v3644_v58, %v8861_v12  ;;  %v3783_v34 = vmax.f32 %v8965_v36, %v8961_v13 }
 0x461   : > { %4980 = vst [vmem:[%s8912_s24 + $0x28] sm:$0xff] %v5552_v42  ;;  %v3453_v57 = vpop.f32.mrf.mxu1  ;;  %v3646_v43 = vpop.f32.mrf.mxu0  ;;  %v8972_v9 = vadd.f32 %v3451_v7, %v8869_v32 }
 0x462   : > { %v6287_v33 = vpop.eup %6286  ;;  %v4689_v23 = vmul.f32 1.442695, %v5419_v1  ;;  %v5420_v10 = vclamps-f32 %v3645_v49, 15.0  ;;  %6292 = vpow2.f32 %v4687_v37  ;;  %v8975_v63 = vadd.f32 %v3453_v57, %v8864_v41  ;;  %3784 = vmax.xlane.f32.xlu0 %v3783_v34 }
 0x463   : > { %v5553_v53 = vpack.c.bf16 %v6287_v33, %v6285_v25  ;;  %v3647_v52 = vadd.f32 %v3646_v43, %v8866_v59  ;;  %v3457_v50 = vpop.f32.mrf.mxu1  ;;  %v3650_v48 = vpop.f32.mrf.mxu0 }
 0x464   : > { %6294 = vpow2.f32 %v4689_v23  ;;  %v4691_v47 = vmul.f32 1.442695, %v5420_v10  ;;  %v3651_v21 = vadd.f32 %v3650_v48, %v8861_v12  ;;  %v6289_v27 = vpop.eup %6288  ;;  %v3786_v35 = vmax.f32 %v8972_v9, %v8975_v63 }
 0x465   : > { %4981 = vst [vmem:[%s8912_s24 + $0x30] sm:$0xff] %v5553_v53  ;;  %v5421_v51 = vclamps-f32 %v3647_v52, 15.0  ;;  %v3459_v29 = vpop.f32.mrf.mxu1  ;;  %v3652_v55 = vpop.f32.mrf.mxu0  ;;  %v8987_v31 = vadd.f32 %v3457_v50, %v8869_v32 }
 0x466   : > { %v6291_v15 = vpop.eup %6290  ;;  %v5422_v16 = vclamps-f32 %v3651_v21, 15.0  ;;  %v8983_v44 = vadd.f32 %v3459_v29, %v8864_v41  ;;  %v3653_v17 = vadd.f32 %v3652_v55, %v8866_v59  ;;  %3787 = vmax.xlane.f32.xlu1 %v3786_v35  ;;  %6296 = vpow2.f32 %v4691_v47 }
 0x467   : > { %v5554_v45 = vpack.c.bf16 %v6291_v15, %v6289_v27  ;;  %v4693_v46 = vmul.f32 1.442695, %v5421_v51  ;;  %v3461_v3 = vpop.f32.mrf.mxu1  ;;  %v3654_v6 = vpop.f32.mrf.mxu0 }
 0x468   : > { %v4695_v42 = vmul.f32 1.442695, %v5422_v16  ;;  %v5423_v7 = vclamps-f32 %v3653_v17, 15.0  ;;  %v3655_v58 = vadd.f32 %v3654_v6, %v8861_v12  ;;  %v3789_v1 = vmax.f32 %v8987_v31, %v8983_v44 }
 0x469   : > { %4982 = vst [vmem:[%s8912_s24 + $0x38] sm:$0xff] %v5554_v45  ;;  %6298 = vpow2.f32 %v4693_v46  ;;  %v3463_v25 = vpop.f32.mrf.mxu1  ;;  %v3656_v37 = vpop.f32.mrf.mxu0  ;;  %v8994_v33 = vadd.f32 %v3461_v3, %v8869_v32 }
 0x46a   : > { %v4697_v49 = vmul.f32 1.442695, %v5423_v7  ;;  %v5424_v57 = vclamps-f32 %v3655_v58, 15.0  ;;  %v8997_v43 = vadd.f32 %v3463_v25, %v8864_v41  ;;  %6300 = vpow2.f32 %v4695_v42  ;;  %3790 = vmax.xlane.f32.xlu0 %v3789_v1 }
 0x46b   : > { %v3657_v34 = vadd.f32 %v3656_v37, %v8866_v59 }
 0x46c   : > { %6302 = vpow2.f32 %v4697_v49  ;;  %v4699_v53 = vmul.f32 1.442695, %v5424_v57  ;;  %v3792_v23 = vmax.f32 %v8994_v33, %v8997_v43 }
 0x46d   : > { %v5425_v10 = vclamps-f32 %v3657_v34, 15.0 }
 0x46e   : > { %3793 = vmax.xlane.f32.xlu1 %v3792_v23  ;;  %6304 = vpow2.f32 %v4699_v53 }
 0x46f   : > { %v4701_v52 = vmul.f32 1.442695, %v5425_v10  ;;  %v6293_v50 = vpop.eup %6292 }
 0x471   : > { %v6295_v48 = vpop.eup %6294  ;;  %6306 = vpow2.f32 %v4701_v52 }
 0x472   : > { %v5555_v47 = vpack.c.bf16 %v6295_v48, %v6293_v50 }
 0x473   : > { %v3467_v21 = vpop.f32.mrf.mxu1  ;;  %v3660_v27 = vpop.f32.mrf.mxu0 }
 0x474   : > { %4983 = vst [vmem:[%s8912_s24 + $0x40] sm:$0xff] %v5555_v47  ;;  %v3661_v51 = vadd.f32 %v3660_v27, %v8861_v12  ;;  %v6297_v29 = vpop.eup %6296  ;;  %v9009_v3 = vadd.f32 %v3467_v21, %v8869_v32 }
 0x475   : > { %v3469_v55 = vpop.f32.mrf.mxu1  ;;  %v3662_v35 = vpop.f32.mrf.mxu0 }
 0x476   : > { %v6299_v15 = vpop.eup %6298  ;;  %v5426_v16 = vclamps-f32 %v3661_v51, 15.0  ;;  %v9005_v17 = vadd.f32 %v3469_v55, %v8864_v41  ;;  %v3663_v45 = vadd.f32 %v3662_v35, %v8866_v59 }
 0x477   : > { %v5556_v46 = vpack.c.bf16 %v6299_v15, %v6297_v29  ;;  %v3471_v6 = vpop.f32.mrf.mxu1  ;;  %v3664_v42 = vpop.f32.mrf.mxu0 }
 0x478   : > { %v6301_v7 = vpop.eup %6300  ;;  %v4703_v58 = vmul.f32 1.442695, %v5426_v16  ;;  %v5427_v25 = vclamps-f32 %v3663_v45, 15.0  ;;  %v3665_v37 = vadd.f32 %v3664_v42, %v8861_v12  ;;  %v3795_v34 = vmax.f32 %v9009_v3, %v9005_v17 }
 0x479   : > { %v6303_v1 = vpop.eup %6302  ;;  %4984 = vst [vmem:[%s8912_s24 + $0x48] sm:$0xff] %v5556_v46  ;;  %v3473_v49 = vpop.f32.mrf.mxu1  ;;  %v9016_v52 = vadd.f32 %v3471_v6, %v8869_v32 }
 0x47a   : > { %v3666_v57 = vpop.f32.mrf.mxu0  ;;  %v5557_v53 = vpack.c.bf16 %v6303_v1, %v6301_v7  ;;  %v4705_v23 = vmul.f32 1.442695, %v5427_v25  ;;  %v5428_v10 = vclamps-f32 %v3665_v37, 15.0  ;;  %6308 = vpow2.f32 %v4703_v58  ;;  %3796 = vmax.xlane.f32.xlu0 %v3795_v34 }
 0x47b   : > { %v9019_v50 = vadd.f32 %v3473_v49, %v8864_v41  ;;  %v3667_v48 = vadd.f32 %v3666_v57, %v8866_v59  ;;  %v3477_v47 = vpop.f32.mrf.mxu1  ;;  %v6305_v29 = vpop.eup %6304 }
 0x47c   : > { %v3670_v21 = vpop.f32.mrf.mxu0  ;;  %4985 = vst [vmem:[%s8912_s24 + $0x50] sm:$0xff] %v5557_v53  ;;  %6310 = vpow2.f32 %v4705_v23  ;;  %v4707_v27 = vmul.f32 1.442695, %v5428_v10  ;;  %v9031_v25 = vadd.f32 %v3477_v47, %v8869_v32 }
 0x47d   : > { %v3671_v51 = vadd.f32 %v3670_v21, %v8861_v12  ;;  %v5429_v55 = vclamps-f32 %v3667_v48, 15.0  ;;  %v3479_v35 = vpop.f32.mrf.mxu1  ;;  %v3798_v16 = vmax.f32 %v9016_v52, %v9019_v50 }
 0x47e   : > { %v3672_v15 = vpop.f32.mrf.mxu0  ;;  %v6307_v45 = vpop.eup %6306  ;;  %v9027_v6 = vadd.f32 %v3479_v35, %v8864_v41  ;;  %6312 = vpow2.f32 %v4707_v27 }
 0x47f   : > { %v5430_v46 = vclamps-f32 %v3671_v51, 15.0  ;;  %v3673_v42 = vadd.f32 %v3672_v15, %v8866_v59  ;;  %v5558_v7 = vpack.c.bf16 %v6307_v45, %v6305_v29  ;;  %v4709_v58 = vmul.f32 1.442695, %v5429_v55  ;;  %3799 = vmax.xlane.f32.xlu1 %v3798_v16  ;;  %v3481_v37 = vpop.f32.mrf.mxu1 }
 0x480   : > { %v3674_v1 = vpop.f32.mrf.mxu0  ;;  %v3801_v10 = vmax.f32 %v9031_v25, %v9027_v6  ;;  %v9038_v21 = vadd.f32 %v3481_v37, %v8869_v32 }
 0x481   : > { %v4711_v49 = vmul.f32 1.442695, %v5430_v46  ;;  %v5431_v57 = vclamps-f32 %v3673_v42, 15.0  ;;  %v3675_v34 = vadd.f32 %v3674_v1, %v8861_v12  ;;  %4986 = vst [vmem:[%s8912_s24 + $0x58] sm:$0xff] %v5558_v7  ;;  %6314 = vpow2.f32 %v4709_v58  ;;  %v3483_v53 = vpop.f32.mrf.mxu1 }
 0x482   : > { %v3676_v23 = vpop.f32.mrf.mxu0  ;;  %v9041_v51 = vadd.f32 %v3483_v53, %v8864_v41  ;;  %3802 = vmax.xlane.f32.xlu0 %v3801_v10 }
 0x483   : > { %v4713_v48 = vmul.f32 1.442695, %v5431_v57  ;;  %v5432_v47 = vclamps-f32 %v3675_v34, 15.0  ;;  %6316 = vpow2.f32 %v4711_v49  ;;  %v3677_v27 = vadd.f32 %v3676_v23, %v8866_v59 }
 0x484   : > { %v3804_v55 = vmax.f32 %v9038_v21, %v9041_v51 }
 0x485   : > { %6318 = vpow2.f32 %v4713_v48  ;;  %v4715_v29 = vmul.f32 1.442695, %v5432_v47  ;;  %v5433_v35 = vclamps-f32 %v3677_v27, 15.0 }
 0x486   : > { %3805 = vmax.xlane.f32.xlu1 %v3804_v55 }
 0x487   : > { %v4717_v15 = vmul.f32 1.442695, %v5433_v35  ;;  %v6309_v16 = vpop.eup %6308  ;;  %6320 = vpow2.f32 %v4715_v29 }
 0x489   : > { %v6311_v45 = vpop.eup %6310  ;;  %6322 = vpow2.f32 %v4717_v15 }
 0x48a   : > { %v5559_v46 = vpack.c.bf16 %v6311_v45, %v6309_v16 }
 0x48b   : > { %v6313_v42 = vpop.eup %6312 }
 0x48c   : > { %4987 = vst [vmem:[%s8912_s24 + $0x60] sm:$0xff] %v5559_v46 }
 0x48d   : > { %v3487_v7 = vpop.f32.mrf.mxu1  ;;  %v3680_v58 = vpop.f32.mrf.mxu0 }
 0x48e   : > { %v6315_v37 = vpop.eup %6314  ;;  %v3681_v1 = vadd.f32 %v3680_v58, %v8861_v12  ;;  %v9054_v27 = vadd.f32 %v3487_v7, %v8869_v32 }
 0x48f   : > { %v5560_v49 = vpack.c.bf16 %v6315_v37, %v6313_v42  ;;  %v3489_v57 = vpop.f32.mrf.mxu1  ;;  %v3682_v34 = vpop.f32.mrf.mxu0 }
 0x490   : > { %v6317_v53 = vpop.eup %6316  ;;  %v5434_v23 = vclamps-f32 %v3681_v1, 15.0  ;;  %v9049_v10 = vadd.f32 %v3489_v57, %v8864_v41  ;;  %v3683_v48 = vadd.f32 %v3682_v34, %v8866_v59 }
 0x491   : > { %4988 = vst [vmem:[%s8912_s24 + $0x68] sm:$0xff] %v5560_v49  ;;  %v3491_v29 = vpop.f32.mrf.mxu1  ;;  %v3684_v55 = vpop.f32.mrf.mxu0 }
 0x492   : > { %10175 = vst [vmem:[#allocation68_spill] sm:$0xff] %v9049_v10  ;;  %v6319_v47 = vpop.eup %6318  ;;  %v4719_v15 = vmul.f32 1.442695, %v5434_v23  ;;  %v5435_v16 = vclamps-f32 %v3683_v48, 15.0  ;;  %v3685_v45 = vadd.f32 %v3684_v55, %v8861_v12  ;;  %v3807_v58 = vmax.f32 %v9054_v27, %v9049_v10 }
 0x493   : > { %v5561_v35 = vpack.c.bf16 %v6319_v47, %v6317_v53  ;;  %v3493_v46 = vpop.f32.mrf.mxu1  ;;  %v3686_v42 = vpop.f32.mrf.mxu0  ;;  %v9065_v57 = vadd.f32 %v3491_v29, %v8869_v32 }
 0x494   : > { %v4721_v37 = vmul.f32 1.442695, %v5435_v16  ;;  %v9061_v1 = vadd.f32 %v3493_v46, %v8864_v41  ;;  %v3687_v7 = vadd.f32 %v3686_v42, %v8866_v59  ;;  %v6321_v49 = vpop.eup %6320  ;;  %6324 = vpow2.f32 %v4719_v15  ;;  %3808 = vmax.xlane.f32.xlu0 %v3807_v58 }
 0x495   : > { %4989 = vst [vmem:[%s8912_s24 + $0x70] sm:$0xff] %v5561_v35  ;;  %10177 = vst [vmem:[#allocation70_spill] sm:$0xff] %v9065_v57  ;;  %v5436_v34 = vclamps-f32 %v3685_v45, 15.0  ;;  %v3497_v53 = vpop.f32.mrf.mxu1  ;;  %v3690_v23 = vpop.f32.mrf.mxu0 }
 0x496   : > { %10176 = vst [vmem:[#allocation69_spill] sm:$0xff] %v9061_v1  ;;  %v6323_v48 = vpop.eup %6322  ;;  %6326 = vpow2.f32 %v4721_v37  ;;  %v5437_v47 = vclamps-f32 %v3687_v7, 15.0  ;;  %v3691_v55 = vadd.f32 %v3690_v23, %v8861_v12  ;;  %v3810_v15 = vmax.f32 %v9065_v57, %v9061_v1 }
 0x497   : > { %v5562_v35 = vpack.c.bf16 %v6323_v48, %v6321_v49  ;;  %v4723_v16 = vmul.f32 1.442695, %v5436_v34  ;;  %v3499_v46 = vpop.f32.mrf.mxu1  ;;  %v3692_v40 = vpop.f32.mrf.mxu0  ;;  %v9076_v37 = vadd.f32 %v3497_v53, %v8869_v32 }
 0x498   : > { %v4725_v42 = vmul.f32 1.442695, %v5437_v47  ;;  %v5438_v29 = vclamps-f32 %v3691_v55, 15.0  ;;  %v9071_v45 = vadd.f32 %v3499_v46, %v8864_v41  ;;  %v3693_v58 = vadd.f32 %v3692_v40, %v8866_v59  ;;  %3811 = vmax.xlane.f32.xlu1 %v3810_v15 }
 0x499   : > { %4990 = vst [vmem:[%s8912_s24 + $0x78] sm:$0xff] %v5562_v35  ;;  %6328 = vpow2.f32 %v4723_v16  ;;  %10179 = vst [vmem:[#allocation72_spill] sm:$0xff] %v9076_v37  ;;  %v3501_v7 = vpop.f32.mrf.mxu1  ;;  %v3694_v49 = vpop.f32.mrf.mxu0 }
 0x49a   : > { %10178 = vst [vmem:[#allocation71_spill] sm:$0xff] %v9071_v45  ;;  %6330 = vpow2.f32 %v4725_v42  ;;  %v4727_v34 = vmul.f32 1.442695, %v5438_v29  ;;  %v5439_v23 = vclamps-f32 %v3693_v58, 15.0  ;;  %v3695_v48 = vadd.f32 %v3694_v49, %v8861_v12 }
 0x49b   : > { %v3503_v47 = vpop.f32.mrf.mxu1  ;;  %v3696_v55 = vpop.f32.mrf.mxu0  ;;  %v3813_v46 = vmax.f32 %v9076_v37, %v9071_v45  ;;  %v9082_v40 = vadd.f32 %v3501_v7, %v8869_v32 }
 0x49c   : > { %v4729_v1 = vmul.f32 1.442695, %v5439_v23  ;;  %v9085_v53 = vadd.f32 %v3503_v47, %v8864_v41  ;;  %v3697_v35 = vadd.f32 %v3696_v55, %v8866_v59  ;;  %6332 = vpow2.f32 %v4727_v34 }
 0x49d   : > { %10180 = vst [vmem:[#allocation73_spill] sm:$0xff] %v9082_v40  ;;  %v5440_v16 = vclamps-f32 %v3695_v48, 15.0  ;;  %3814 = vmax.xlane.f32.xlu0 %v3813_v46 }
 0x49e   : > { %10181 = vst [vmem:[#allocation74_spill] sm:$0xff] %v9085_v53  ;;  %6334 = vpow2.f32 %v4729_v1  ;;  %v5441_v15 = vclamps-f32 %v3697_v35, 15.0  ;;  %v3816_v42 = vmax.f32 %v9082_v40, %v9085_v53 }
 0x49f   : > { %v4731_v29 = vmul.f32 1.442695, %v5440_v16 }
 0x4a0   : > { %v4733_v58 = vmul.f32 1.442695, %v5441_v15  ;;  %3817 = vmax.xlane.f32.xlu1 %v3816_v42 }
 0x4a1   : > { %6336 = vpow2.f32 %v4731_v29  ;;  %v6325_v7 = vpop.eup %6324 }
 0x4a2   : > { %6338 = vpow2.f32 %v4733_v58 }
 0x4a3   : > { %v6327_v49 = vpop.eup %6326 }
 0x4a4   : > { %v5563_v23 = vpack.c.bf16 %v6327_v49, %v6325_v7 }
 0x4a5   : > { %v3507_v55 = vpop.f32.mrf.mxu1  ;;  %v3700_v34 = vpop.f32.mrf.mxu0 }
 0x4a6   : > { %v6329_v47 = vpop.eup %6328  ;;  %4991 = vst [vmem:[%s8912_s24 + $0x80] sm:$0xff] %v5563_v23  ;;  %v3701_v1 = vadd.f32 %v3700_v34, %v8861_v12  ;;  %v9098_v29 = vadd.f32 %v3507_v55, %v8869_v32 }
 0x4a7   : > { %v6331_v48 = vpop.eup %6330  ;;  %v3509_v35 = vpop.f32.mrf.mxu1 }
 0x4a8   : > { %v5564_v46 = vpack.c.bf16 %v6331_v48, %v6329_v47  ;;  %v3702_v45 = vpop.f32.mrf.mxu0  ;;  %v5442_v53 = vclamps-f32 %v3701_v1, 15.0  ;;  %v9093_v16 = vadd.f32 %v3509_v35, %v8864_v41  ;;  %10183 = vst [vmem:[#allocation76_spill] sm:$0xff] %v9098_v29 }
 0x4a9   : > { %v3703_v15 = vadd.f32 %v3702_v45, %v8866_v59  ;;  %v6333_v42 = vpop.eup %6332  ;;  %v3511_v58 = vpop.f32.mrf.mxu1 }
 0x4aa   : > { %10182 = vst [vmem:[#allocation75_spill] sm:$0xff] %v9093_v16  ;;  %4992 = vst [vmem:[%s8912_s24 + $0x88] sm:$0xff] %v5564_v46  ;;  %v3704_v7 = vpop.f32.mrf.mxu0  ;;  %v4735_v23 = vmul.f32 1.442695, %v5442_v53  ;;  %v3819_v35 = vmax.f32 %v9098_v29, %v9093_v16  ;;  %v9108_v57 = vadd.f32 %v3511_v58, %v8869_v32 }
 0x4ab   : > { %v6335_v49 = vpop.eup %6334  ;;  %v5443_v34 = vclamps-f32 %v3703_v15, 15.0  ;;  %v3705_v47 = vadd.f32 %v3704_v7, %v8861_v12  ;;  %v3513_v1 = vpop.f32.mrf.mxu1 }
 0x4ac   : > { %v5565_v48 = vpack.c.bf16 %v6335_v49, %v6333_v42  ;;  %v3706_v40 = vpop.f32.mrf.mxu0  ;;  %v9104_v46 = vadd.f32 %v3513_v1, %v8864_v41  ;;  %6340 = vpow2.f32 %v4735_v23  ;;  %10185 = vst [vmem:[#allocation78_spill] sm:$0xff] %v9108_v57  ;;  %3820 = vmax.xlane.f32.xlu0 %v3819_v35 }
 0x4ad   : > { %v4737_v45 = vmul.f32 1.442695, %v5443_v34  ;;  %v5444_v37 = vclamps-f32 %v3705_v47, 15.0  ;;  %v3707_v53 = vadd.f32 %v3706_v40, %v8866_v59  ;;  %v3517_v15 = vpop.f32.mrf.mxu1 }
 0x4ae   : > { %10184 = vst [vmem:[#allocation77_spill] sm:$0xff] %v9104_v46  ;;  %v6337_v55 = vpop.eup %6336  ;;  %4993 = vst [vmem:[%s8912_s24 + $0x90] sm:$0xff] %v5565_v48  ;;  %v3710_v42 = vpop.f32.mrf.mxu0  ;;  %v3822_v23 = vmax.f32 %v9108_v57, %v9104_v46 }
 0x4af   : > { %v6339_v7 = vpop.eup %6338  ;;  %6342 = vpow2.f32 %v4737_v45  ;;  %v4739_v49 = vmul.f32 1.442695, %v5444_v37  ;;  %v3711_v34 = vadd.f32 %v3710_v42, %v8861_v12  ;;  %v5445_v1 = vclamps-f32 %v3707_v53, 15.0  ;;  %v3519_v16 = vpop.f32.mrf.mxu1 }
 0x4b0   : > { %v5566_v47 = vpack.c.bf16 %v6339_v7, %v6337_v55  ;;  %v3712_v29 = vpop.f32.mrf.mxu0  ;;  %v9115_v48 = vadd.f32 %v3519_v16, %v8864_v41  ;;  %v9120_v45 = vadd.f32 %v3517_v15, %v8869_v32  ;;  %3823 = vmax.xlane.f32.xlu1 %v3822_v23 }
 0x4b1   : > { %v5446_v58 = vclamps-f32 %v3711_v34, 15.0  ;;  %v3713_v40 = vadd.f32 %v3712_v29, %v8866_v59  ;;  %v4741_v35 = vmul.f32 1.442695, %v5445_v1  ;;  %v3521_v37 = vpop.f32.mrf.mxu1  ;;  %6344 = vpow2.f32 %v4739_v49 }
 0x4b2   : > { %10186 = vst [vmem:[#allocation79_spill] sm:$0xff] %v9115_v48  ;;  %4994 = vst [vmem:[%s8912_s24 + $0x98] sm:$0xff] %v5566_v47  ;;  %v3714_v55 = vpop.f32.mrf.mxu0  ;;  %v3825_v16 = vmax.f32 %v9120_v45, %v9115_v48  ;;  %v9126_v47 = vadd.f32 %v3521_v37, %v8869_v32 }
 0x4b3   : > { %10187 = vst [vmem:[#allocation80_spill] sm:$0xff] %v9120_v45  ;;  %v4743_v53 = vmul.f32 1.442695, %v5446_v58  ;;  %v5447_v42 = vclamps-f32 %v3713_v40, 15.0  ;;  %v3715_v7 = vadd.f32 %v3714_v55, %v8861_v12  ;;  %6346 = vpow2.f32 %v4741_v35  ;;  %v3523_v34 = vpop.f32.mrf.mxu1 }
 0x4b4   : > { %v3716_v46 = vpop.f32.mrf.mxu0  ;;  %10188 = vst [vmem:[#allocation81_spill] sm:$0xff] %v9126_v47  ;;  %v9129_v1 = vadd.f32 %v3523_v34, %v8864_v41  ;;  %3826 = vmax.xlane.f32.xlu0 %v3825_v16 }
 0x4b5   : > { %v4745_v29 = vmul.f32 1.442695, %v5447_v42  ;;  %v5448_v15 = vclamps-f32 %v3715_v7, 15.0  ;;  %6348 = vpow2.f32 %v4743_v53  ;;  %v3717_v49 = vadd.f32 %v3716_v46, %v8866_v59 }
 0x4b6   : > { %10189 = vst [vmem:[#allocation82_spill] sm:$0xff] %v9129_v1  ;;  %v3828_v58 = vmax.f32 %v9126_v47, %v9129_v1 }
 0x4b7   : > { %6350 = vpow2.f32 %v4745_v29  ;;  %v4747_v23 = vmul.f32 1.442695, %v5448_v15  ;;  %v5449_v40 = vclamps-f32 %v3717_v49, 15.0 }
 0x4b8   : > { %3829 = vmax.xlane.f32.xlu1 %v3828_v58 }
 0x4b9   : > { %v4749_v35 = vmul.f32 1.442695, %v5449_v40  ;;  %v6341_v55 = vpop.eup %6340  ;;  %6352 = vpow2.f32 %v4747_v23 }
 0x4bb   : > { %6354 = vpow2.f32 %v4749_v35 }
 0x4bc   : > { %v6343_v37 = vpop.eup %6342 }
 0x4bd   : > { %v5567_v42 = vpack.c.bf16 %v6343_v37, %v6341_v55 }
 0x4be   : > { %v3527_v7 = vpop.f32.mrf.mxu1  ;;  %v3720_v53 = vpop.f32.mrf.mxu0 }
 0x4bf   : > { %4995 = vst [vmem:[%s8912_s24 + $0xa0] sm:$0xff] %v5567_v42  ;;  %v6345_v34 = vpop.eup %6344  ;;  %v3721_v46 = vadd.f32 %v3720_v53, %v8861_v12  ;;  %v9141_v40 = vadd.f32 %v3527_v7, %v8869_v32 }
 0x4c0   : > { %v6347_v16 = vpop.eup %6346  ;;  %v3529_v29 = vpop.f32.mrf.mxu1 }
 0x4c1   : > { %v3722_v15 = vpop.f32.mrf.mxu0  ;;  %v5568_v48 = vpack.c.bf16 %v6347_v16, %v6345_v34  ;;  %v5450_v1 = vclamps-f32 %v3721_v46, 15.0  ;;  %v9137_v49 = vadd.f32 %v3529_v29, %v8864_v41  ;;  %10191 = vst [vmem:[#allocation84_spill] sm:$0xff] %v9141_v40 }
 0x4c2   : > { %v3723_v23 = vadd.f32 %v3722_v15, %v8866_v59  ;;  %v6349_v58 = vpop.eup %6348  ;;  %v3531_v35 = vpop.f32.mrf.mxu1 }
 0x4c3   : > { %10190 = vst [vmem:[#allocation83_spill] sm:$0xff] %v9137_v49  ;;  %v3724_v55 = vpop.f32.mrf.mxu0  ;;  %4996 = vst [vmem:[%s8912_s24 + $0xa8] sm:$0xff] %v5568_v48  ;;  %v4751_v42 = vmul.f32 1.442695, %v5450_v1  ;;  %v3831_v29 = vmax.f32 %v9141_v40, %v9137_v49  ;;  %v9152_v7 = vadd.f32 %v3531_v35, %v8869_v32 }
 0x4c4   : > { %v6351_v37 = vpop.eup %6350  ;;  %v5451_v53 = vclamps-f32 %v3723_v23, 15.0  ;;  %v3725_v47 = vadd.f32 %v3724_v55, %v8861_v12  ;;  %v3533_v46 = vpop.f32.mrf.mxu1 }
 0x4c5   : > { %v5569_v34 = vpack.c.bf16 %v6351_v37, %v6349_v58  ;;  %v3726_v16 = vpop.f32.mrf.mxu0  ;;  %v9148_v57 = vadd.f32 %v3533_v46, %v8864_v41  ;;  %6356 = vpow2.f32 %v4751_v42  ;;  %10193 = vst [vmem:[#allocation86_spill] sm:$0xff] %v9152_v7  ;;  %3832 = vmax.xlane.f32.xlu0 %v3831_v29 }
 0x4c6   : > { %v4753_v15 = vmul.f32 1.442695, %v5451_v53  ;;  %v5452_v45 = vclamps-f32 %v3725_v47, 15.0  ;;  %v3727_v48 = vadd.f32 %v3726_v16, %v8866_v59  ;;  %v3537_v1 = vpop.f32.mrf.mxu1  ;;  %v6353_v58 = vpop.eup %6352 }
 0x4c7   : > { %10192 = vst [vmem:[#allocation85_spill] sm:$0xff] %v9148_v57  ;;  %4997 = vst [vmem:[%s8912_s24 + $0xb0] sm:$0xff] %v5569_v34  ;;  %v3730_v23 = vpop.f32.mrf.mxu0  ;;  %v9156_v53 = vpop.xlane.xlu1 %724  ;;  %v3834_v35 = vmax.f32 %v9152_v7, %v9148_v57  ;;  %v9161_v16 = vadd.f32 %v3537_v1, %v8869_v32 }
 0x4c8   : > { %6358 = vpow2.f32 %v4753_v15  ;;  %v4755_v55 = vmul.f32 1.442695, %v5452_v45  ;;  %v3731_v37 = vadd.f32 %v3730_v23, %v8861_v12  ;;  %10194 = vst [vmem:[#allocation87_spill] sm:$0xff] %v9156_v53  ;;  %v6355_v47 = vpop.eup %6354  ;;  %v5453_v46 = vclamps-f32 %v3727_v48, 15.0  ;;  %v3539_v34 = vpop.f32.mrf.mxu1 }
 0x4c9   : > { %v3732_v42 = vpop.f32.mrf.mxu0  ;;  %v5570_v49 = vpack.c.bf16 %v6355_v47, %v6353_v58  ;;  %10195 = vst [vmem:[#allocation88_spill] sm:$0xff] %v9161_v16  ;;  %v9164_v15 = vadd.f32 %v3539_v34, %v8864_v41  ;;  %v9166_v45 = vpop.xlane.xlu0 %718  ;;  %3835 = vmax.xlane.f32.xlu1 %v3834_v35 }
 0x4ca   : > { %v5454_v29 = vclamps-f32 %v3731_v37, 15.0  ;;  %10197 = vst [vmem:[#allocation90_spill] sm:$0xff] %v9166_v45  ;;  %v4757_v23 = vmul.f32 1.442695, %v5453_v46  ;;  %v3733_v53 = vadd.f32 %v3732_v42, %v8866_v59  ;;  %v3541_v48 = vpop.f32.mrf.mxu1  ;;  %6360 = vpow2.f32 %v4755_v55 }
 0x4cb   : > { %10196 = vst [vmem:[#allocation89_spill] sm:$0xff] %v9164_v15  ;;  %v3734_v40 = vpop.f32.mrf.mxu0  ;;  %4998 = vst [vmem:[%s8912_s24 + $0xb8] sm:$0xff] %v5570_v49  ;;  %v3837_v1 = vmax.f32 %v9161_v16, %v9164_v15  ;;  %v9174_v45 = vadd.f32 %v3541_v48, %v8869_v32  ;;  %v9180_v35 = vpop.xlane.xlu1 %727 }
 0x4cc   : > { %v4759_v10 = vmul.f32 1.442695, %v5454_v29  ;;  %v3735_v58 = vadd.f32 %v3734_v40, %v8861_v12  ;;  %6362 = vpow2.f32 %v4757_v23  ;;  %v5455_v37 = vclamps-f32 %v3733_v53, 15.0  ;;  %v3543_v47 = vpop.f32.mrf.mxu1  ;;  %10200 = vst [vmem:[#allocation93_spill] sm:$0xff] %v9180_v35 }
 0x4cd   : > { %v3736_v34 = vpop.f32.mrf.mxu0  ;;  %10198 = vst [vmem:[#allocation91_spill] sm:$0xff] %v9174_v45  ;;  %v9177_v42 = vadd.f32 %v3543_v47, %v8864_v41  ;;  %3838 = vmax.xlane.f32.xlu0 %v3837_v1  ;;  %v9184_v23 = vpop.xlane.xlu0 %721 }
 0x4ce   : > { %v5456_v46 = vclamps-f32 %v3735_v58, 15.0  ;;  %v3737_v49 = vadd.f32 %v3736_v34, %v8866_v59  ;;  %v4761_v55 = vmul.f32 1.442695, %v5455_v37  ;;  %6364 = vpow2.f32 %v4759_v10  ;;  %10201 = vst [vmem:[#allocation94_spill] sm:$0xff] %v9184_v23 }
 0x4cf   : > { %10199 = vst [vmem:[#allocation92_spill] sm:$0xff] %v9177_v42  ;;  %v3840_v53 = vmax.f32 %v9174_v45, %v9177_v42  ;;  %v9186_v1 = vpop.xlane.xlu1 %733 }
 0x4d0   : > { %v4763_v40 = vmul.f32 1.442695, %v5456_v46  ;;  %v5457_v29 = vclamps-f32 %v3737_v49, 15.0  ;;  %6366 = vpow2.f32 %v4761_v55  ;;  %10202 = vst [vmem:[#allocation95_spill] sm:$0xff] %v9186_v1 }
 0x4d1   : > { %3841 = vmax.xlane.f32.xlu1 %v3840_v53  ;;  %v9188_v34 = vpop.xlane.xlu0 %730 }
 0x4d2   : > { %v4765_v48 = vmul.f32 1.442695, %v5457_v29  ;;  %6368 = vpow2.f32 %v4763_v40  ;;  %v6357_v58 = vpop.eup %6356  ;;  %10203 = vst [vmem:[#allocation96_spill] sm:$0xff] %v9188_v34 }
 0x4d4   : > { %6370 = vpow2.f32 %v4765_v48 }
 0x4d5   : > { %v6359_v47 = vpop.eup %6358 }
 0x4d6   : > { %v5571_v37 = vpack.c.bf16 %v6359_v47, %v6357_v58  ;;  %v9196_v58 = vpop.xlane.xlu1 %739 }
 0x4d7   : > { %v3547_v10 = vpop.f32.mrf.mxu1  ;;  %v3740_v46 = vpop.f32.mrf.mxu0  ;;  %10205 = vst [vmem:[#allocation98_spill] sm:$0xff] %v9196_v58 }
 0x4d8   : > { %4999 = vst [vmem:[%s8912_s24 + $0xc0] sm:$0xff] %v5571_v37  ;;  %v6361_v49 = vpop.eup %6360  ;;  %v3741_v55 = vadd.f32 %v3740_v46, %v8861_v12  ;;  %v9199_v47 = vadd.f32 %v3547_v10, %v8869_v32 }
 0x4d9   : > { %v6363_v35 = vpop.eup %6362  ;;  %v3549_v23 = vpop.f32.mrf.mxu1 }
 0x4da   : > { %v3742_v29 = vpop.f32.mrf.mxu0  ;;  %v5572_v53 = vpack.c.bf16 %v6363_v35, %v6361_v49  ;;  %v5458_v40 = vclamps-f32 %v3741_v55, 15.0  ;;  %v9193_v48 = vadd.f32 %v3549_v23, %v8864_v41  ;;  %10206 = vst [vmem:[#allocation99_spill] sm:$0xff] %v9199_v47  ;;  %v9203_v35 = vpop.xlane.xlu0 %736 }
 0x4db   : > { %v3743_v1 = vadd.f32 %v3742_v29, %v8866_v59  ;;  %v3551_v37 = vpop.f32.mrf.mxu1  ;;  %v6365_v42 = vpop.eup %6364  ;;  %10207 = vst [vmem:[#allocation100_spill] sm:$0xff] %v9203_v35 }
 0x4dc   : > { %10204 = vst [vmem:[#allocation97_spill] sm:$0xff] %v9193_v48  ;;  %v3744_v34 = vpop.f32.mrf.mxu0  ;;  %5000 = vst [vmem:[%s8912_s24 + $0xc8] sm:$0xff] %v5572_v53  ;;  %v4767_v46 = vmul.f32 1.442695, %v5458_v40  ;;  %v3843_v29 = vmax.f32 %v9199_v47, %v9193_v48  ;;  %v9208_v53 = vadd.f32 %v3551_v37, %v8869_v32 }
 0x4dd   : > { %v5459_v45 = vclamps-f32 %v3743_v1, 15.0  ;;  %v3745_v15 = vadd.f32 %v3744_v34, %v8861_v12  ;;  %v6367_v49 = vpop.eup %6366  ;;  %v3553_v23 = vpop.f32.mrf.mxu1 }
 0x4de   : > { %v3746_v55 = vpop.f32.mrf.mxu0  ;;  %v5573_v58 = vpack.c.bf16 %v6367_v49, %v6365_v42  ;;  %6372 = vpow2.f32 %v4767_v46  ;;  %v9211_v1 = vadd.f32 %v3553_v23, %v8864_v41  ;;  %3844 = vmax.xlane.f32.xlu0 %v3843_v29 }
 0x4df   : > { %v4769_v10 = vmul.f32 1.442695, %v5459_v45  ;;  %v5460_v16 = vclamps-f32 %v3745_v15, 15.0  ;;  %v6369_v57 = vpop.eup %6368  ;;  %v3747_v34 = vadd.f32 %v3746_v55, %v8866_v59  ;;  %v3557_v40 = vpop.f32.mrf.mxu1 }
 0x4e0   : > { %v3750_v35 = vpop.f32.mrf.mxu0  ;;  %5001 = vst [vmem:[%s8912_s24 + $0xd0] sm:$0xff] %v5573_v58  ;;  %v9216_v45 = vpop.xlane.xlu1 %745  ;;  %v3846_v23 = vmax.f32 %v9208_v53, %v9211_v1 }
 0x4e1   : > { %v6371_v7 = vpop.eup %6370  ;;  %6374 = vpow2.f32 %v4769_v10  ;;  %v4771_v42 = vmul.f32 1.442695, %v5460_v16  ;;  %v3751_v15 = vadd.f32 %v3750_v35, %v8861_v12  ;;  %10208 = vst [vmem:[#allocation101_spill] sm:$0xff] %v9216_v45  ;;  %v5461_v37 = vclamps-f32 %v3747_v34, 15.0  ;;  %v3559_v49 = vpop.f32.mrf.mxu1 }
 0x4e2   : > { %v5574_v46 = vpack.c.bf16 %v6371_v7, %v6369_v57  ;;  %v3752_v48 = vpop.f32.mrf.mxu0  ;;  %v9221_v29 = vadd.f32 %v3559_v49, %v8864_v41  ;;  %v9224_v58 = vpop.xlane.xlu0 %742  ;;  %v9228_v35 = vadd.f32 %v3557_v40, %v8869_v32  ;;  %3847 = vmax.xlane.f32.xlu1 %v3846_v23 }
 0x4e3   : > { %v5462_v55 = vclamps-f32 %v3751_v15, 15.0  ;;  %v3753_v47 = vadd.f32 %v3752_v48, %v8866_v59  ;;  %10209 = vst [vmem:[#allocation102_spill] sm:$0xff] %v9224_v58  ;;  %v4773_v16 = vmul.f32 1.442695, %v5461_v37  ;;  %v3561_v57 = vpop.f32.mrf.mxu1  ;;  %6376 = vpow2.f32 %v4771_v42 }
 0x4e4   : > { %5002 = vst [vmem:[%s8912_s24 + $0xd8] sm:$0xff] %v5574_v46  ;;  %v3754_v7 = vpop.f32.mrf.mxu0  ;;  %v3849_v48 = vmax.f32 %v9228_v35, %v9221_v29  ;;  %v9234_v46 = vadd.f32 %v3561_v57, %v8869_v32 }
 0x4e5   : > { %v4775_v10 = vmul.f32 1.442695, %v5462_v55  ;;  %v5463_v34 = vclamps-f32 %v3753_v47, 15.0  ;;  %v3755_v15 = vadd.f32 %v3754_v7, %v8861_v12  ;;  %6378 = vpow2.f32 %v4773_v16  ;;  %v3563_v49 = vpop.f32.mrf.mxu1  ;;  %v3764_v47 = vpop.xlane.xlu1 %3763 }
 0x4e6   : > { %v3756_v45 = vpop.f32.mrf.mxu0  ;;  %v9237_v37 = vadd.f32 %v3563_v49, %v8864_v41  ;;  %3850 = vmax.xlane.f32.xlu0 %v3849_v48  ;;  %v747_v12 = vadd.f32 %v7508_v28, %v7551_v38  ;;  %v3761_v32 = vpop.xlane.xlu0 %3760  ;;  %v750_v41 = vadd.f32 %v7519_v4, %v7558_v5  ;;  %v3857_v57 = vsub.f32 %v8886_v60, %v3764_v47  ;;  %v10211_v60 = vld [vmem:[#allocation32_spill] sm:$0xff]  ;;  %v10212_v49 = vld [vmem:[#allocation31_spill] sm:$0xff] }
 0x4e7   : > { %v4777_v58 = vmul.f32 1.442695, %v5463_v34  ;;  %v5464_v40 = vclamps-f32 %v3755_v15, 15.0  ;;  %6380 = vpow2.f32 %v4775_v10  ;;  %v3757_v42 = vadd.f32 %v3756_v45, %v8866_v59  ;;  %v10210_v59 = vld [vmem:[#allocation30_spill] sm:$0xff] }
 0x4e8   : > { %v3852_v55 = vmax.f32 %v9234_v46, %v9237_v37  ;;  %v753_v45 = vadd.f32 %v10210_v59, %v7622_v61  ;;  %v3858_v28 = vsub.f32 %v8883_v19, %v3764_v47  ;;  %v3855_v10 = vsub.f32 %v8877_v20, %v3761_v32 }
 0x4e9   : > { %6382 = vpow2.f32 %v4777_v58  ;;  %v4779_v23 = vmul.f32 1.442695, %v5464_v40  ;;  %v5465_v16 = vclamps-f32 %v3757_v42, 15.0  ;;  %v3770_v38 = vpop.xlane.xlu1 %3769  ;;  %v3856_v15 = vsub.f32 %v8873_v11, %v3761_v32  ;;  %v10213_v42 = vld [vmem:[#allocation35_spill] sm:$0xff] }
 0x4ea   : > { %3853 = vmax.xlane.f32.xlu1 %v3852_v55  ;;  %748 = vadd.xlane.f32.xlu0 %v747_v12  ;;  %v3767_v4 = vpop.xlane.xlu0 %3766  ;;  %v756_v48 = vadd.f32 %v10212_v49, %v10211_v60  ;;  %v3923_v40 = vmul.f32 1.442695, %v3857_v57  ;;  %v3861_v61 = vsub.f32 %v8903_v30, %v3770_v38  ;;  %v3925_v19 = vmul.f32 1.442695, %v3858_v28  ;;  %v10214_v12 = vld [vmem:[#allocation33_spill] sm:$0xff]  ;;  %v10217_v28 = vld [vmem:[#allocation39_spill] sm:$0xff] }
 0x4eb   : > { %v4781_v7 = vmul.f32 1.442695, %v5465_v16  ;;  %v6373_v58 = vpop.eup %6372  ;;  %6384 = vpow2.f32 %v4779_v23  ;;  %v759_v47 = vadd.f32 %v10214_v12, %v10213_v42  ;;  %v3862_v20 = vsub.f32 %v8906_v2, %v3770_v38 }
 0x4ec   : > { %v3919_v55 = vmul.f32 1.442695, %v3855_v10  ;;  %v3859_v11 = vsub.f32 %v8897_v56, %v3767_v4  ;;  %v3921_v32 = vmul.f32 1.442695, %v3856_v15  ;;  %v3860_v57 = vsub.f32 %v8893_v22, %v3767_v4 }
 0x4ed   : > { %6386 = vpow2.f32 %v4781_v7  ;;  %v3776_v23 = vpop.xlane.xlu1 %3775  ;;  %v10216_v7 = vld [vmem:[#allocation34_spill] sm:$0xff]  ;;  %v3931_v38 = vmul.f32 1.442695, %v3861_v61  ;;  %v3933_v56 = vmul.f32 1.442695, %v3862_v20  ;;  %v10222_v20 = vld [vmem:[#allocation41_spill] sm:$0xff] }
 0x4ee   : > { %v6375_v34 = vpop.eup %6374  ;;  %751 = vadd.xlane.f32.xlu1 %v750_v41  ;;  %754 = vadd.xlane.f32.xlu0 %v753_v45  ;;  %v10215_v41 = vld [vmem:[#allocation36_spill] sm:$0xff]  ;;  %v3773_v30 = vpop.xlane.xlu0 %3772  ;;  %6388 = vpow2.f32 %v3923_v40  ;;  %v3865_v10 = vsub.f32 %v8932_v0, %v3776_v23  ;;  %v3866_v15 = vsub.f32 %v8929_v24, %v3776_v23  ;;  %v3927_v22 = vmul.f32 1.442695, %v3859_v11  ;;  %v10220_v40 = vld [vmem:[#allocation38_spill] sm:$0xff] }
 0x4ef   : > { %v5575_v5 = vpack.c.bf16 %v6375_v34, %v6373_v58  ;;  %v762_v59 = vadd.f32 %v10216_v7, %v10215_v41  ;;  %v10218_v58 = vld [vmem:[#allocation37_spill] sm:$0xff]  ;;  %6390 = vpow2.f32 %v3925_v19  ;;  %v3863_v4 = vsub.f32 %v8922_v54, %v3773_v30  ;;  %v10221_v54 = vld [vmem:[#allocation43_spill] sm:$0xff]  ;;  %v10223_v7 = vld [vmem:[#allocation44_spill] sm:$0xff] }
 0x4f0   : > { %v6377_v16 = vpop.eup %6376  ;;  %v765_v2 = vadd.f32 %v10218_v58, %v10217_v28  ;;  %6392 = vpow2.f32 %v3919_v55  ;;  %v3929_v0 = vmul.f32 1.442695, %v3860_v57  ;;  %v3864_v19 = vsub.f32 %v8918_v14, %v3773_v30 }
 0x4f1   : > { %5003 = vst [vmem:[%s8912_s24 + $0xe0] sm:$0xff] %v5575_v5  ;;  %v3782_v5 = vpop.xlane.xlu1 %3781  ;;  %6394 = vpow2.f32 %v3921_v32  ;;  %v3939_v24 = vmul.f32 1.442695, %v3865_v10  ;;  %v771_v23 = vadd.f32 %v10222_v20, %v10221_v54  ;;  %v3941_v55 = vmul.f32 1.442695, %v3866_v15  ;;  %v10230_v54 = vld [vmem:[#allocation51_spill] sm:$0xff] }
 0x4f2   : > { %v6379_v45 = vpop.eup %6378  ;;  %757 = vadd.xlane.f32.xlu1 %v756_v48  ;;  %760 = vadd.xlane.f32.xlu0 %v759_v47  ;;  %v10219_v48 = vld [vmem:[#allocation40_spill] sm:$0xff]  ;;  %v3779_v42 = vpop.xlane.xlu0 %3778  ;;  %6396 = vpow2.f32 %v3931_v38  ;;  %v3869_v47 = vsub.f32 %v8950_v18, %v3782_v5  ;;  %v3870_v11 = vsub.f32 %v8953_v62, %v3782_v5  ;;  %v3935_v32 = vmul.f32 1.442695, %v3863_v4  ;;  %v10225_v62 = vld [vmem:[#allocation45_spill] sm:$0xff] }
 0x4f3   : > { %v5576_v34 = vpack.c.bf16 %v6379_v45, %v6377_v16  ;;  %v768_v61 = vadd.f32 %v10220_v40, %v10219_v48  ;;  %6398 = vpow2.f32 %v3933_v56  ;;  %v3867_v14 = vsub.f32 %v8944_v39, %v3779_v42  ;;  %v10228_v40 = vld [vmem:[#allocation50_spill] sm:$0xff]  ;;  %v10231_v20 = vld [vmem:[#allocation49_spill] sm:$0xff] }
 0x4f4   : > { %v6381_v60 = vpop.eup %6380  ;;  %6400 = vpow2.f32 %v3927_v22  ;;  %v3937_v18 = vmul.f32 1.442695, %v3864_v19  ;;  %v3868_v30 = vsub.f32 %v8940_v8, %v3779_v42  ;;  %v777_v58 = vadd.f32 %v10225_v62, %v7836_v26  ;;  %v10227_v22 = vld [vmem:[#allocation46_spill] sm:$0xff] }
 0x4f5   : > { %5004 = vst [vmem:[%s8912_s24 + $0xe8] sm:$0xff] %v5576_v34  ;;  %v3788_v16 = vpop.xlane.xlu1 %3787  ;;  %6402 = vpow2.f32 %v3929_v0  ;;  %v3949_v10 = vmul.f32 1.442695, %v3870_v11  ;;  %v3943_v8 = vmul.f32 1.442695, %v3867_v14 }
 0x4f6   : > { %v6383_v49 = vpop.eup %6382  ;;  %763 = vadd.xlane.f32.xlu1 %v762_v59  ;;  %766 = vadd.xlane.f32.xlu0 %v765_v2  ;;  %v10224_v59 = vld [vmem:[#allocation42_spill] sm:$0xff]  ;;  %v3785_v45 = vpop.xlane.xlu0 %3784  ;;  %6404 = vpow2.f32 %v3939_v24  ;;  %v3947_v2 = vmul.f32 1.442695, %v3869_v47  ;;  %v3873_v38 = vsub.f32 %v8972_v9, %v3788_v16  ;;  %v3874_v34 = vsub.f32 %v8975_v63, %v3788_v16 }
 0x4f7   : > { %v5577_v12 = vpack.c.bf16 %v6383_v49, %v6381_v60  ;;  %v774_v57 = vadd.f32 %v10224_v59, %v10223_v7  ;;  %6406 = vpow2.f32 %v3941_v55  ;;  %v3871_v15 = vsub.f32 %v8965_v36, %v3785_v45  ;;  %v10226_v60 = vld [vmem:[#allocation47_spill] sm:$0xff] }
 0x4f8   : > { %v6385_v41 = vpop.eup %6384  ;;  %6408 = vpow2.f32 %v3935_v32  ;;  %v3945_v5 = vmul.f32 1.442695, %v3868_v30  ;;  %v3872_v26 = vsub.f32 %v8961_v13, %v3785_v45  ;;  %v780_v9 = vadd.f32 %v10227_v22, %v10226_v60 }
 0x4f9   : > { %5005 = vst [vmem:[%s8912_s24 + $0xf0] sm:$0xff] %v5577_v12  ;;  %v3794_v56 = vpop.xlane.xlu1 %3793  ;;  %6410 = vpow2.f32 %v3937_v18  ;;  %v3955_v4 = vmul.f32 1.442695, %v3873_v38  ;;  %v3957_v0 = vmul.f32 1.442695, %v3874_v34 }
 0x4fa   : > { %v6387_v28 = vpop.eup %6386  ;;  %769 = vadd.xlane.f32.xlu1 %v768_v61  ;;  %772 = vadd.xlane.f32.xlu0 %v771_v23  ;;  %6412 = vpow2.f32 %v3947_v2  ;;  %v3791_v49 = vpop.xlane.xlu0 %3790  ;;  %v3877_v48 = vsub.f32 %v8994_v33, %v3794_v56  ;;  %v10229_v61 = vld [vmem:[#allocation48_spill] sm:$0xff]  ;;  %v3878_v19 = vsub.f32 %v8997_v43, %v3794_v56  ;;  %v3951_v42 = vmul.f32 1.442695, %v3871_v15 }
 0x4fb   : > { %v5578_v39 = vpack.c.bf16 %v6387_v28, %v6385_v41  ;;  %v9291_v63 = vpop.eup %6388  ;;  %v783_v36 = vadd.f32 %v10229_v61, %v10228_v40  ;;  %6414 = vpow2.f32 %v3949_v10  ;;  %v3953_v24 = vmul.f32 1.442695, %v3872_v26 }
 0x4fc   : > { %v9296_v13 = vpop.eup %6390  ;;  %6416 = vpow2.f32 %v3943_v8  ;;  %v3875_v33 = vsub.f32 %v8987_v31, %v3791_v49  ;;  %v786_v23 = vadd.f32 %v10231_v20, %v10230_v54  ;;  %v3876_v55 = vsub.f32 %v8983_v44, %v3791_v49 }
 0x4fd   : > { %5006 = vst [vmem:[%s8912_s24 + $0xf8] sm:$0xff] %v5578_v39  ;;  %v9298_v12 = vpop.eup %6392  ;;  %6418 = vpow2.f32 %v3945_v5  ;;  %v3963_v43 = vmul.f32 1.442695, %v3877_v48  ;;  %v4050_v16 = vadd.f32 %v9296_v13, %v9291_v63  ;;  %v3965_v32 = vmul.f32 1.442695, %v3878_v19 }
 0x4fe   : > { %775 = vadd.xlane.f32.xlu1 %v774_v57  ;;  %778 = vadd.xlane.f32.xlu0 %v777_v58  ;;  %v9301_v47 = vpop.eup %6394  ;;  %6420 = vpow2.f32 %v3955_v4  ;;  %v3959_v59 = vmul.f32 1.442695, %v3875_v33  ;;  %v3961_v18 = vmul.f32 1.442695, %v3876_v55 }
 0x4ff   : > { %v9306_v11 = vpop.eup %6396  ;;  %6422 = vpow2.f32 %v3957_v0  ;;  %v4047_v57 = vadd.f32 %v9301_v47, %v9298_v12 }
 0x500   : > { %v9310_v31 = vpop.eup %6398  ;;  %6424 = vpow2.f32 %v3951_v42 }
 0x501   : > { %v9313_v7 = vpop.eup %6400  ;;  %6426 = vpow2.f32 %v3953_v24 }
 0x502   : > { %781 = vadd.xlane.f32.xlu1 %v780_v9  ;;  %784 = vadd.xlane.f32.xlu0 %v783_v36  ;;  %v9315_v44 = vpop.eup %6402  ;;  %6428 = vpow2.f32 %v3963_v43 }
 0x503   : > { %v3797_v14 = vpop.xlane.xlu0 %3796  ;;  %v9320_v45 = vpop.eup %6404  ;;  %6430 = vpow2.f32 %v3965_v32 }
 0x504   : > { %v3879_v41 = vsub.f32 %v9009_v3, %v3797_v14  ;;  %v3880_v30 = vsub.f32 %v9005_v17, %v3797_v14  ;;  %v4056_v3 = vadd.f32 %v9310_v31, %v9306_v11  ;;  %v9324_v58 = vpop.eup %6406  ;;  %v4053_v17 = vadd.f32 %v9315_v44, %v9313_v7 }
 0x505   : > { %v9328_v39 = vpop.eup %6408  ;;  %6432 = vpow2.f32 %v3959_v59 }
 0x506   : > { %787 = vadd.xlane.f32.xlu1 %v786_v23  ;;  %4051 = vadd.xlane.f32.xlu0 %v4050_v16  ;;  %v3967_v28 = vmul.f32 1.442695, %v3879_v41  ;;  %v9332_v10 = vpop.eup %6410  ;;  %6434 = vpow2.f32 %v3961_v18  ;;  %v3969_v34 = vmul.f32 1.442695, %v3880_v30 }
 0x507   : > { %v9334_v15 = vpop.eup %6412  ;;  %v4059_v4 = vadd.f32 %v9332_v10, %v9328_v39 }
 0x508   : > { %v3800_v62 = vpop.xlane.xlu1 %3799  ;;  %6436 = vpow2.f32 %v3967_v28  ;;  %v9338_v5 = vpop.eup %6414 }
 0x509   : > { %v3881_v2 = vsub.f32 %v9016_v52, %v3800_v62  ;;  %v3882_v38 = vsub.f32 %v9019_v50, %v3800_v62  ;;  %v4062_v52 = vadd.f32 %v9324_v58, %v9320_v45  ;;  %v9342_v22 = vpop.eup %6416 }
 0x50a   : > { %4048 = vadd.xlane.f32.xlu1 %v4047_v57  ;;  %4057 = vadd.xlane.f32.xlu0 %v4056_v3  ;;  %v9344_v9 = vpop.eup %6418 }
 0x50b   : > { %v3971_v56 = vmul.f32 1.442695, %v3881_v2  ;;  %v3973_v8 = vmul.f32 1.442695, %v3882_v38  ;;  %v3803_v50 = vpop.xlane.xlu0 %3802  ;;  %v9348_v61 = vpop.eup %6420  ;;  %v4065_v54 = vadd.f32 %v9344_v9, %v9342_v22  ;;  %v10232_v2 = vld [vmem:[#allocation68_spill] sm:$0xff] }
 0x50c   : > { %v3883_v26 = vsub.f32 %v9031_v25, %v3803_v50  ;;  %v3884_v60 = vsub.f32 %v9027_v6, %v3803_v50  ;;  %v4068_v25 = vadd.f32 %v9338_v5, %v9334_v15  ;;  %v9354_v0 = vpop.eup %6422 }
 0x50d   : > { %6438 = vpow2.f32 %v3971_v56  ;;  %v9356_v19 = vpop.eup %6424 }
 0x50e   : > { %6440 = vpow2.f32 %v3973_v8  ;;  %4054 = vadd.xlane.f32.xlu1 %v4053_v17  ;;  %v3975_v49 = vmul.f32 1.442695, %v3883_v26  ;;  %v3977_v48 = vmul.f32 1.442695, %v3884_v60  ;;  %4063 = vadd.xlane.f32.xlu0 %v4062_v52  ;;  %v9358_v33 = vpop.eup %6426  ;;  %v10233_v60 = vld [vmem:[#allocation70_spill] sm:$0xff] }
 0x50f   : > { %6442 = vpow2.f32 %v3969_v34  ;;  %v3806_v40 = vpop.xlane.xlu1 %3805  ;;  %v9362_v20 = vpop.eup %6428  ;;  %v4071_v55 = vadd.f32 %v9358_v33, %v9356_v19 }
 0x510   : > { %v3885_v6 = vsub.f32 %v9038_v21, %v3806_v40  ;;  %v3886_v36 = vsub.f32 %v9041_v51, %v3806_v40  ;;  %6444 = vpow2.f32 %v3975_v49  ;;  %v4074_v21 = vadd.f32 %v9354_v0, %v9348_v61  ;;  %v9366_v51 = vpop.eup %6430 }
 0x511   : > { %6446 = vpow2.f32 %v3977_v48  ;;  %v4080_v16 = vadd.f32 %v9366_v51, %v9362_v20 }
 0x512   : > { %v3979_v42 = vmul.f32 1.442695, %v3885_v6  ;;  %v3981_v24 = vmul.f32 1.442695, %v3886_v36  ;;  %4060 = vadd.xlane.f32.xlu1 %v4059_v4  ;;  %4069 = vadd.xlane.f32.xlu0 %v4068_v25  ;;  %v9368_v23 = vpop.eup %6432  ;;  %v10235_v36 = vld [vmem:[#allocation72_spill] sm:$0xff] }
 0x513   : > { %v9372_v43 = vpop.eup %6434 }
 0x514   : > { %6448 = vpow2.f32 %v3979_v42  ;;  %v4077_v59 = vadd.f32 %v9372_v43, %v9368_v23 }
 0x515   : > { %6450 = vpow2.f32 %v3981_v24  ;;  %v9376_v32 = vpop.eup %6436  ;;  %v10236_v24 = vld [vmem:[#allocation71_spill] sm:$0xff] }
 0x516   : > { %4066 = vadd.xlane.f32.xlu1 %v4065_v54  ;;  %4075 = vadd.xlane.f32.xlu0 %v4074_v21 }
 0x51a   : > { %v9378_v14 = vpop.eup %6438  ;;  %4072 = vadd.xlane.f32.xlu1 %v4071_v55  ;;  %4081 = vadd.xlane.f32.xlu0 %v4080_v16 }
 0x51b   : > { %v9380_v41 = vpop.eup %6440 }
 0x51c   : > { %v9384_v57 = vpop.eup %6442  ;;  %v4086_v18 = vadd.f32 %v9380_v41, %v9378_v14 }
 0x51d   : > { %v9388_v30 = vpop.eup %6444  ;;  %v3809_v3 = vpop.xlane.xlu0 %3808  ;;  %v4083_v17 = vadd.f32 %v9384_v57, %v9376_v32 }
 0x51e   : > { %v9390_v28 = vpop.eup %6446  ;;  %4078 = vadd.xlane.f32.xlu1 %v4077_v59  ;;  %v3887_v62 = vsub.f32 %v9054_v27, %v3809_v3  ;;  %v3888_v38 = vsub.f32 %v10232_v2, %v3809_v3  ;;  %4087 = vadd.xlane.f32.xlu0 %v4086_v18  ;;  %v10234_v27 = vld [vmem:[#allocation69_spill] sm:$0xff]  ;;  %v10238_v3 = vld [vmem:[#allocation74_spill] sm:$0xff] }
 0x51f   : > { %v4089_v26 = vadd.f32 %v9390_v28, %v9388_v30  ;;  %v10237_v59 = vld [vmem:[#allocation73_spill] sm:$0xff] }
 0x520   : > { %v3983_v56 = vmul.f32 1.442695, %v3887_v62  ;;  %v3985_v8 = vmul.f32 1.442695, %v3888_v38 }
 0x521   : > { %v9396_v34 = vpop.eup %6448  ;;  %v3812_v50 = vpop.xlane.xlu1 %3811 }
 0x522   : > { %v9398_v52 = vpop.eup %6450  ;;  %6452 = vpow2.f32 %v3983_v56  ;;  %v3889_v4 = vsub.f32 %v10233_v60, %v3812_v50  ;;  %v3890_v49 = vsub.f32 %v10234_v27, %v3812_v50  ;;  %4084 = vadd.xlane.f32.xlu1 %v4083_v17 }
 0x523   : > { %v4092_v48 = vadd.f32 %v9398_v52, %v9396_v34  ;;  %6454 = vpow2.f32 %v3985_v8 }
 0x524   : > { %v3987_v40 = vmul.f32 1.442695, %v3889_v4  ;;  %v3989_v25 = vmul.f32 1.442695, %v3890_v49  ;;  %v10239_v49 = vld [vmem:[#allocation76_spill] sm:$0xff] }
 0x525   : > { %4093 = vadd.xlane.f32.xlu0 %v4092_v48 }
 0x526   : > { %v3815_v6 = vpop.xlane.xlu0 %3814  ;;  %6456 = vpow2.f32 %v3987_v40  ;;  %4090 = vadd.xlane.f32.xlu1 %v4089_v26  ;;  %v10240_v40 = vld [vmem:[#allocation75_spill] sm:$0xff] }
 0x527   : > { %v3891_v42 = vsub.f32 %v10235_v36, %v3815_v6  ;;  %v3892_v54 = vsub.f32 %v10236_v24, %v3815_v6  ;;  %6458 = vpow2.f32 %v3989_v25 }
 0x529   : > { %v3991_v21 = vmul.f32 1.442695, %v3891_v42  ;;  %v3993_v55 = vmul.f32 1.442695, %v3892_v54  ;;  %v3818_v16 = vpop.xlane.xlu1 %3817 }
 0x52a   : > { %v3893_v18 = vsub.f32 %v10237_v59, %v3818_v16  ;;  %v3894_v62 = vsub.f32 %v10238_v3, %v3818_v16  ;;  %v10243_v16 = vld [vmem:[#allocation78_spill] sm:$0xff] }
 0x52b   : > { %6460 = vpow2.f32 %v3991_v21 }
 0x52c   : > { %6462 = vpow2.f32 %v3993_v55  ;;  %v3995_v2 = vmul.f32 1.442695, %v3893_v18  ;;  %v3997_v38 = vmul.f32 1.442695, %v3894_v62  ;;  %v10244_v18 = vld [vmem:[#allocation77_spill] sm:$0xff] }
 0x52e   : > { %6464 = vpow2.f32 %v3995_v2 }
 0x52f   : > { %6466 = vpow2.f32 %v3997_v38  ;;  %v9410_v17 = vpop.eup %6452 }
 0x530   : > { %v9412_v56 = vpop.eup %6454 }
 0x531   : > { %v4095_v8 = vadd.f32 %v9412_v56, %v9410_v17 }
 0x533   : > { %v9416_v50 = vpop.eup %6456  ;;  %4096 = vadd.xlane.f32.xlu1 %v4095_v8 }
 0x534   : > { %v9418_v26 = vpop.eup %6458 }
 0x535   : > { %v4098_v60 = vadd.f32 %v9418_v26, %v9416_v50  ;;  %v3821_v4 = vpop.xlane.xlu0 %3820 }
 0x536   : > { %v3895_v48 = vsub.f32 %v10239_v49, %v3821_v4  ;;  %v3896_v25 = vsub.f32 %v10240_v40, %v3821_v4  ;;  %v10246_v49 = vld [vmem:[#allocation79_spill] sm:$0xff] }
 0x537   : > { %4099 = vadd.xlane.f32.xlu0 %v4098_v60  ;;  %v10245_v60 = vld [vmem:[#allocation80_spill] sm:$0xff] }
 0x538   : > { %v9422_v27 = vpop.eup %6460  ;;  %v3999_v36 = vmul.f32 1.442695, %v3895_v48  ;;  %v4001_v42 = vmul.f32 1.442695, %v3896_v25 }
 0x539   : > { %v9426_v6 = vpop.eup %6462  ;;  %v3824_v21 = vpop.xlane.xlu1 %3823 }
 0x53a   : > { %v4101_v24 = vadd.f32 %v9426_v6, %v9422_v27  ;;  %6468 = vpow2.f32 %v3999_v36  ;;  %v3897_v59 = vsub.f32 %v10243_v16, %v3824_v21  ;;  %v3898_v3 = vsub.f32 %v10244_v18, %v3824_v21  ;;  %v10247_v16 = vld [vmem:[#allocation81_spill] sm:$0xff] }
 0x53b   : > { %v9430_v54 = vpop.eup %6464  ;;  %6470 = vpow2.f32 %v4001_v42 }
 0x53c   : > { %10241 = vst [vmem:[#allocation30_spill] sm:$0xff] %v9430_v54  ;;  %v9432_v55 = vpop.eup %6466  ;;  %4102 = vadd.xlane.f32.xlu1 %v4101_v24  ;;  %v4003_v2 = vmul.f32 1.442695, %v3897_v59  ;;  %v4005_v38 = vmul.f32 1.442695, %v3898_v3  ;;  %v10248_v24 = vld [vmem:[#allocation82_spill] sm:$0xff] }
 0x53d   : > { %10242 = vst [vmem:[#allocation32_spill] sm:$0xff] %v9432_v55  ;;  %v4104_v62 = vadd.f32 %v9432_v55, %v9430_v54  ;;  %v3827_v8 = vpop.xlane.xlu0 %3826 }
 0x53e   : > { %6472 = vpow2.f32 %v4003_v2  ;;  %v3899_v4 = vsub.f32 %v10245_v60, %v3827_v8  ;;  %v3900_v48 = vsub.f32 %v10246_v49, %v3827_v8 }
 0x53f   : > { %4105 = vadd.xlane.f32.xlu0 %v4104_v62  ;;  %6474 = vpow2.f32 %v4005_v38 }
 0x540   : > { %v4007_v40 = vmul.f32 1.442695, %v3899_v4  ;;  %v4009_v25 = vmul.f32 1.442695, %v3900_v48  ;;  %v10254_v48 = vld [vmem:[#allocation84_spill] sm:$0xff] }
 0x541   : > { %v3830_v36 = vpop.xlane.xlu1 %3829 }
 0x542   : > { %v3901_v21 = vsub.f32 %v10247_v16, %v3830_v36  ;;  %v3902_v42 = vsub.f32 %v10248_v24, %v3830_v36  ;;  %6476 = vpow2.f32 %v4007_v40 }
 0x543   : > { %6478 = vpow2.f32 %v4009_v25  ;;  %v10255_v25 = vld [vmem:[#allocation83_spill] sm:$0xff] }
 0x544   : > { %v4011_v18 = vmul.f32 1.442695, %v3901_v21  ;;  %v4013_v59 = vmul.f32 1.442695, %v3902_v42 }
 0x546   : > { %6480 = vpow2.f32 %v4011_v18 }
 0x547   : > { %6482 = vpow2.f32 %v4013_v59  ;;  %v9442_v3 = vpop.eup %6468 }
 0x548   : > { %10249 = vst [vmem:[#allocation31_spill] sm:$0xff] %v9442_v3  ;;  %v9444_v62 = vpop.eup %6470 }
 0x549   : > { %10250 = vst [vmem:[#allocation35_spill] sm:$0xff] %v9444_v62  ;;  %v4107_v2 = vadd.f32 %v9444_v62, %v9442_v3  ;;  %v10260_v62 = vld [vmem:[#allocation85_spill] sm:$0xff] }
 0x54b   : > { %v9448_v38 = vpop.eup %6472  ;;  %4108 = vadd.xlane.f32.xlu1 %v4107_v2 }
 0x54c   : > { %10251 = vst [vmem:[#allocation33_spill] sm:$0xff] %v9448_v38  ;;  %v9450_v8 = vpop.eup %6474 }
 0x54d   : > { %10252 = vst [vmem:[#allocation36_spill] sm:$0xff] %v9450_v8  ;;  %v4110_v60 = vadd.f32 %v9450_v8, %v9448_v38  ;;  %v10259_v8 = vld [vmem:[#allocation86_spill] sm:$0xff] }
 0x54e   : > { %v3833_v4 = vpop.xlane.xlu0 %3832 }
 0x54f   : > { %v9454_v49 = vpop.eup %6476  ;;  %v3903_v40 = vsub.f32 %v10254_v48, %v3833_v4  ;;  %v3904_v36 = vsub.f32 %v10255_v25, %v3833_v4  ;;  %4111 = vadd.xlane.f32.xlu0 %v4110_v60 }
 0x550   : > { %10253 = vst [vmem:[#allocation34_spill] sm:$0xff] %v9454_v49  ;;  %v9458_v16 = vpop.eup %6478 }
 0x551   : > { %10256 = vst [vmem:[#allocation39_spill] sm:$0xff] %v9458_v16  ;;  %v4015_v21 = vmul.f32 1.442695, %v3903_v40  ;;  %v4017_v24 = vmul.f32 1.442695, %v3904_v36  ;;  %v4113_v42 = vadd.f32 %v9458_v16, %v9454_v49  ;;  %v10261_v36 = vld [vmem:[#allocation88_spill] sm:$0xff] }
 0x552   : > { %v3836_v59 = vpop.xlane.xlu1 %3835  ;;  %v10262_v49 = vld [vmem:[#allocation89_spill] sm:$0xff] }
 0x553   : > { %v9462_v18 = vpop.eup %6480  ;;  %6484 = vpow2.f32 %v4015_v21  ;;  %v3905_v38 = vsub.f32 %v10259_v8, %v3836_v59  ;;  %v3906_v48 = vsub.f32 %v10260_v62, %v3836_v59  ;;  %4114 = vadd.xlane.f32.xlu1 %v4113_v42  ;;  %v10263_v62 = vld [vmem:[#allocation91_spill] sm:$0xff] }
 0x554   : > { %10257 = vst [vmem:[#allocation37_spill] sm:$0xff] %v9462_v18  ;;  %v9464_v2 = vpop.eup %6482  ;;  %6486 = vpow2.f32 %v4017_v24  ;;  %v10264_v24 = vld [vmem:[#allocation92_spill] sm:$0xff] }
 0x555   : > { %10258 = vst [vmem:[#allocation40_spill] sm:$0xff] %v9464_v2  ;;  %v4116_v60 = vadd.f32 %v9464_v2, %v9462_v18  ;;  %v4019_v4 = vmul.f32 1.442695, %v3905_v38  ;;  %v4021_v40 = vmul.f32 1.442695, %v3906_v48 }
 0x556   : > { %v3839_v25 = vpop.xlane.xlu0 %3838 }
 0x557   : > { %v3907_v16 = vsub.f32 %v10261_v36, %v3839_v25  ;;  %v3908_v3 = vsub.f32 %v10262_v49, %v3839_v25  ;;  %4117 = vadd.xlane.f32.xlu0 %v4116_v60  ;;  %6488 = vpow2.f32 %v4019_v4 }
 0x558   : > { %6490 = vpow2.f32 %v4021_v40  ;;  %v10271_v40 = vld [vmem:[#allocation99_spill] sm:$0xff] }
 0x559   : > { %v4023_v21 = vmul.f32 1.442695, %v3907_v16  ;;  %v4025_v55 = vmul.f32 1.442695, %v3908_v3 }
 0x55a   : > { %v3842_v8 = vpop.xlane.xlu1 %3841 }
 0x55b   : > { %6492 = vpow2.f32 %v4023_v21  ;;  %v3909_v42 = vsub.f32 %v10263_v62, %v3842_v8  ;;  %v3910_v59 = vsub.f32 %v10264_v24, %v3842_v8  ;;  %v10272_v21 = vld [vmem:[#allocation97_spill] sm:$0xff] }
 0x55c   : > { %6494 = vpow2.f32 %v4025_v55 }
 0x55d   : > { %v4027_v2 = vmul.f32 1.442695, %v3909_v42  ;;  %v4029_v38 = vmul.f32 1.442695, %v3910_v59 }
 0x55f   : > { %6496 = vpow2.f32 %v4027_v2 }
 0x560   : > { %6498 = vpow2.f32 %v4029_v38  ;;  %v9474_v48 = vpop.eup %6484 }
 0x561   : > { %10265 = vst [vmem:[#allocation38_spill] sm:$0xff] %v9474_v48  ;;  %v9476_v36 = vpop.eup %6486 }
 0x562   : > { %10266 = vst [vmem:[#allocation43_spill] sm:$0xff] %v9476_v36  ;;  %v4119_v49 = vadd.f32 %v9476_v36, %v9474_v48 }
 0x564   : > { %v9480_v16 = vpop.eup %6488  ;;  %4120 = vadd.xlane.f32.xlu1 %v4119_v49 }
 0x565   : > { %10267 = vst [vmem:[#allocation41_spill] sm:$0xff] %v9480_v16  ;;  %v9482_v3 = vpop.eup %6490 }
 0x566   : > { %10268 = vst [vmem:[#allocation44_spill] sm:$0xff] %v9482_v3  ;;  %v4122_v60 = vadd.f32 %v9482_v3, %v9480_v16  ;;  %v10290_v3 = vld [vmem:[#allocation57_spill] sm:$0xff] }
 0x567   : > { %v3845_v4 = vpop.xlane.xlu0 %3844 }
 0x568   : > { %v9486_v55 = vpop.eup %6492  ;;  %v3911_v25 = vsub.f32 %v10271_v40, %v3845_v4  ;;  %v3912_v8 = vsub.f32 %v10272_v21, %v3845_v4  ;;  %4123 = vadd.xlane.f32.xlu0 %v4122_v60 }
 0x569   : > { %10269 = vst [vmem:[#allocation42_spill] sm:$0xff] %v9486_v55  ;;  %v9488_v2 = vpop.eup %6494 }
 0x56a   : > { %10270 = vst [vmem:[#allocation45_spill] sm:$0xff] %v9488_v2  ;;  %v4125_v62 = vadd.f32 %v9488_v2, %v9486_v55  ;;  %v4031_v42 = vmul.f32 1.442695, %v3911_v25  ;;  %v4033_v24 = vmul.f32 1.442695, %v3912_v8 }
 0x56b   : > { %v3848_v38 = vpop.xlane.xlu1 %3847 }
 0x56c   : > { %v9494_v59 = vpop.eup %6496  ;;  %4126 = vadd.xlane.f32.xlu1 %v4125_v62  ;;  %6500 = vpow2.f32 %v4031_v42  ;;  %v3913_v36 = vsub.f32 %v9208_v53, %v3848_v38  ;;  %v3914_v48 = vsub.f32 %v9211_v1, %v3848_v38 }
 0x56d   : > { %10273 = vst [vmem:[#allocation47_spill] sm:$0xff] %v9494_v59  ;;  %v9496_v49 = vpop.eup %6498  ;;  %6502 = vpow2.f32 %v4033_v24 }
 0x56e   : > { %10274 = vst [vmem:[#allocation46_spill] sm:$0xff] %v9496_v49  ;;  %v4128_v60 = vadd.f32 %v9496_v49, %v9494_v59  ;;  %v4035_v4 = vmul.f32 1.442695, %v3913_v36  ;;  %v4037_v40 = vmul.f32 1.442695, %v3914_v48  ;;  %v10287_v49 = vld [vmem:[#allocation53_spill] sm:$0xff] }
 0x56f   : > { %v3851_v21 = vpop.xlane.xlu0 %3850  ;;  %v10289_v59 = vld [vmem:[#allocation59_spill] sm:$0xff] }
 0x570   : > { %4129 = vadd.xlane.f32.xlu0 %v4128_v60  ;;  %6504 = vpow2.f32 %v4035_v4  ;;  %v3915_v25 = vsub.f32 %v9228_v35, %v3851_v21  ;;  %v3916_v8 = vsub.f32 %v9221_v29, %v3851_v21  ;;  %v798_v16 = vadd.f32 %v10290_v3, %v10289_v59  ;;  %v10299_v3 = vld [vmem:[#allocation67_spill] sm:$0xff]  ;;  %v10300_v59 = vld [vmem:[#allocation65_spill] sm:$0xff] }
 0x571   : > { %6506 = vpow2.f32 %v4037_v40 }
 0x572   : > { %v4039_v62 = vmul.f32 1.442695, %v3915_v25  ;;  %v4041_v42 = vmul.f32 1.442695, %v3916_v8 }
 0x573   : > { %v3854_v2 = vpop.xlane.xlu1 %3853  ;;  %v9506_v24 = vpop.xlane.xlu0 %748 }
 0x574   : > { %v3917_v53 = vsub.f32 %v9234_v46, %v3854_v2  ;;  %v3918_v1 = vsub.f32 %v9237_v37, %v3854_v2  ;;  %6508 = vpow2.f32 %v4039_v62 }
 0x575   : > { %6510 = vpow2.f32 %v4041_v42 }
 0x576   : > { %v4043_v48 = vmul.f32 1.442695, %v3917_v53  ;;  %v4045_v36 = vmul.f32 1.442695, %v3918_v1 }
 0x577   : > { %v9508_v38 = vpop.xlane.xlu1 %751  ;;  %v9510_v35 = vpop.xlane.xlu0 %754 }
 0x578   : > { %6512 = vpow2.f32 %v4043_v48 }
 0x579   : > { %6514 = vpow2.f32 %v4045_v36  ;;  %v9512_v29 = vpop.eup %6500 }
 0x57a   : > { %10275 = vst [vmem:[#allocation50_spill] sm:$0xff] %v9512_v29  ;;  %v9514_v60 = vpop.eup %6502 }
 0x57b   : > { %10276 = vst [vmem:[#allocation48_spill] sm:$0xff] %v9514_v60  ;;  %v9516_v4 = vpop.xlane.xlu1 %757  ;;  %v4131_v46 = vadd.f32 %v9514_v60, %v9512_v29  ;;  %v9520_v37 = vpop.xlane.xlu0 %760  ;;  %v10283_v60 = vld [vmem:[#allocation55_spill] sm:$0xff]  ;;  %v10284_v29 = vld [vmem:[#allocation54_spill] sm:$0xff] }
 0x57d   : > { %v9522_v2 = vpop.eup %6504  ;;  %4132 = vadd.xlane.f32.xlu1 %v4131_v46 }
 0x57e   : > { %10277 = vst [vmem:[#allocation51_spill] sm:$0xff] %v9522_v2  ;;  %v9524_v40 = vpop.eup %6506 }
 0x57f   : > { %10278 = vst [vmem:[#allocation49_spill] sm:$0xff] %v9524_v40  ;;  %v9526_v21 = vpop.xlane.xlu1 %763  ;;  %v4134_v25 = vadd.f32 %v9524_v40, %v9522_v2  ;;  %v9530_v8 = vpop.xlane.xlu0 %766  ;;  %v792_v40 = vadd.f32 %v10284_v29, %v10283_v60  ;;  %v10293_v29 = vld [vmem:[#allocation58_spill] sm:$0xff]  ;;  %v10294_v60 = vld [vmem:[#allocation56_spill] sm:$0xff] }
 0x581   : > { %v9532_v62 = vpop.eup %6508  ;;  %4135 = vadd.xlane.f32.xlu0 %v4134_v25 }
 0x582   : > { %10279 = vst [vmem:[#allocation68_spill] sm:$0xff] %v9532_v62  ;;  %v9534_v42 = vpop.eup %6510 }
 0x583   : > { %10280 = vst [vmem:[#allocation70_spill] sm:$0xff] %v9534_v42  ;;  %v9536_v53 = vpop.xlane.xlu1 %769  ;;  %v4137_v1 = vadd.f32 %v9534_v42, %v9532_v62  ;;  %v9540_v48 = vpop.xlane.xlu0 %772  ;;  %v10288_v42 = vld [vmem:[#allocation52_spill] sm:$0xff] }
 0x584   : > { %v789_v62 = vadd.f32 %v10288_v42, %v10287_v49  ;;  %v10297_v49 = vld [vmem:[#allocation62_spill] sm:$0xff] }
 0x585   : > { %v9542_v36 = vpop.eup %6512  ;;  %4138 = vadd.xlane.f32.xlu1 %v4137_v1 }
 0x586   : > { %10281 = vst [vmem:[#allocation69_spill] sm:$0xff] %v9542_v36  ;;  %v9544_v46 = vpop.eup %6514 }
 0x587   : > { %10282 = vst [vmem:[#allocation72_spill] sm:$0xff] %v9544_v46  ;;  %v4140_v25 = vadd.f32 %v9544_v46, %v9542_v36  ;;  %v9550_v2 = vpop.xlane.xlu1 %775  ;;  %v9552_v55 = vpop.xlane.xlu0 %778  ;;  %v795_v46 = vadd.f32 %v10294_v60, %v10293_v29  ;;  %v10295_v36 = vld [vmem:[#allocation63_spill] sm:$0xff]  ;;  %v10302_v29 = vld [vmem:[#allocation64_spill] sm:$0xff] }
 0x588   : > { %10285 = vst [vmem:[#allocation71_spill] sm:$0xff] %v9550_v2  ;;  %10286 = vst [vmem:[#allocation73_spill] sm:$0xff] %v9552_v55  ;;  %v10296_v2 = vld [vmem:[#allocation61_spill] sm:$0xff] }
 0x589   : > { %4141 = vadd.xlane.f32.xlu0 %v4140_v25  ;;  %793 = vadd.xlane.f32.xlu1 %v792_v40  ;;  %v804_v55 = vadd.f32 %v10296_v2, %v10295_v36  ;;  %v10298_v40 = vld [vmem:[#allocation60_spill] sm:$0xff] }
 0x58a   : > { %v801_v42 = vadd.f32 %v10298_v40, %v10297_v49 }
 0x58b   : > { %v9558_v18 = vpop.xlane.xlu1 %781  ;;  %v9560_v1 = vpop.xlane.xlu0 %784 }
 0x58c   : > { %10291 = vst [vmem:[#allocation74_spill] sm:$0xff] %v9558_v18  ;;  %10292 = vst [vmem:[#allocation76_spill] sm:$0xff] %v9560_v1  ;;  %v810_v1 = vadd.f32 %v10300_v59, %v10299_v3 }
 0x58d   : > { %790 = vadd.xlane.f32.xlu0 %v789_v62  ;;  %799 = vadd.xlane.f32.xlu1 %v798_v16  ;;  %v10301_v16 = vld [vmem:[#allocation66_spill] sm:$0xff] }
 0x58e   : > { %v807_v60 = vadd.f32 %v10302_v29, %v10301_v16 }
 0x58f   : > { %v9566_v25 = vpop.xlane.xlu1 %787  ;;  %v4052_v54 = vpop.xlane.xlu0 %4051 }
 0x590   : > { %6516 = vrcp.f32 %v4052_v54 }
 0x591   : > { %796 = vadd.xlane.f32.xlu0 %v795_v46  ;;  %805 = vadd.xlane.f32.xlu1 %v804_v55 }
 0x593   : > { %v4049_v62 = vpop.xlane.xlu1 %4048  ;;  %v4058_v18 = vpop.xlane.xlu0 %4057 }
 0x594   : > { %6518 = vrcp.f32 %v4049_v62 }
 0x595   : > { %802 = vadd.xlane.f32.xlu0 %v801_v42  ;;  %6520 = vrcp.f32 %v4058_v18  ;;  %811 = vadd.xlane.f32.xlu1 %v810_v1  ;;  %v10303_v18 = vld [vmem:[#allocation94_spill] sm:$0xff] }
 0x597   : > { %v4055_v2 = vpop.xlane.xlu1 %4054  ;;  %v4064_v36 = vpop.xlane.xlu0 %4063 }
 0x598   : > { %6522 = vrcp.f32 %v4055_v2 }
 0x599   : > { %808 = vadd.xlane.f32.xlu0 %v807_v60  ;;  %6524 = vrcp.f32 %v4064_v36 }
 0x59b   : > { %v4061_v46 = vpop.xlane.xlu1 %4060  ;;  %v4070_v54 = vpop.xlane.xlu0 %4069 }
 0x59c   : > { %6526 = vrcp.f32 %v4061_v46  ;;  %v10304_v46 = vld [vmem:[#allocation90_spill] sm:$0xff] }
 0x59d   : > { %6528 = vrcp.f32 %v4070_v54  ;;  %v6517_v55 = vpop.eup %6516 }
 0x59e   : > { %v4177_v49 = vmul.f32 %v6517_v55, %v9291_v63  ;;  %v4178_v40 = vmul.f32 %v6517_v55, %v9296_v13 }
 0x59f   : > { %v4067_v42 = vpop.xlane.xlu1 %4066  ;;  %v4076_v3 = vpop.xlane.xlu0 %4075 }
 0x5a0   : > { %6530 = vrcp.f32 %v4067_v42  ;;  %v4241_v1 = vmul.f32 %v4177_v49, %v10303_v18  ;;  %v4242_v62 = vmul.f32 %v4178_v40, %v10303_v18 }
 0x5a1   : > { %v6519_v59 = vpop.eup %6518  ;;  %6532 = vrcp.f32 %v4076_v3 }
 0x5a2   : > { %v6521_v16 = vpop.eup %6520  ;;  %v4175_v29 = vmul.f32 %v6519_v59, %v9298_v12  ;;  %v4176_v60 = vmul.f32 %v6519_v59, %v9301_v47  ;;  %v5516_v2 = vpack.c.bf16 %v4242_v62, %v4241_v1  ;;  %v10305_v12 = vld [vmem:[#allocation93_spill] sm:$0xff] }
 0x5a3   : > { %v4181_v63 = vmul.f32 %v6521_v16, %v9306_v11  ;;  %v4182_v13 = vmul.f32 %v6521_v16, %v9310_v31  ;;  %v4073_v36 = vpop.xlane.xlu1 %4072  ;;  %v4082_v49 = vpop.xlane.xlu0 %4081 }
 0x5a4   : > { %v4239_v54 = vmul.f32 %v4175_v29, %v10304_v46  ;;  %v4240_v55 = vmul.f32 %v4176_v60, %v10304_v46  ;;  %6534 = vrcp.f32 %v4073_v36  ;;  %4496 = vst [vmem:[%s9585_s26 + $0x8] sm:$0xff] %v5516_v2  ;;  %v10306_v29 = vld [vmem:[#allocation87_spill] sm:$0xff] }
 0x5a5   : > { %v6523_v40 = vpop.eup %6522  ;;  %v4245_v47 = vmul.f32 %v4181_v63, %v10305_v12  ;;  %v4246_v11 = vmul.f32 %v4182_v13, %v10305_v12  ;;  %6536 = vrcp.f32 %v4082_v49 }
 0x5a6   : > { %v6525_v31 = vpop.eup %6524  ;;  %v5515_v42 = vpack.c.bf16 %v4240_v55, %v4239_v54  ;;  %v4179_v3 = vmul.f32 %v6523_v40, %v9313_v7  ;;  %v4180_v59 = vmul.f32 %v6523_v40, %v9315_v44  ;;  %v10307_v7 = vld [vmem:[#allocation95_spill] sm:$0xff] }
 0x5a7   : > { %v5518_v18 = vpack.c.bf16 %v4246_v11, %v4245_v47  ;;  %v4185_v1 = vmul.f32 %v6525_v31, %v9320_v45  ;;  %v4186_v62 = vmul.f32 %v6525_v31, %v9324_v58  ;;  %v4079_v16 = vpop.xlane.xlu1 %4078  ;;  %v4088_v63 = vpop.xlane.xlu0 %4087 }
 0x5a8   : > { %4495 = vst [vmem:[%s9585_s26] sm:$0xff] %v5515_v42  ;;  %v4243_v60 = vmul.f32 %v4179_v3, %v10306_v29  ;;  %v4244_v2 = vmul.f32 %v4180_v59, %v10306_v29  ;;  %6538 = vrcp.f32 %v4079_v16 }
 0x5a9   : > { %v6527_v13 = vpop.eup %6526  ;;  %4498 = vst [vmem:[%s9585_s26 + $0x18] sm:$0xff] %v5518_v18  ;;  %v4249_v44 = vmul.f32 %v4185_v1, %v10307_v7  ;;  %v4250_v36 = vmul.f32 %v4186_v62, %v10307_v7  ;;  %6540 = vrcp.f32 %v4088_v63 }
 0x5aa   : > { %v6529_v45 = vpop.eup %6528  ;;  %v5517_v58 = vpack.c.bf16 %v4244_v2, %v4243_v60  ;;  %v4183_v46 = vmul.f32 %v6527_v13, %v9328_v39  ;;  %v4184_v54 = vmul.f32 %v6527_v13, %v9332_v10 }
 0x5ab   : > { %v5520_v55 = vpack.c.bf16 %v4250_v36, %v4249_v44  ;;  %v4189_v49 = vmul.f32 %v6529_v45, %v9334_v15  ;;  %v4190_v40 = vmul.f32 %v6529_v45, %v9338_v5  ;;  %v4085_v12 = vpop.xlane.xlu1 %4084 }
 0x5ac   : > { %6779 = shalt.err (!%p6776_p8)
}
 0x5ad   : > { %s6780_s15 = scalar_lea.hbm %s9606_s12, 4096  ;;  %s6784_s4 = scalar_lea.hbm %s9857_s13, 8192 }
 0x5ae   : > { %p6781_p3 = scmp.ne.s32.totalorder %s9606_s12, %s6780_s15  ;;  %p6785_p5 = scmp.lt.s32.totalorder %s9606_s12, %s9857_s13 }
 0x5af   : > { %p6786_p11 = scmp.lt.s32.totalorder %s6784_s4, %s6780_s15 }
 0x5b0   : > { %p6782_p7 = pnand %p6781_p3, %p10308_p2 }
 0x5b1   : > { %p6787_p13 = por %p6786_p11, %p6785_p5 }
 0x5b2   : > { %p6783_p12 = pneg %p6782_p7 }
 0x5b4   : > { %p6788_p0 = pnand %p6787_p13, %p6783_p12 }
 0x5b6   : > { %6791 = shalt.err (!%p6788_p0)
}
 0x5b7   : > { %s6919_s24 = smov 128   ;;  %s6920_s8 = smov 8   ;;  %4497 = vst [vmem:[%s9585_s26 + $0x10] sm:$0xff] %v5517_v58  ;;  %v10309_v39 = vld [vmem:[#allocation96_spill] sm:$0xff]  ;;  %6542 = vrcp.f32 %v4085_v12  ;;  %v6531_v5 = vpop.eup %6530  ;;  %4500 = vst [vmem:[%s9585_s26 + $0x28] sm:$0xff] %v5520_v55  ;;  %v10310_v47 = vld [vmem:[#allocation98_spill] sm:$0xff]  ;;  %v4094_v42 = vpop.xlane.xlu0 %4093 }
 0x5b8   : > { %5810 = dma.vmem_to_hbm [thread:$0]  (%p10308_p2), %s9611_s23, 4096, %s9606_s12, %s9617_s29, %s6919_s24, %s6919_s24, %s6920_s8   ;;  %v4247_v10 = vmul.f32 %v4183_v46, %v10309_v39  ;;  %v4248_v15 = vmul.f32 %v4184_v54, %v10309_v39  ;;  %v4253_v11 = vmul.f32 %v4189_v49, %v10310_v47  ;;  %v4254_v31 = vmul.f32 %v4190_v40, %v10310_v47  ;;  %v6533_v3 = vpop.eup %6532  ;;  %v4091_v60 = vpop.xlane.xlu1 %4090  ;;  %v10313_v13 = vld [vmem:[#allocation101_spill] sm:$0xff] }
 0x5b9   : > { %s5584_s20 = sshll.u32 %s7021_s19, 13  ;;  %v4187_v18 = vmul.f32 %v6531_v5, %v9342_v22  ;;  %v4188_v1 = vmul.f32 %v6531_v5, %v9344_v9  ;;  %6544 = vrcp.f32 %v4094_v42  ;;  %s10311_s28 = sld [smem:[#allocation110_spill]]  ;;  %v4193_v16 = vmul.f32 %v6533_v3, %v9348_v61  ;;  %v10312_v22 = vld [vmem:[#allocation100_spill] sm:$0xff]  ;;  %v6535_v63 = vpop.eup %6534 }
 0x5ba   : > { %v5519_v59 = vpack.c.bf16 %v4248_v15, %v4247_v10  ;;  %s5066_s6 = sshll.u32 %s8256_s25, 4  ;;  %v5522_v62 = vpack.c.bf16 %v4254_v31, %v4253_v11  ;;  %v4194_v29 = vmul.f32 %v6533_v3, %v9354_v0  ;;  %6546 = vrcp.f32 %v4091_v60  ;;  %s6921_s10 = smov [#allocation17]   ;;  %s9660_s6 = int_to_ptr.vmem [resolvable:$true] %s5066_s6 }
 0x5bb   : > { %v4251_v9 = vmul.f32 %v4187_v18, %v10312_v22  ;;  %v4252_v2 = vmul.f32 %v4188_v1, %v10312_v22  ;;  %v4257_v7 = vmul.f32 %v4193_v16, %v10313_v13  ;;  %s6792_s25 = scalar_lea.vmem %s9660_s6, 8192  ;;  %s6796_s15 = sshll.u32 %s6921_s10, 4  ;;  %s6797_s15 = int_to_ptr.vmem [resolvable:$false] %s6796_s15 }
 0x5bc   : > { %4499 = vst [vmem:[%s9585_s26 + $0x20] sm:$0xff] %v5519_v59  ;;  %4502 = vst [vmem:[%s9585_s26 + $0x38] sm:$0xff] %v5522_v62  ;;  %v4258_v61 = vmul.f32 %v4194_v29, %v10313_v13  ;;  %p6793_p9 = scmp.ne.s32.totalorder %s9660_s6, %s6792_s25  ;;  %s6798_s17 = scalar_lea.vmem %s6797_s15, 16384 }
 0x5bd   : > { %p6799_p4 = scmp.lt.s32.totalorder %s9660_s6, %s6797_s15  ;;  %p6800_p6 = scmp.lt.s32.totalorder %s6798_s17, %s6792_s25 }
 0x5be   : > { %p6794_p10 = pnand %p6793_p9, %p10308_p2 }
 0x5bf   : > { %s9655_s21 = scalar_lea.hbm %s10311_s28, %s5584_s20  ;;  %p6801_p8 = por %p6800_p6, %p6799_p4 }
 0x5c0   : > { %p6795_p1 = pneg %p6794_p10 }
 0x5c2   : > { %p6802_p3 = pnand %p6801_p8, %p6795_p1 }
 0x5c4   : > { %6805 = shalt.err (!%p6802_p3)
}
 0x5c5   : > { %s6806_s22 = scalar_lea.hbm %s9655_s21, 8192  ;;  %s6810_s18 = scalar_lea.hbm %s10311_s28, 16384 }
 0x5c6   : > { %p6807_p7 = scmp.ne.s32.totalorder %s9655_s21, %s6806_s22  ;;  %p6811_p11 = scmp.lt.s32.totalorder %s9655_s21, %s10311_s28 }
 0x5c7   : > { %p6812_p13 = scmp.lt.s32.totalorder %s6810_s18, %s6806_s22 }
 0x5c8   : > { %p6808_p12 = pnand %p6807_p7, %p10308_p2 }
 0x5c9   : > { %p6813_p0 = por %p6812_p13, %p6811_p11 }
 0x5ca   : > { %p6809_p5 = pneg %p6808_p12 }
 0x5cc   : > { %p6814_p9 = pnand %p6813_p0, %p6809_p5 }
 0x5ce   : > { %6817 = shalt.err (!%p6814_p9)
}
 0x5cf   : > { %s6922_s23 = smov 256   ;;  %s6923_s25 = smov 16   ;;  %v6537_v0 = vpop.eup %6536  ;;  %v5521_v44 = vpack.c.bf16 %v4252_v2, %v4251_v9  ;;  %v4191_v36 = vmul.f32 %v6535_v63, %v9356_v19  ;;  %v4192_v45 = vmul.f32 %v6535_v63, %v9358_v33  ;;  %v5524_v58 = vpack.c.bf16 %v4258_v61, %v4257_v7  ;;  %v10314_v55 = vld [vmem:[#allocation102_spill] sm:$0xff]  ;;  %v4097_v16 = vpop.xlane.xlu1 %4096 }
 0x5d0   : > { %5811 = dma.vmem_to_hbm [thread:$0]  (%p10308_p2), %s9660_s6, 8192, %s9655_s21, %s9617_s29, %s6922_s23, %s6922_s23, %s6923_s25   ;;  %v4197_v46 = vmul.f32 %v6537_v0, %v9362_v20  ;;  %v4198_v54 = vmul.f32 %v6537_v0, %v9366_v51  ;;  %v6539_v12 = vpop.eup %6538  ;;  %6548 = vrcp.f32 %v4097_v16 }
 0x5d1   : > { %4501 = vst [vmem:[%s9585_s26 + $0x30] sm:$0xff] %v5521_v44  ;;  %v4255_v49 = vmul.f32 %v4191_v36, %v10314_v55  ;;  %v4256_v40 = vmul.f32 %v4192_v45, %v10314_v55  ;;  %4504 = vst [vmem:[%s9585_s26 + $0x48] sm:$0xff] %v5524_v58  ;;  %v6541_v10 = vpop.eup %6540  ;;  %v4195_v15 = vmul.f32 %v6539_v12, %v9368_v23  ;;  %s5032_s29 = sshll.u32 %s9585_s26, 4  ;;  %s10345_s10 = sld [smem:[#allocation109_spill]]  ;;  %s9796_s29 = int_to_ptr.vmem [resolvable:$true] %s5032_s29 }
 0x5d2   : > { %v4261_v39 = vmul.f32 %v4197_v46, %v9508_v38  ;;  %v4262_v19 = vmul.f32 %v4198_v54, %v9508_v38  ;;  %v4196_v20 = vmul.f32 %v6539_v12, %v9372_v43  ;;  %v4201_v5 = vmul.f32 %v6541_v10, %v9378_v14  ;;  %v6543_v42 = vpop.eup %6542  ;;  %v10316_v12 = vld [vmem:[#allocation32_spill] sm:$0xff]  ;;  %s5008_s17 = scalar_lea.sflag [#allocation4], %s7213_s0  ;;  %s6818_s22 = scalar_lea.vmem %s9796_s29, 4096 }
 0x5d3   : > { %v5523_v33 = vpack.c.bf16 %v4256_v40, %v4255_v49  ;;  %v4202_v47 = vmul.f32 %v6541_v10, %v9380_v41  ;;  %v4259_v11 = vmul.f32 %v4195_v15, %v9506_v24  ;;  %v4199_v43 = vmul.f32 %v6543_v42, %v9376_v32  ;;  %v6545_v14 = vpop.eup %6544  ;;  %v4103_v63 = vpop.xlane.xlu1 %4102  ;;  %v10315_v49 = vld [vmem:[#allocation30_spill] sm:$0xff]  ;;  %p6819_p10 = scmp.ne.s32.totalorder %s9796_s29, %s6818_s22  ;;  %s6924_s4 = smov [#allocation14]  }
 0x5d4   : > { %v5526_v51 = vpack.c.bf16 %v4262_v19, %v4261_v39  ;;  %v4260_v31 = vmul.f32 %v4196_v20, %v9506_v24  ;;  %v4265_v38 = vmul.f32 %v4201_v5, %v9516_v4  ;;  %v4200_v59 = vmul.f32 %v6543_v42, %v9384_v57  ;;  %v10317_v19 = vld [vmem:[#allocation71_spill] sm:$0xff]  ;;  %s6822_s19 = sshll.u32 %s6924_s4, 4  ;;  %s6823_s19 = int_to_ptr.vmem [resolvable:$false] %s6822_s19 }
 0x5d5   : > { %4503 = vst [vmem:[%s9585_s26 + $0x40] sm:$0xff] %v5523_v33  ;;  %v4266_v23 = vmul.f32 %v4202_v47, %v9516_v4  ;;  %v4263_v18 = vmul.f32 %v4199_v43, %v9510_v35  ;;  %v4205_v1 = vmul.f32 %v6545_v14, %v9396_v34  ;;  %v4206_v62 = vmul.f32 %v6545_v14, %v9398_v52  ;;  %v6547_v4 = vpop.eup %6546  ;;  %v10319_v47 = vld [vmem:[#allocation35_spill] sm:$0xff]  ;;  %v10321_v43 = vld [vmem:[#allocation33_spill] sm:$0xff]  ;;  %v10322_v14 = vld [vmem:[#allocation36_spill] sm:$0xff]  ;;  %p6820_p1 = pnand %p6819_p10, %p10308_p2  ;;  %s6824_s3 = scalar_lea.vmem %s6823_s19, 8192 }
 0x5d6   : > { %4506 = vst [vmem:[%s9585_s26 + $0x58] sm:$0xff] %v5526_v51  ;;  %v5525_v3 = vpack.c.bf16 %v4260_v31, %v4259_v11  ;;  %v4264_v24 = vmul.f32 %v4200_v59, %v9510_v35  ;;  %v4203_v57 = vmul.f32 %v6547_v4, %v9388_v30  ;;  %v4204_v29 = vmul.f32 %v6547_v4, %v9390_v28  ;;  %v4100_v35 = vpop.xlane.xlu0 %4099  ;;  %v10318_v51 = vld [vmem:[#allocation31_spill] sm:$0xff]  ;;  %v10320_v31 = vld [vmem:[#allocation73_spill] sm:$0xff]  ;;  %v10324_v4 = vld [vmem:[#allocation34_spill] sm:$0xff]  ;;  %p6825_p6 = scmp.lt.s32.totalorder %s9796_s29, %s6823_s19  ;;  %p6826_p8 = scmp.lt.s32.totalorder %s6824_s3, %s6818_s22 }
 0x5d7   : > { %v5528_v41 = vpack.c.bf16 %v4266_v23, %v4265_v38  ;;  %v4269_v60 = vmul.f32 %v4205_v1, %v9526_v21  ;;  %v4270_v22 = vmul.f32 %v4206_v62, %v9526_v21  ;;  %6550 = vrcp.f32 %v4100_v35  ;;  %v10327_v35 = vld [vmem:[#allocation37_spill] sm:$0xff]  ;;  %s9794_s15 = scalar_lea.hbm %s10345_s10, %s5580_s14  ;;  %p6821_p4 = pneg %p6820_p1 }
 0x5d8   : > { %4505 = vst [vmem:[%s9585_s26 + $0x50] sm:$0xff] %v5525_v3  ;;  %v5527_v32 = vpack.c.bf16 %v4264_v24, %v4263_v18  ;;  %v4267_v34 = vmul.f32 %v4203_v57, %v9520_v37  ;;  %v4268_v52 = vmul.f32 %v4204_v29, %v9520_v37  ;;  %6552 = vrcp.f32 %v4103_v63  ;;  %v10323_v18 = vld [vmem:[#allocation74_spill] sm:$0xff]  ;;  %v10325_v57 = vld [vmem:[#allocation39_spill] sm:$0xff]  ;;  %p6827_p3 = por %p6826_p8, %p6825_p6 }
 0x5d9   : > { %4508 = vst [vmem:[%s9585_s26 + $0x68] sm:$0xff] %v5528_v41  ;;  %v5530_v9 = vpack.c.bf16 %v4270_v22, %v4269_v60  ;;  %v10326_v22 = vld [vmem:[#allocation76_spill] sm:$0xff] }
 0x5da   : > { %4507 = vst [vmem:[%s9585_s26 + $0x60] sm:$0xff] %v5527_v32  ;;  %v5529_v2 = vpack.c.bf16 %v4268_v52, %v4267_v34  ;;  %v4106_v30 = vpop.xlane.xlu0 %4105  ;;  %p6828_p7 = pnand %p6827_p3, %p6821_p4 }
 0x5db   : > { %4510 = vst [vmem:[%s9585_s26 + $0x78] sm:$0xff] %v5530_v9  ;;  %6554 = vrcp.f32 %v4106_v30 }
 0x5dc   : > { %4509 = vst [vmem:[%s9585_s26 + $0x70] sm:$0xff] %v5529_v2  ;;  %v10328_v2 = vld [vmem:[#allocation40_spill] sm:$0xff] }
 0x5dd   : > { %v6549_v28 = vpop.eup %6548 }
 0x5de   : > { %v4207_v13 = vmul.f32 %v6549_v28, %v9410_v17  ;;  %v4208_v21 = vmul.f32 %v6549_v28, %v9412_v56 }
 0x5e0   : > { %v4271_v7 = vmul.f32 %v4207_v13, %v9530_v8  ;;  %v4272_v37 = vmul.f32 %v4208_v21, %v9530_v8 }
 0x5e2   : > { %v5531_v0 = vpack.c.bf16 %v4272_v37, %v4271_v7 }
 0x5e4   : > { %v6551_v61 = vpop.eup %6550  ;;  %4511 = vst [vmem:[%s9585_s26 + $0x80] sm:$0xff] %v5531_v0 }
 0x5e5   : > { %v4209_v44 = vmul.f32 %v6551_v61, %v9416_v50  ;;  %v4210_v36 = vmul.f32 %v6551_v61, %v9418_v26  ;;  %v6553_v17 = vpop.eup %6552  ;;  %v4109_v26 = vpop.xlane.xlu1 %4108 }
 0x5e6   : > { %v4211_v56 = vmul.f32 %v6553_v17, %v9422_v27  ;;  %v4212_v54 = vmul.f32 %v6553_v17, %v9426_v6  ;;  %6556 = vrcp.f32 %v4109_v26  ;;  %v4112_v6 = vpop.xlane.xlu0 %4111 }
 0x5e7   : > { %v4273_v45 = vmul.f32 %v4209_v44, %v9536_v53  ;;  %v4274_v58 = vmul.f32 %v4210_v36, %v9536_v53  ;;  %6558 = vrcp.f32 %v4112_v6 }
 0x5e8   : > { %v6555_v8 = vpop.eup %6554  ;;  %v4275_v55 = vmul.f32 %v4211_v56, %v9540_v48  ;;  %v4276_v50 = vmul.f32 %v4212_v54, %v9540_v48  ;;  %v10330_v56 = vld [vmem:[#allocation44_spill] sm:$0xff] }
 0x5e9   : > { %v5532_v46 = vpack.c.bf16 %v4274_v58, %v4273_v45  ;;  %v4213_v40 = vmul.f32 %v6555_v8, %v10315_v49  ;;  %v4214_v39 = vmul.f32 %v6555_v8, %v10316_v12  ;;  %v4115_v15 = vpop.xlane.xlu1 %4114 }
 0x5ea   : > { %v5533_v53 = vpack.c.bf16 %v4276_v50, %v4275_v55  ;;  %6560 = vrcp.f32 %v4115_v15  ;;  %v4118_v48 = vpop.xlane.xlu0 %4117 }
 0x5eb   : > { %4512 = vst [vmem:[%s9585_s26 + $0x88] sm:$0xff] %v5532_v46  ;;  %v4277_v10 = vmul.f32 %v4213_v40, %v10317_v19  ;;  %v4278_v27 = vmul.f32 %v4214_v39, %v10317_v19  ;;  %6562 = vrcp.f32 %v4118_v48  ;;  %v10331_v40 = vld [vmem:[#allocation38_spill] sm:$0xff]  ;;  %v10332_v39 = vld [vmem:[#allocation43_spill] sm:$0xff] }
 0x5ec   : > { %4513 = vst [vmem:[%s9585_s26 + $0x90] sm:$0xff] %v5533_v53 }
 0x5ed   : > { %v5534_v33 = vpack.c.bf16 %v4278_v27, %v4277_v10  ;;  %v4121_v37 = vpop.xlane.xlu1 %4120  ;;  %v10333_v27 = vld [vmem:[#allocation47_spill] sm:$0xff] }
 0x5ef   : > { %4514 = vst [vmem:[%s9585_s26 + $0x98] sm:$0xff] %v5534_v33  ;;  %v10334_v33 = vld [vmem:[#allocation46_spill] sm:$0xff] }
 0x5f1   : > { %v4124_v7 = vpop.xlane.xlu0 %4123 }
 0x5f2   : > { %6564 = vrcp.f32 %v4124_v7  ;;  %v10341_v7 = vld [vmem:[#allocation68_spill] sm:$0xff] }
 0x5f3   : > { %v6557_v20 = vpop.eup %6556  ;;  %6566 = vrcp.f32 %v4121_v37 }
 0x5f4   : > { %v4215_v5 = vmul.f32 %v6557_v20, %v10318_v51  ;;  %v4216_v11 = vmul.f32 %v6557_v20, %v10319_v47  ;;  %v6559_v23 = vpop.eup %6558 }
 0x5f5   : > { %v4217_v59 = vmul.f32 %v6559_v23, %v10321_v43  ;;  %v4218_v41 = vmul.f32 %v6559_v23, %v10322_v14  ;;  %v4127_v0 = vpop.xlane.xlu1 %4126 }
 0x5f6   : > { %v4279_v42 = vmul.f32 %v4215_v5, %v10320_v31  ;;  %v4280_v38 = vmul.f32 %v4216_v11, %v10320_v31 }
 0x5f7   : > { %v4281_v24 = vmul.f32 %v4217_v59, %v10323_v18  ;;  %v4282_v1 = vmul.f32 %v4218_v41, %v10323_v18  ;;  %v6561_v62 = vpop.eup %6560  ;;  %v10337_v41 = vld [vmem:[#allocation51_spill] sm:$0xff] }
 0x5f8   : > { %v5535_v3 = vpack.c.bf16 %v4280_v38, %v4279_v42  ;;  %v4219_v32 = vmul.f32 %v6561_v62, %v10324_v4  ;;  %v4220_v29 = vmul.f32 %v6561_v62, %v10325_v57  ;;  %v6563_v60 = vpop.eup %6562  ;;  %v10335_v38 = vld [vmem:[#allocation42_spill] sm:$0xff] }
 0x5f9   : > { %v5536_v16 = vpack.c.bf16 %v4282_v1, %v4281_v24  ;;  %v4221_v9 = vmul.f32 %v6563_v60, %v10327_v35  ;;  %v4222_v63 = vmul.f32 %v6563_v60, %v10328_v2  ;;  %v4130_v61 = vpop.xlane.xlu0 %4129  ;;  %v10338_v24 = vld [vmem:[#allocation49_spill] sm:$0xff]  ;;  %v10340_v35 = vld [vmem:[#allocation48_spill] sm:$0xff] }
 0x5fa   : > { %4515 = vst [vmem:[%s9585_s26 + $0xa0] sm:$0xff] %v5535_v3  ;;  %v4283_v34 = vmul.f32 %v4219_v32, %v10326_v22  ;;  %v4284_v52 = vmul.f32 %v4220_v29, %v10326_v22  ;;  %6568 = vrcp.f32 %v4130_v61  ;;  %v10336_v3 = vld [vmem:[#allocation45_spill] sm:$0xff] }
 0x5fb   : > { %4516 = vst [vmem:[%s9585_s26 + $0xa8] sm:$0xff] %v5536_v16  ;;  %v4285_v28 = vmul.f32 %v4221_v9, %v9566_v25  ;;  %v4286_v13 = vmul.f32 %v4222_v63, %v9566_v25  ;;  %6570 = vrcp.f32 %v4127_v0  ;;  %v10329_v25 = vld [vmem:[#allocation41_spill] sm:$0xff] }
 0x5fc   : > { %v5537_v30 = vpack.c.bf16 %v4284_v52, %v4283_v34  ;;  %v10339_v34 = vld [vmem:[#allocation50_spill] sm:$0xff]  ;;  %v10342_v0 = vld [vmem:[#allocation69_spill] sm:$0xff] }
 0x5fd   : > { %v5538_v21 = vpack.c.bf16 %v4286_v13, %v4285_v28 }
 0x5fe   : > { %4517 = vst [vmem:[%s9585_s26 + $0xb0] sm:$0xff] %v5537_v30 }
 0x5ff   : > { %4518 = vst [vmem:[%s9585_s26 + $0xb8] sm:$0xff] %v5538_v21  ;;  %v6565_v45 = vpop.eup %6564 }
 0x600   : > { %v6567_v17 = vpop.eup %6566  ;;  %v4225_v46 = vmul.f32 %v6565_v45, %v10329_v25  ;;  %v4226_v54 = vmul.f32 %v6565_v45, %v10330_v56 }
 0x601   : > { %v4223_v12 = vmul.f32 %v6567_v17, %v10331_v40  ;;  %v4224_v53 = vmul.f32 %v6567_v17, %v10332_v39 }
 0x606   : > { %v4133_v44 = vpop.xlane.xlu1 %4132 }
 0x607   : > { %v6569_v55 = vpop.eup %6568 }
 0x608   : > { %v6571_v19 = vpop.eup %6570  ;;  %v4229_v6 = vmul.f32 %v6569_v55, %v10333_v27  ;;  %v4230_v15 = vmul.f32 %v6569_v55, %v10334_v33 }
 0x609   : > { %v4227_v23 = vmul.f32 %v6571_v19, %v10335_v38  ;;  %v4228_v43 = vmul.f32 %v6571_v19, %v10336_v3 }
 0x60a   : > { %v4136_v36 = vpop.xlane.xlu0 %4135 }
 0x60b   : > { %6572 = vrcp.f32 %v4136_v36  ;;  %v10343_v36 = vld [vmem:[#allocation72_spill] sm:$0xff] }
 0x60c   : > { %6574 = vrcp.f32 %v4133_v44 }
 0x60e   : > { %v4139_v58 = vpop.xlane.xlu1 %4138 }
 0x60f   : > { %6576 = vrcp.f32 %v4139_v58  ;;  %v10344_v58 = vld [vmem:[#allocation70_spill] sm:$0xff] }
 0x612   : > { %v4142_v8 = vpop.xlane.xlu0 %4141  ;;  %v794_v50 = vpop.xlane.xlu1 %793 }
 0x613   : > { %6578 = vrcp.f32 %v4142_v8  ;;  %v4289_v26 = vmul.f32 %v4225_v46, %v794_v50  ;;  %v4290_v49 = vmul.f32 %v4226_v54, %v794_v50 }
 0x615   : > { %v5540_v10 = vpack.c.bf16 %v4290_v49, %v4289_v26 }
 0x616   : > { %v791_v48 = vpop.xlane.xlu0 %790  ;;  %v800_v20 = vpop.xlane.xlu1 %799 }
 0x617   : > { %v4287_v51 = vmul.f32 %v4223_v12, %v791_v48  ;;  %v4288_v5 = vmul.f32 %v4224_v53, %v791_v48  ;;  %4520 = vst [vmem:[%s9585_s26 + $0xc8] sm:$0xff] %v5540_v10  ;;  %v4293_v47 = vmul.f32 %v4229_v6, %v800_v20  ;;  %v4294_v11 = vmul.f32 %v4230_v15, %v800_v20 }
 0x618   : > { %v6573_v31 = vpop.eup %6572 }
 0x619   : > { %v5539_v42 = vpack.c.bf16 %v4288_v5, %v4287_v51  ;;  %v6575_v59 = vpop.eup %6574  ;;  %v5542_v14 = vpack.c.bf16 %v4294_v11, %v4293_v47  ;;  %v4233_v18 = vmul.f32 %v6573_v31, %v10337_v41  ;;  %v4234_v1 = vmul.f32 %v6573_v31, %v10338_v24 }
 0x61a   : > { %v797_v62 = vpop.xlane.xlu0 %796  ;;  %v806_v16 = vpop.xlane.xlu1 %805  ;;  %v4231_v52 = vmul.f32 %v6575_v59, %v10339_v34  ;;  %v4232_v9 = vmul.f32 %v6575_v59, %v10340_v35 }
 0x61b   : > { %4519 = vst [vmem:[%s9585_s26 + $0xc0] sm:$0xff] %v5539_v42  ;;  %v4291_v4 = vmul.f32 %v4227_v23, %v797_v62  ;;  %v4292_v32 = vmul.f32 %v4228_v43, %v797_v62  ;;  %4522 = vst [vmem:[%s9585_s26 + $0xd8] sm:$0xff] %v5542_v14  ;;  %v4297_v57 = vmul.f32 %v4233_v18, %v806_v16 }
 0x61c   : > { %v4298_v29 = vmul.f32 %v4234_v1, %v806_v16  ;;  %v6577_v60 = vpop.eup %6576 }
 0x61d   : > { %v5541_v22 = vpack.c.bf16 %v4292_v32, %v4291_v4  ;;  %v4235_v37 = vmul.f32 %v6577_v60, %v10341_v7  ;;  %v4236_v17 = vmul.f32 %v6577_v60, %v10344_v58 }
 0x61e   : > { %v5544_v2 = vpack.c.bf16 %v4298_v29, %v4297_v57  ;;  %v803_v63 = vpop.xlane.xlu0 %802  ;;  %v812_v21 = vpop.xlane.xlu1 %811 }
 0x61f   : > { %4521 = vst [vmem:[%s9585_s26 + $0xd0] sm:$0xff] %v5541_v22  ;;  %v4295_v30 = vmul.f32 %v4231_v52, %v803_v63  ;;  %v4296_v28 = vmul.f32 %v4232_v9, %v803_v63 }
 0x620   : > { %v6579_v13 = vpop.eup %6578  ;;  %4524 = vst [vmem:[%s9585_s26 + $0xe8] sm:$0xff] %v5544_v2 }
 0x621   : > { %v5543_v61 = vpack.c.bf16 %v4296_v28, %v4295_v30  ;;  %v4237_v44 = vmul.f32 %v6579_v13, %v10342_v0  ;;  %v4238_v45 = vmul.f32 %v6579_v13, %v10343_v36 }
 0x622   : > { %v809_v25 = vpop.xlane.xlu0 %808 }
 0x623   : > { %4523 = vst [vmem:[%s9585_s26 + $0xe0] sm:$0xff] %v5543_v61  ;;  %v4301_v46 = vmul.f32 %v4237_v44, %v812_v21  ;;  %v4302_v56 = vmul.f32 %v4238_v45, %v812_v21  ;;  %v4299_v54 = vmul.f32 %v4235_v37, %v809_v25  ;;  %v4300_v8 = vmul.f32 %v4236_v17, %v809_v25 }
 0x625   : > { %v5546_v55 = vpack.c.bf16 %v4302_v56, %v4301_v46  ;;  %v5545_v50 = vpack.c.bf16 %v4300_v8, %v4299_v54 }
 0x627   : > { %4526 = vst [vmem:[%s9585_s26 + $0xf8] sm:$0xff] %v5546_v55  ;;  %4525 = vst [vmem:[%s9585_s26 + $0xf0] sm:$0xff] %v5545_v50 }
 0x628   : > { %6831 = shalt.err (!%p6828_p7)
}
 0x629   : > { %s6832_s26 = scalar_lea.hbm %s9794_s15, 4096  ;;  %s6836_s18 = scalar_lea.hbm %s10345_s10, 8192 }
 0x62a   : > { %p6833_p12 = scmp.ne.s32.totalorder %s9794_s15, %s6832_s26  ;;  %p6837_p13 = scmp.lt.s32.totalorder %s9794_s15, %s10345_s10 }
 0x62b   : > { %p6838_p0 = scmp.lt.s32.totalorder %s6836_s18, %s6832_s26 }
 0x62c   : > { %p6834_p5 = pnand %p6833_p12, %p10308_p2 }
 0x62d   : > { %p6839_p9 = por %p6838_p0, %p6837_p13 }
 0x62e   : > { %p6835_p11 = pneg %p6834_p5 }
 0x630   : > { %p6840_p10 = pnand %p6839_p9, %p6835_p11 }
 0x632   : > { %6843 = shalt.err (!%p6840_p10)
}
 0x633   : > { %5809 = dma.vmem_to_hbm [thread:$0]  (%p10308_p2), %s9796_s29, 4096, %s9794_s15, %s5008_s17, %s6919_s24, %s6919_s24, %s6920_s8  }
 0x634 PF: > { %s10346_s23 = sld [smem:[#allocation25_spill]]  ;;  %p10349_p4 = scmp.ge.s32.totalorder %s6902_s16, 2 }
 0x635   : > { %s10347_s25 = sld [smem:[#allocation29_spill]] }
 0x63a   : > { %s5081_s21 = sand.u32 1, %s10346_s23  }
 0x63b   : > { %p10348_p1 = scmp.ne.s32.totalorder %s10347_s25, 0  ;;  %s5082_s6 = scalar_lea.sflag [#allocation4], %s5081_s21 }
 0x63d   : > { %p5839_p6 = pnand %p10349_p4, %p10348_p1 }
 0x63f   : > { %p5840_p8 = pneg %p5839_p6 }
 0x641   : > { %6881 = dma.done.wait (%p5840_p8), %s5082_s6, 4096  }
 0x642   : > { %6883 = vsyncadd (%p5840_p8), %s5082_s6, 4294963200  ;;  %s10350_s27 = sadd.s32 4294967294, %s6902_s16  }
 0x643   : > { %s5090_s22 = sand.u32 1, %s10350_s27  }
 0x644   : > { %s5091_s4 = scalar_lea.sflag [#allocation16], %s5090_s22 }
 0x645   : > { %6885 = dma.done.wait (%p5840_p8), %s5091_s4, 12288  }
 0x646   : > { %6887 = vsyncadd (%p5840_p8), %s5091_s4, 4294955008  ;;  %s10351_s16 = sld [smem:[#allocation27_spill]]  ;;  %s10354_s29 = smov %s6894_s30 }
 0x647   : > { %s10352_s24 = sld [smem:[#allocation26_spill]] }
 0x648   : > { %s10353_s15 = sld [smem:[#allocation28_spill]] }
 0x64c   : > { %p36_p2 = scmp.ge.s32.totalorder %s10351_s16, 4  }
 0x64d   : > { %s10355_s30 = smov %s10352_s24 }
 0x64e   :  { %38 = sbr.rel (!%p36_p2) target bundleno = 20 (0x14), region = 178 }
 0x653   :  { %5105 = vsyncpa [#allocation3], 1 }
 0x654   :  { %5107 = vsyncpa [#allocation3 + $0x1], 1 }
 0x655   :  { %5108 = vsyncpa [#allocation6], 1 }
 0x656   :  { %5110 = vsyncpa [#allocation6 + $0x1], 1 }
 0x657   :  { %5111 = vsyncpa [#allocation9], 1 }
 0x658   :  { %5112 = vsyncpa [#allocation12], 1 }
 0x659   :  { %5113 = vsyncpa [#allocation4], 1 }
 0x65a   :  { %5115 = vsyncpa [#allocation4 + $0x1], 1 }
 0x65b   :  { %5116 = vsyncpa [#allocation16], 1 }
 0x65c   :  { %5118 = vsyncpa [#allocation16 + $0x1], 1 }

</bundles_post_ra>
